<compile_context>
chip_gen: v5e
topology: v5e:2x2
jax: 0.10.0
libtpu: 0.0.40
codegen_flags: <defaults>
</compile_context>

<pallas_src>
import functools

import jax
import jax.numpy as jnp
import numpy as np
from jax import lax
from jax.experimental import pallas as pl
from jax.experimental.pallas import tpu as pltpu

# ---- module hyper-parameters (consistent with ForwardDynamics.__init__) ----
HIDDEN = 32          # hidden_size (module default 128; kept small here)
N_MP_LAYERS = 3      # n_mp_layers (module default 10; kept small here)
NUM_TYPES = 2        # num_particle_types
TYPE_DIM = 7         # particle_type_dim
DIM = 2
WINDOW = 2
NODE_DIM = TYPE_DIM + DIM * 2 * (WINDOW - 1)   # 11
EDGE_DIM = (WINDOW - 1) * (DIM + 1)            # 3
OUT_DIM = DIM + 1                              # 3
OUT_ROWS = 8                                   # decoder output rows (OUT_DIM padded to one sublane tile)


# ------------------------------ small helpers ------------------------------

def _leaky(x):
    return jnp.where(x > 0, x, 0.01 * x)


def _dot(a, b):
    return jnp.dot(a, b, preferred_element_type=jnp.float32)


def _ref_dot(a, b):
    return jnp.dot(a, b, preferred_element_type=jnp.float32,
                   precision=lax.Precision.HIGHEST)


def _mlp3(x, w1, b1, w2, b2, w3, b3, dot=_dot):
    """3-layer MLP; matmuls run in the weights' dtype, accumulate/bias in f32."""
    h = _leaky(dot(x.astype(w1.dtype), w1) + b1)
    h = _leaky(dot(h.astype(w2.dtype), w2) + b2)
    return dot(h.astype(w3.dtype), w3) + b3


# ---------------------------------- kernels ----------------------------------

def mlp3_kernel(x_ref, w1, b1, w2, b2, w3, b3, o_ref):
    """Row-tiled 3-layer MLP (node_in / edge_in encoders)."""
    o_ref[...] = _mlp3(x_ref[...], w1[...], b1[...], w2[...], b2[...],
                       w3[...], b3[...])


def message_aggregate_kernel(node_ref, edge_ref, src_ref, tgt_ref, tgt_row_ref,
                             nd_ref, w1i, w1j, w1e, b1, w2, b2, w3, b3,
                             edge_out_ref, aggr_ref):
    """One edge tile of an IntConv layer: message MLP + scatter-sum accumulate.

    Grid is (core_split, edge_tiles_per_core); the scatter accumulator is a
    per-core partial revisited along axis 1 (arbitrary).
    """
    @pl.when(pl.program_id(1) == 0)
    def _():
        aggr_ref[...] = jnp.zeros_like(aggr_ref)

    n_pad = node_ref.shape[0]
    te = edge_ref.shape[0]
    node_g = node_ref[...]                       # pre-cast (bf16) node table
    gdt = node_g.dtype

    # Gather one-hots: one lane-iota per body, reused for both compares.
    lanes = lax.broadcasted_iota(jnp.int32, (te, n_pad), 1)
    oh_tgt = (lanes == tgt_ref[...]).astype(gdt)              # [TE, N]
    oh_src = (lanes == src_ref[...]).astype(gdt)              # [TE, N]
    x_i = _dot(oh_tgt, node_g)                                # node[tgt]  [TE, H]
    x_j = _dot(oh_src, node_g)                                # node[src]  [TE, H]

    # lin_edge(cat(x_i, x_j, edge)) via split-weight partial matmuls (no concat).
    cdt = w1i.dtype
    edge_f = edge_ref[...]
    h = _leaky(_dot(x_i.astype(cdt), w1i[...]) + _dot(x_j.astype(cdt), w1j[...])
               + _dot(edge_f.astype(cdt), w1e[...]) + b1[...])
    h = _leaky(_dot(h.astype(cdt), w2[...]) + b2[...])
    msg = _dot(h.astype(cdt), w3[...]) + b3[...]              # [TE, H], f32

    edge_out_ref[...] = edge_f + msg                          # residual edge update

    # Scatter-sum of (msg * node_dist) onto target nodes: the transposed one-hot
    # is built directly with a sublane-iota compare -> standard MXU contraction.
    subl = lax.broadcasted_iota(jnp.int32, (n_pad, te), 0)
    oh_t = (subl == tgt_row_ref[...]).astype(gdt)             # [N, TE]
    scaled = (msg * nd_ref[...]).astype(gdt)
    aggr_ref[...] += _dot(oh_t, scaled)                       # [N, H] f32 accum


def node_update_kernel(node_ref, aggr_ref, w1n, w1a, b1, w2, b2, w3, b3, o_ref):
    """One node tile: node + lin_node(cat(node, aggr)) via split-weight matmuls."""
    node = node_ref[...]
    cdt = w1n.dtype
    h = _leaky(_dot(node.astype(cdt), w1n[...])
               + _dot(aggr_ref[...].astype(cdt), w1a[...]) + b1[...])
    h = _leaky(_dot(h.astype(cdt), w2[...]) + b2[...])
    o_ref[...] = node + (_dot(h.astype(cdt), w3[...]) + b3[...])


def decoder_kernel(nodeT_ref, edgeT_ref, srcR_ref, tgtR_ref,
                   w1aT, w1bT, w1cT, b1T, w2T, b2T, w3T, b3T, o_ref):
    """One edge tile of edge_out(cat(node[i], edge, node[j])), fully transposed.

    Everything is computed with edges along lanes so every matmul is standard
    orientation and the [OUT_ROWS, TE] output store is lane-dense/unmasked.
    """
    n_pad = nodeT_ref.shape[1]
    te = edgeT_ref.shape[1]
    nodeT = nodeT_ref[...]                                    # [H, N] (bf16)
    gdt = nodeT.dtype

    subl = lax.broadcasted_iota(jnp.int32, (n_pad, te), 0)
    ohT_i = (subl == srcR_ref[...]).astype(gdt)               # [N, TE]  i = src
    ohT_j = (subl == tgtR_ref[...]).astype(gdt)               # [N, TE]  j = tgt
    xT_i = _dot(nodeT, ohT_i)                                 # node[i]^T [H, TE]
    xT_j = _dot(nodeT, ohT_j)                                 # node[j]^T [H, TE]

    cdt = w1aT.dtype
    h = _leaky(_dot(w1aT[...], xT_i.astype(cdt))
               + _dot(w1bT[...], edgeT_ref[...].astype(cdt))
               + _dot(w1cT[...], xT_j.astype(cdt)) + b1T[...])
    h = _leaky(_dot(w2T[...], h.astype(cdt)) + b2T[...])
    # Last layer kept in f32 (tiny) -> [OUT_ROWS, TE] lane-dense output.
    o_ref[...] = _dot(w3T[...], h) + b3T[...]


# ------------------------------ pallas_call glue ------------------------------

def _row(i):
    return (i, 0)


def _const(*_):
    return (0, 0)


def _mlp3_rows(x, w, *, tile, vmem_limit=None):
    w1, b1, w2, b2, w3, b3 = w
    rows, din = x.shape
    dout = w3.shape[1]
    flops = 2 * rows * (din * w1.shape[1] + w2.shape[0] * w2.shape[1]
                        + w3.shape[0] * dout)
    bytes_acc = 4 * (x.size + rows * dout) + sum(int(p.size) * 4 for p in w)
    return pl.pallas_call(
        mlp3_kernel,
        grid=(rows // tile,),
        in_specs=[pl.BlockSpec((tile, din), _row)]
        + [pl.BlockSpec(p.shape, _const) for p in w],
        out_specs=pl.BlockSpec((tile, dout), _row),
        out_shape=jax.ShapeDtypeStruct((rows, dout), jnp.float32),
        compiler_params=pltpu.CompilerParams(
            dimension_semantics=("parallel",), vmem_limit_bytes=vmem_limit),
        cost_estimate=pl.CostEstimate(flops=int(flops), transcendentals=0,
                                      bytes_accessed=int(bytes_acc)),
    )(x, *w)


def _message_aggregate(node_c, edge, src_col, tgt_col, tgt_row, nd_col, w,
                       *, tile_e, vmem_limit=None):
    n_pad, h = node_c.shape
    e_pad = edge.shape[0]
    half = e_pad // tile_e // 2        # edge tiles handled by each core split

    def etile(c, t):
        return (c * half + t, 0)

    edge_spec = pl.BlockSpec((tile_e, h), etile)
    col_spec = pl.BlockSpec((tile_e, 1), etile)
    row_spec = pl.BlockSpec((1, tile_e), lambda c, t: (0, c * half + t))

    flops = 2 * e_pad * n_pad * h * 3 + 2 * e_pad * h * h * 5
    bytes_acc = 4 * (3 * e_pad * h + 4 * e_pad + 4 * n_pad * h) \
        + sum(int(p.size) * 4 for p in w)
    return pl.pallas_call(
        message_aggregate_kernel,
        grid=(2, half),
        in_specs=[pl.BlockSpec((n_pad, h), _const),   # resident (bf16) node table
                  edge_spec, col_spec, col_spec, row_spec, col_spec]
        + [pl.BlockSpec(p.shape, _const) for p in w],
        out_specs=(edge_spec,
                   pl.BlockSpec((None, n_pad, h), lambda c, t: (c, 0, 0))),
        out_shape=(jax.ShapeDtypeStruct((e_pad, h), jnp.float32),
                   jax.ShapeDtypeStruct((2, n_pad, h), jnp.float32)),
        compiler_params=pltpu.CompilerParams(
            # axis 0 splits edge tiles across TensorCores (megacore on v7x);
            # axis 1 carries the per-core scatter accumulator -> sequential.
            dimension_semantics=("parallel", "arbitrary"),
            vmem_limit_bytes=vmem_limit),
        cost_estimate=pl.CostEstimate(flops=int(flops), transcendentals=0,
                                      bytes_accessed=int(bytes_acc)),
    )(node_c, edge, src_col, tgt_col, tgt_row, nd_col, *w)


def _node_update(node, aggr, w, *, tile_n, vmem_limit=None):
    n_pad, h = node.shape
    tile_spec = pl.BlockSpec((tile_n, h), _row)
    flops = 2 * n_pad * h * h * 4
    bytes_acc = 4 * (3 * n_pad * h) + sum(int(p.size) * 4 for p in w)
    return pl.pallas_call(
        node_update_kernel,
        grid=(n_pad // tile_n,),
        in_specs=[tile_spec, tile_spec]
        + [pl.BlockSpec(p.shape, _const) for p in w],
        out_specs=tile_spec,
        out_shape=jax.ShapeDtypeStruct((n_pad, h), jnp.float32),
        compiler_params=pltpu.CompilerParams(
            dimension_semantics=("parallel",), vmem_limit_bytes=vmem_limit),
        cost_estimate=pl.CostEstimate(flops=int(flops), transcendentals=0,
                                      bytes_accessed=int(bytes_acc)),
    )(node, aggr, *w)


def _decode_pairs(nodeT_c, edgeT, src_row, tgt_row, w, *, tile_e, vmem_limit=None):
    h, n_pad = nodeT_c.shape
    e_pad = edgeT.shape[1]
    erow = lambda i: (0, i)
    flops = 2 * e_pad * n_pad * h * 2 + 2 * e_pad * h * (4 * h + OUT_ROWS)
    bytes_acc = 4 * (e_pad * h + OUT_ROWS * e_pad + 2 * e_pad + n_pad * h) \
        + sum(int(p.size) * 4 for p in w)
    return pl.pallas_call(
        decoder_kernel,
        grid=(e_pad // tile_e,),
        in_specs=[pl.BlockSpec((h, n_pad), _const),   # resident (bf16) node^T
                  pl.BlockSpec((h, tile_e), erow),
                  pl.BlockSpec((1, tile_e), erow),
                  pl.BlockSpec((1, tile_e), erow)]
        + [pl.BlockSpec(p.shape, _const) for p in w],
        out_specs=pl.BlockSpec((OUT_ROWS, tile_e), erow),
        out_shape=jax.ShapeDtypeStruct((OUT_ROWS, e_pad), jnp.float32),
        compiler_params=pltpu.CompilerParams(
            dimension_semantics=("parallel",), vmem_limit_bytes=vmem_limit),
        cost_estimate=pl.CostEstimate(flops=int(flops), transcendentals=0,
                                      bytes_accessed=int(bytes_acc)),
    )(nodeT_c, edgeT, src_row, tgt_row, *w)


# ---------------------------- parameter construction ----------------------------

def _glorot(key, shape):
    fan_in, fan_out = shape[-2], shape[-1]
    lim = float(np.sqrt(6.0 / (fan_in + fan_out)))
    return jax.random.uniform(key, shape, jnp.float32, -lim, lim)


def _mlp_params(key, din, dh, dout):
    k = jax.random.split(key, 6)
    return (
        _glorot(k[0], (din, dh)), 0.01 * jax.random.normal(k[1], (1, dh), jnp.float32),
        _glorot(k[2], (dh, dh)),  0.01 * jax.random.normal(k[3], (1, dh), jnp.float32),
        _glorot(k[4], (dh, dout)), 0.01 * jax.random.normal(k[5], (1, dout), jnp.float32),
    )


def make_params(key):
    keys = jax.random.split(key, 6)
    embed = _glorot(keys[0], (NUM_TYPES, TYPE_DIM))
    node_in = _mlp_params(keys[1], NODE_DIM, HIDDEN, HIDDEN)
    edge_in = _mlp_params(keys[2], EDGE_DIM, HIDDEN, HIDDEN)
    mp_edge_list = [_mlp_params(k, 3 * HIDDEN, HIDDEN, HIDDEN)
                    for k in jax.random.split(keys[3], N_MP_LAYERS)]
    mp_node_list = [_mlp_params(k, 2 * HIDDEN, HIDDEN, HIDDEN)
                    for k in jax.random.split(keys[4], N_MP_LAYERS)]
    mp_edge = tuple(jnp.stack([p[i] for p in mp_edge_list]) for i in range(6))
    mp_node = tuple(jnp.stack([p[i] for p in mp_node_list]) for i in range(6))
    edge_out = _mlp_params(keys[5], 3 * HIDDEN, HIDDEN, OUT_DIM)
    return dict(embed=embed, node_in=node_in, edge_in=edge_in,
                mp_edge=mp_edge, mp_node=mp_node, edge_out=edge_out)


# --------------------------------- wrappers ---------------------------------

def _round_up(x, m):
    return (x + m - 1) // m * m


def _cdiv(a, b):
    return (a + b - 1) // b


def _cap_edge_tile(tile_e, n_pad, h, budget_bytes=40 * 1024 * 1024):
    """Cap tile_e so the per-step one-hot temporaries + edge buffers fit VMEM."""
    per_edge = 10 * n_pad + 64 * h      # ~3 bf16 one-hots + 1 int iota + edge bufs
    resident = 8 * n_pad * h            # bf16 node (x2 buffers) + f32 aggr partial
    avail = max(budget_bytes - resident, 2 * 1024 * 1024)
    cap = max(128, avail // per_edge // 128 * 128)
    return min(tile_e, cap)


def forward_dynamics_pallas(particle_types, vels_acts, fedge_attr, edge_index,
                            node_dist, params, *, tile_n=512, tile_e=1024,
                            compute_dtype=jnp.bfloat16, vmem_limit_bytes=None):
    n_nodes = particle_types.shape[0]
    n_edges = fedge_attr.shape[0]
    h = HIDDEN

    # --- tile selection -------------------------------------------------
    tile_n = min(_round_up(tile_n, 8), _round_up(n_nodes, 8))
    n_pad = _round_up(n_nodes, tile_n)
    tile_e = _round_up(tile_e, 128)                    # lane-dense row/col blocks
    tile_e = min(tile_e, _round_up(n_edges, 128))
    tile_e = _cap_edge_tile(tile_e, n_pad, h)
    half = max(1, _cdiv(_round_up(n_edges, tile_e) // tile_e, 2))
    e_pad = 2 * half * tile_e                          # even #tiles for the core split

    # --- plain-JAX glue: embedding lookup, concat, padding ----------------
    emb = jnp.take(params["embed"], particle_types, axis=0)
    node_x = jnp.concatenate([emb, vels_acts], axis=-1).astype(jnp.float32)
    node_x = jnp.pad(node_x, ((0, n_pad - n_nodes), (0, 0)))
    edge_attr = jnp.pad(fedge_attr.astype(jnp.float32),
                        ((0, e_pad - n_edges), (0, 0)))
    nd_col = jnp.pad(node_dist.astype(jnp.float32),
                     ((0, e_pad - n_edges), (0, 0)))
    src = edge_index[0].astype(jnp.int32)
    tgt = edge_index[1].astype(jnp.int32)
    pad_e = ((0, e_pad - n_edges), (0, 0))
    src_col = jnp.pad(src.reshape(n_edges, 1), pad_e, constant_values=-1)
    tgt_col = jnp.pad(tgt.reshape(n_edges, 1), pad_e, constant_values=-1)
    pad_r = ((0, 0), (0, e_pad - n_edges))
    src_row = jnp.pad(src.reshape(1, n_edges), pad_r, constant_values=-1)
    tgt_row = jnp.pad(tgt.reshape(1, n_edges), pad_r, constant_values=-1)

    def cast_w(ws):
        w1, b1, w2, b2, w3, b3 = ws
        return (w1.astype(compute_dtype), b1, w2.astype(compute_dtype), b2,
                w3.astype(compute_dtype), b3)

    # Encoders (row-tiled MLP kernels).
    node = _mlp3_rows(node_x, cast_w(params["node_in"]), tile=tile_n,
                      vmem_limit=vmem_limit_bytes)
    edge = _mlp3_rows(edge_attr, cast_w(params["edge_in"]), tile=tile_e,
                      vmem_limit=vmem_limit_bytes)

    # Message-passing layers: concatenated first-layer weights split into row
    # blocks (partial matmuls replace the concat); node cast to bf16 once/layer.
    me = params["mp_edge"]
    mn = params["mp_node"]
    for l in range(N_MP_LAYERS):
        w1 = me[0][l].astype(compute_dtype)
        we = (w1[:h], w1[h:2 * h], w1[2 * h:], me[1][l],
              me[2][l].astype(compute_dtype), me[3][l],
              me[4][l].astype(compute_dtype), me[5][l])
        node_c = node.astype(compute_dtype)            # hoisted gather-operand cast
        edge, aggr2 = _message_aggregate(node_c, edge, src_col, tgt_col, tgt_row,
                                         nd_col, we, tile_e=tile_e,
                                         vmem_limit=vmem_limit_bytes)
        aggr = aggr2[0] + aggr2[1]                     # join per-core partial sums

        w1n = mn[0][l].astype(compute_dtype)
        wn = (w1n[:h], w1n[h:], mn[1][l], mn[2][l].astype(compute_dtype),
              mn[3][l], mn[4][l].astype(compute_dtype), mn[5][l])
        node = _node_update(node, aggr, wn, tile_n=tile_n,
                            vmem_limit=vmem_limit_bytes)

    # Decoder (transposed layout, lane-dense [OUT_ROWS, E_pad] output).
    ow1, ob1, ow2, ob2, ow3, ob3 = params["edge_out"]
    w1aT = ow1[:h].T.astype(compute_dtype)
    w1bT = ow1[h:2 * h].T.astype(compute_dtype)
    w1cT = ow1[2 * h:].T.astype(compute_dtype)
    w2T = ow2.T.astype(compute_dtype)
    w3T = jnp.pad(ow3.T, ((0, OUT_ROWS - OUT_DIM), (0, 0)))       # f32 [8, H]
    b3T = jnp.pad(ob3.T, ((0, OUT_ROWS - OUT_DIM), (0, 0)))       # f32 [8, 1]
    wd = (w1aT, w1bT, w1cT, ob1.T, w2T, ob2.T, w3T, b3T)

    nodeT_c = node.astype(compute_dtype).T                        # [H, N_pad]
    edgeT = edge.T                                                # [H, E_pad]
    out_t = _decode_pairs(nodeT_c, edgeT, src_row, tgt_row, wd, tile_e=tile_e,
                          vmem_limit=vmem_limit_bytes)
    return out_t[:OUT_DIM, :n_edges].T


# ------------------------------- pure-JAX reference -------------------------------

def forward_dynamics_reference(particle_types, vels_acts, fedge_attr, edge_index,
                               node_dist, params):
    n_nodes = particle_types.shape[0]
    emb = jnp.take(params["embed"], particle_types, axis=0)
    node = _mlp3(jnp.concatenate([emb, vels_acts], -1), *params["node_in"],
                 dot=_ref_dot)
    edge = _mlp3(fedge_attr, *params["edge_in"], dot=_ref_dot)
    src, tgt = edge_index[0], edge_index[1]
    ew1, eb1, ew2, eb2, ew3, eb3 = params["mp_edge"]
    nw1, nb1, nw2, nb2, nw3, nb3 = params["mp_node"]
    for l in range(N_MP_LAYERS):
        x_i, x_j = node[tgt], node[src]
        msg = _mlp3(jnp.concatenate([x_i, x_j, edge], -1),
                    ew1[l], eb1[l], ew2[l], eb2[l], ew3[l], eb3[l], dot=_ref_dot)
        aggr = jax.ops.segment_sum(msg * node_dist, tgt, num_segments=n_nodes)
        node_upd = _mlp3(jnp.concatenate([node, aggr], -1),
                         nw1[l], nb1[l], nw2[l], nb2[l], nw3[l], nb3[l],
                         dot=_ref_dot)
        edge = edge + msg
        node = node + node_upd
    pair = jnp.concatenate([node[src], edge, node[tgt]], -1)
    return _mlp3(pair, *params["edge_out"], dot=_ref_dot)


if __name__ == "__main__":
    key = jax.random.PRNGKey(0)
    kp, kd = jax.random.split(key)
    params = make_params(kp)

    # Small shapes, but big enough that the edge grid has >1 tile per core so
    # the per-core scatter accumulation across "arbitrary" steps is exercised.
    N, E = 48, 300
    k1, k2, k3, k4, k5 = jax.random.split(kd, 5)
    particle_types = jax.random.randint(k1, (N,), 0, NUM_TYPES)             # data.x
    vels_acts = jax.random.normal(k2, (N, DIM * 2 * (WINDOW - 1)), jnp.float32)
    fedge_attr = jax.random.normal(k3, (E, EDGE_DIM), jnp.float32)
    edge_index = jax.random.randint(k4, (2, E), 0, N)
    node_dist = jax.random.uniform(k5, (E, 1), jnp.float32, 0.1, 1.0)

    ref = forward_dynamics_reference(particle_types, vels_acts, fedge_attr,
                                     edge_index, node_dist, params)

    # bf16 production-style path (small tiles to exercise multi-tile grids,
    # the 2-way core split and cross-tile accumulation).
    fwd = jax.jit(functools.partial(forward_dynamics_pallas,
                                    tile_n=8, tile_e=128,
                                    compute_dtype=jnp.bfloat16))
    out = jax.block_until_ready(fwd(particle_types, vels_acts, fedge_attr,
                                    edge_index, node_dist, params))
    assert out.shape == (E, OUT_DIM)
    np.testing.assert_allclose(np.asarray(out), np.asarray(ref),
                               rtol=1e-1, atol=1e-1)

    # f32 CI configuration: exact gather/scatter/MLP operands (tolerance kept
    # moderate to stay robust to XLA matmul precision modes on the reference).
    fwd32 = jax.jit(functools.partial(forward_dynamics_pallas,
                                      tile_n=8, tile_e=128,
                                      compute_dtype=jnp.float32))
    out32 = jax.block_until_ready(fwd32(particle_types, vels_acts, fedge_attr,
                                        edge_index, node_dist, params))
    np.testing.assert_allclose(np.asarray(out32), np.asarray(ref),
                               rtol=1e-2, atol=1e-2)
    print("KERNEL_OK")
</pallas_src>

<mosaic_0001>
module attributes {stable_mosaic.version = 11 : i64} {
  func.func @mlp3_kernel(%arg0: i32, %arg1: memref<128x3xf32, #tpu.memory_space<vmem>>, %arg2: memref<3x32xbf16, #tpu.memory_space<vmem>>, %arg3: memref<1x32xf32, #tpu.memory_space<vmem>>, %arg4: memref<32x32xbf16, #tpu.memory_space<vmem>>, %arg5: memref<1x32xf32, #tpu.memory_space<vmem>>, %arg6: memref<32x32xbf16, #tpu.memory_space<vmem>>, %arg7: memref<1x32xf32, #tpu.memory_space<vmem>>, %arg8: memref<128x32xf32, #tpu.memory_space<vmem>>) attributes {dimension_semantics = [#tpu.dimension_semantics<parallel>], iteration_bounds = array<i64: 4>, scalar_prefetch = 0 : i64, scratch_operands = 0 : i64, tpu.core_type = #tpu.core_type<tc>, window_params = [{transform_indices = @transform_0, window_bounds = array<i64: 128, 3>}, {pipeline_mode = #tpu.pipeline_mode<synchronous>, transform_indices = @transform_1, window_bounds = array<i64: 3, 32>}, {pipeline_mode = #tpu.pipeline_mode<synchronous>, transform_indices = @transform_2, window_bounds = array<i64: 1, 32>}, {pipeline_mode = #tpu.pipeline_mode<synchronous>, transform_indices = @transform_3, window_bounds = array<i64: 32, 32>}, {pipeline_mode = #tpu.pipeline_mode<synchronous>, transform_indices = @transform_4, window_bounds = array<i64: 1, 32>}, {pipeline_mode = #tpu.pipeline_mode<synchronous>, transform_indices = @transform_5, window_bounds = array<i64: 32, 32>}, {pipeline_mode = #tpu.pipeline_mode<synchronous>, transform_indices = @transform_6, window_bounds = array<i64: 1, 32>}, {transform_indices = @transform_7, window_bounds = array<i64: 128, 32>}]} {
    %c0 = arith.constant 0 : index
    %c0_0 = arith.constant 0 : index
    %0 = vector.load %arg1[%c0, %c0_0] : memref<128x3xf32, #tpu.memory_space<vmem>>, vector<128x3xf32>
    %c0_1 = arith.constant 0 : index
    %c0_2 = arith.constant 0 : index
    %1 = vector.load %arg2[%c0_1, %c0_2] : memref<3x32xbf16, #tpu.memory_space<vmem>>, vector<3x32xbf16>
    %c0_3 = arith.constant 0 : index
    %c0_4 = arith.constant 0 : index
    %2 = vector.load %arg3[%c0_3, %c0_4] : memref<1x32xf32, #tpu.memory_space<vmem>>, vector<1x32xf32>
    %c0_5 = arith.constant 0 : index
    %c0_6 = arith.constant 0 : index
    %3 = vector.load %arg4[%c0_5, %c0_6] : memref<32x32xbf16, #tpu.memory_space<vmem>>, vector<32x32xbf16>
    %c0_7 = arith.constant 0 : index
    %c0_8 = arith.constant 0 : index
    %4 = vector.load %arg5[%c0_7, %c0_8] : memref<1x32xf32, #tpu.memory_space<vmem>>, vector<1x32xf32>
    %c0_9 = arith.constant 0 : index
    %c0_10 = arith.constant 0 : index
    %5 = vector.load %arg6[%c0_9, %c0_10] : memref<32x32xbf16, #tpu.memory_space<vmem>>, vector<32x32xbf16>
    %c0_11 = arith.constant 0 : index
    %c0_12 = arith.constant 0 : index
    %6 = vector.load %arg7[%c0_11, %c0_12] : memref<1x32xf32, #tpu.memory_space<vmem>>, vector<1x32xf32>
    %7 = arith.truncf %0 : vector<128x3xf32> to vector<128x3xbf16>
    %cst = arith.constant dense<0.000000e+00> : vector<128x32xf32>
    %8 = tpu.matmul %7, %1, %cst {dimension_numbers = #tpu.dot_dimension_numbers<[1], [0], [0], [1], [0, 0, 1, 1], [], []>} : vector<128x3xbf16>, vector<3x32xbf16>, vector<128x32xf32> -> vector<128x32xf32>
    %9 = vector.broadcast %2 : vector<1x32xf32> to vector<128x32xf32>
    %10 = arith.addf %8, %9 : vector<128x32xf32>
    %cst_13 = arith.constant 0.000000e+00 : f32
    %11 = vector.broadcast %cst_13 : f32 to vector<128x32xf32>
    %12 = arith.cmpf ogt, %10, %11 : vector<128x32xf32>
    %cst_14 = arith.constant 0.00999999977 : f32
    %13 = vector.broadcast %cst_14 : f32 to vector<128x32xf32>
    %14 = arith.mulf %13, %10 : vector<128x32xf32>
    %15 = arith.select %12, %10, %14 : vector<128x32xi1>, vector<128x32xf32>
    %16 = arith.truncf %15 : vector<128x32xf32> to vector<128x32xbf16>
    %cst_15 = arith.constant dense<0.000000e+00> : vector<128x32xf32>
    %17 = tpu.matmul %16, %3, %cst_15 {dimension_numbers = #tpu.dot_dimension_numbers<[1], [0], [0], [1], [0, 0, 1, 1], [], []>} : vector<128x32xbf16>, vector<32x32xbf16>, vector<128x32xf32> -> vector<128x32xf32>
    %18 = vector.broadcast %4 : vector<1x32xf32> to vector<128x32xf32>
    %19 = arith.addf %17, %18 : vector<128x32xf32>
    %cst_16 = arith.constant 0.000000e+00 : f32
    %20 = vector.broadcast %cst_16 : f32 to vector<128x32xf32>
    %21 = arith.cmpf ogt, %19, %20 : vector<128x32xf32>
    %cst_17 = arith.constant 0.00999999977 : f32
    %22 = vector.broadcast %cst_17 : f32 to vector<128x32xf32>
    %23 = arith.mulf %22, %19 : vector<128x32xf32>
    %24 = arith.select %21, %19, %23 : vector<128x32xi1>, vector<128x32xf32>
    %25 = arith.truncf %24 : vector<128x32xf32> to vector<128x32xbf16>
    %cst_18 = arith.constant dense<0.000000e+00> : vector<128x32xf32>
    %26 = tpu.matmul %25, %5, %cst_18 {dimension_numbers = #tpu.dot_dimension_numbers<[1], [0], [0], [1], [0, 0, 1, 1], [], []>} : vector<128x32xbf16>, vector<32x32xbf16>, vector<128x32xf32> -> vector<128x32xf32>
    %27 = vector.broadcast %6 : vector<1x32xf32> to vector<128x32xf32>
    %28 = arith.addf %26, %27 : vector<128x32xf32>
    %c0_19 = arith.constant 0 : index
    %c0_20 = arith.constant 0 : index
    %29 = vector.load %arg8[%c0_19, %c0_20] : memref<128x32xf32, #tpu.memory_space<vmem>>, vector<128x32xf32>
    tpu.vector_store %arg8[%c0_19, %c0_20], %28 {strides = array<i32>} : memref<128x32xf32, #tpu.memory_space<vmem>>, vector<128x32xf32>,
    return
  }
  func.func @transform_0(%arg0: i32) -> (i32, i32) {
    %c0_i32 = arith.constant 0 : i32
    %c0_i32_0 = arith.constant 0 : i32
    return %arg0, %c0_i32 : i32, i32
  }
  func.func @transform_1(%arg0: i32) -> (i32, i32) {
    %c0_i32 = arith.constant 0 : i32
    %c0_i32_0 = arith.constant 0 : i32
    %c0_i32_1 = arith.constant 0 : i32
    return %c0_i32, %c0_i32_0 : i32, i32
  }
  func.func @transform_2(%arg0: i32) -> (i32, i32) {
    %c0_i32 = arith.constant 0 : i32
    %c0_i32_0 = arith.constant 0 : i32
    %c0_i32_1 = arith.constant 0 : i32
    return %c0_i32, %c0_i32_0 : i32, i32
  }
  func.func @transform_3(%arg0: i32) -> (i32, i32) {
    %c0_i32 = arith.constant 0 : i32
    %c0_i32_0 = arith.constant 0 : i32
    %c0_i32_1 = arith.constant 0 : i32
    return %c0_i32, %c0_i32_0 : i32, i32
  }
  func.func @transform_4(%arg0: i32) -> (i32, i32) {
    %c0_i32 = arith.constant 0 : i32
    %c0_i32_0 = arith.constant 0 : i32
    %c0_i32_1 = arith.constant 0 : i32
    return %c0_i32, %c0_i32_0 : i32, i32
  }
  func.func @transform_5(%arg0: i32) -> (i32, i32) {
    %c0_i32 = arith.constant 0 : i32
    %c0_i32_0 = arith.constant 0 : i32
    %c0_i32_1 = arith.constant 0 : i32
    return %c0_i32, %c0_i32_0 : i32, i32
  }
  func.func @transform_6(%arg0: i32) -> (i32, i32) {
    %c0_i32 = arith.constant 0 : i32
    %c0_i32_0 = arith.constant 0 : i32
    %c0_i32_1 = arith.constant 0 : i32
    return %c0_i32, %c0_i32_0 : i32, i32
  }
  func.func @transform_7(%arg0: i32) -> (i32, i32) {
    %c0_i32 = arith.constant 0 : i32
    %c0_i32_0 = arith.constant 0 : i32
    return %arg0, %c0_i32 : i32, i32
  }
}

module attributes {stable_mosaic.version = 11 : i64} {
  func.func @mlp3_kernel(%arg0: i32, %arg1: memref<8x11xf32, #tpu.memory_space<vmem>>, %arg2: memref<11x32xbf16, #tpu.memory_space<vmem>>, %arg3: memref<1x32xf32, #tpu.memory_space<vmem>>, %arg4: memref<32x32xbf16, #tpu.memory_space<vmem>>, %arg5: memref<1x32xf32, #tpu.memory_space<vmem>>, %arg6: memref<32x32xbf16, #tpu.memory_space<vmem>>, %arg7: memref<1x32xf32, #tpu.memory_space<vmem>>, %arg8: memref<8x32xf32, #tpu.memory_space<vmem>>) attributes {dimension_semantics = [#tpu.dimension_semantics<parallel>], iteration_bounds = array<i64: 6>, scalar_prefetch = 0 : i64, scratch_operands = 0 : i64, tpu.core_type = #tpu.core_type<tc>, window_params = [{transform_indices = @transform_0, window_bounds = array<i64: 8, 11>}, {pipeline_mode = #tpu.pipeline_mode<synchronous>, transform_indices = @transform_1, window_bounds = array<i64: 11, 32>}, {pipeline_mode = #tpu.pipeline_mode<synchronous>, transform_indices = @transform_2, window_bounds = array<i64: 1, 32>}, {pipeline_mode = #tpu.pipeline_mode<synchronous>, transform_indices = @transform_3, window_bounds = array<i64: 32, 32>}, {pipeline_mode = #tpu.pipeline_mode<synchronous>, transform_indices = @transform_4, window_bounds = array<i64: 1, 32>}, {pipeline_mode = #tpu.pipeline_mode<synchronous>, transform_indices = @transform_5, window_bounds = array<i64: 32, 32>}, {pipeline_mode = #tpu.pipeline_mode<synchronous>, transform_indices = @transform_6, window_bounds = array<i64: 1, 32>}, {transform_indices = @transform_7, window_bounds = array<i64: 8, 32>}]} {
    %c0 = arith.constant 0 : index
    %c0_0 = arith.constant 0 : index
    %0 = vector.load %arg1[%c0, %c0_0] : memref<8x11xf32, #tpu.memory_space<vmem>>, vector<8x11xf32>
    %c0_1 = arith.constant 0 : index
    %c0_2 = arith.constant 0 : index
    %1 = vector.load %arg2[%c0_1, %c0_2] : memref<11x32xbf16, #tpu.memory_space<vmem>>, vector<11x32xbf16>
    %c0_3 = arith.constant 0 : index
    %c0_4 = arith.constant 0 : index
    %2 = vector.load %arg3[%c0_3, %c0_4] : memref<1x32xf32, #tpu.memory_space<vmem>>, vector<1x32xf32>
    %c0_5 = arith.constant 0 : index
    %c0_6 = arith.constant 0 : index
    %3 = vector.load %arg4[%c0_5, %c0_6] : memref<32x32xbf16, #tpu.memory_space<vmem>>, vector<32x32xbf16>
    %c0_7 = arith.constant 0 : index
    %c0_8 = arith.constant 0 : index
    %4 = vector.load %arg5[%c0_7, %c0_8] : memref<1x32xf32, #tpu.memory_space<vmem>>, vector<1x32xf32>
    %c0_9 = arith.constant 0 : index
    %c0_10 = arith.constant 0 : index
    %5 = vector.load %arg6[%c0_9, %c0_10] : memref<32x32xbf16, #tpu.memory_space<vmem>>, vector<32x32xbf16>
    %c0_11 = arith.constant 0 : index
    %c0_12 = arith.constant 0 : index
    %6 = vector.load %arg7[%c0_11, %c0_12] : memref<1x32xf32, #tpu.memory_space<vmem>>, vector<1x32xf32>
    %7 = arith.truncf %0 : vector<8x11xf32> to vector<8x11xbf16>
    %cst = arith.constant dense<0.000000e+00> : vector<8x32xf32>
    %8 = tpu.matmul %7, %1, %cst {dimension_numbers = #tpu.dot_dimension_numbers<[1], [0], [0], [1], [0, 0, 1, 1], [], []>} : vector<8x11xbf16>, vector<11x32xbf16>, vector<8x32xf32> -> vector<8x32xf32>
    %9 = vector.broadcast %2 : vector<1x32xf32> to vector<8x32xf32>
    %10 = arith.addf %8, %9 : vector<8x32xf32>
    %cst_13 = arith.constant 0.000000e+00 : f32
    %11 = vector.broadcast %cst_13 : f32 to vector<8x32xf32>
    %12 = arith.cmpf ogt, %10, %11 : vector<8x32xf32>
    %cst_14 = arith.constant 0.00999999977 : f32
    %13 = vector.broadcast %cst_14 : f32 to vector<8x32xf32>
    %14 = arith.mulf %13, %10 : vector<8x32xf32>
    %15 = arith.select %12, %10, %14 : vector<8x32xi1>, vector<8x32xf32>
    %16 = arith.truncf %15 : vector<8x32xf32> to vector<8x32xbf16>
    %cst_15 = arith.constant dense<0.000000e+00> : vector<8x32xf32>
    %17 = tpu.matmul %16, %3, %cst_15 {dimension_numbers = #tpu.dot_dimension_numbers<[1], [0], [0], [1], [0, 0, 1, 1], [], []>} : vector<8x32xbf16>, vector<32x32xbf16>, vector<8x32xf32> -> vector<8x32xf32>
    %18 = vector.broadcast %4 : vector<1x32xf32> to vector<8x32xf32>
    %19 = arith.addf %17, %18 : vector<8x32xf32>
    %cst_16 = arith.constant 0.000000e+00 : f32
    %20 = vector.broadcast %cst_16 : f32 to vector<8x32xf32>
    %21 = arith.cmpf ogt, %19, %20 : vector<8x32xf32>
    %cst_17 = arith.constant 0.00999999977 : f32
    %22 = vector.broadcast %cst_17 : f32 to vector<8x32xf32>
    %23 = arith.mulf %22, %19 : vector<8x32xf32>
    %24 = arith.select %21, %19, %23 : vector<8x32xi1>, vector<8x32xf32>
    %25 = arith.truncf %24 : vector<8x32xf32> to vector<8x32xbf16>
    %cst_18 = arith.constant dense<0.000000e+00> : vector<8x32xf32>
    %26 = tpu.matmul %25, %5, %cst_18 {dimension_numbers = #tpu.dot_dimension_numbers<[1], [0], [0], [1], [0, 0, 1, 1], [], []>} : vector<8x32xbf16>, vector<32x32xbf16>, vector<8x32xf32> -> vector<8x32xf32>
    %27 = vector.broadcast %6 : vector<1x32xf32> to vector<8x32xf32>
    %28 = arith.addf %26, %27 : vector<8x32xf32>
    %c0_19 = arith.constant 0 : index
    %c0_20 = arith.constant 0 : index
    %29 = vector.load %arg8[%c0_19, %c0_20] : memref<8x32xf32, #tpu.memory_space<vmem>>, vector<8x32xf32>
    tpu.vector_store %arg8[%c0_19, %c0_20], %28 {strides = array<i32>} : memref<8x32xf32, #tpu.memory_space<vmem>>, vector<8x32xf32>,
    return
  }
  func.func @transform_0(%arg0: i32) -> (i32, i32) {
    %c0_i32 = arith.constant 0 : i32
    %c0_i32_0 = arith.constant 0 : i32
    return %arg0, %c0_i32 : i32, i32
  }
  func.func @transform_1(%arg0: i32) -> (i32, i32) {
    %c0_i32 = arith.constant 0 : i32
    %c0_i32_0 = arith.constant 0 : i32
    %c0_i32_1 = arith.constant 0 : i32
    return %c0_i32, %c0_i32_0 : i32, i32
  }
  func.func @transform_2(%arg0: i32) -> (i32, i32) {
    %c0_i32 = arith.constant 0 : i32
    %c0_i32_0 = arith.constant 0 : i32
    %c0_i32_1 = arith.constant 0 : i32
    return %c0_i32, %c0_i32_0 : i32, i32
  }
  func.func @transform_3(%arg0: i32) -> (i32, i32) {
    %c0_i32 = arith.constant 0 : i32
    %c0_i32_0 = arith.constant 0 : i32
    %c0_i32_1 = arith.constant 0 : i32
    return %c0_i32, %c0_i32_0 : i32, i32
  }
  func.func @transform_4(%arg0: i32) -> (i32, i32) {
    %c0_i32 = arith.constant 0 : i32
    %c0_i32_0 = arith.constant 0 : i32
    %c0_i32_1 = arith.constant 0 : i32
    return %c0_i32, %c0_i32_0 : i32, i32
  }
  func.func @transform_5(%arg0: i32) -> (i32, i32) {
    %c0_i32 = arith.constant 0 : i32
    %c0_i32_0 = arith.constant 0 : i32
    %c0_i32_1 = arith.constant 0 : i32
    return %c0_i32, %c0_i32_0 : i32, i32
  }
  func.func @transform_6(%arg0: i32) -> (i32, i32) {
    %c0_i32 = arith.constant 0 : i32
    %c0_i32_0 = arith.constant 0 : i32
    %c0_i32_1 = arith.constant 0 : i32
    return %c0_i32, %c0_i32_0 : i32, i32
  }
  func.func @transform_7(%arg0: i32) -> (i32, i32) {
    %c0_i32 = arith.constant 0 : i32
    %c0_i32_0 = arith.constant 0 : i32
    return %arg0, %c0_i32 : i32, i32
  }
}

module attributes {stable_mosaic.version = 11 : i64} {
  func.func @message_aggregate_kernel(%arg0: i32, %arg1: i32, %arg2: memref<48x32xbf16, #tpu.memory_space<vmem>>, %arg3: memref<128x32xf32, #tpu.memory_space<vmem>>, %arg4: memref<128x1xi32, #tpu.memory_space<vmem>>, %arg5: memref<128x1xi32, #tpu.memory_space<vmem>>, %arg6: memref<1x128xi32, #tpu.memory_space<vmem>>, %arg7: memref<128x1xf32, #tpu.memory_space<vmem>>, %arg8: memref<32x32xbf16, #tpu.memory_space<vmem>>, %arg9: memref<32x32xbf16, #tpu.memory_space<vmem>>, %arg10: memref<32x32xbf16, #tpu.memory_space<vmem>>, %arg11: memref<1x32xf32, #tpu.memory_space<vmem>>, %arg12: memref<32x32xbf16, #tpu.memory_space<vmem>>, %arg13: memref<1x32xf32, #tpu.memory_space<vmem>>, %arg14: memref<32x32xbf16, #tpu.memory_space<vmem>>, %arg15: memref<1x32xf32, #tpu.memory_space<vmem>>, %arg16: memref<128x32xf32, #tpu.memory_space<vmem>>, %arg17: memref<1x48x32xf32, #tpu.memory_space<vmem>>) attributes {dimension_semantics = [#tpu.dimension_semantics<parallel>, #tpu.dimension_semantics<arbitrary>], iteration_bounds = array<i64: 2, 2>, scalar_prefetch = 0 : i64, scratch_operands = 0 : i64, tpu.core_type = #tpu.core_type<tc>, window_params = [{pipeline_mode = #tpu.pipeline_mode<synchronous>, transform_indices = @transform_0, window_bounds = array<i64: 48, 32>}, {transform_indices = @transform_1, window_bounds = array<i64: 128, 32>}, {transform_indices = @transform_2, window_bounds = array<i64: 128, 1>}, {transform_indices = @transform_3, window_bounds = array<i64: 128, 1>}, {transform_indices = @transform_4, window_bounds = array<i64: 1, 128>}, {transform_indices = @transform_5, window_bounds = array<i64: 128, 1>}, {pipeline_mode = #tpu.pipeline_mode<synchronous>, transform_indices = @transform_6, window_bounds = array<i64: 32, 32>}, {pipeline_mode = #tpu.pipeline_mode<synchronous>, transform_indices = @transform_7, window_bounds = array<i64: 32, 32>}, {pipeline_mode = #tpu.pipeline_mode<synchronous>, transform_indices = @transform_8, window_bounds = array<i64: 32, 32>}, {pipeline_mode = #tpu.pipeline_mode<synchronous>, transform_indices = @transform_9, window_bounds = array<i64: 1, 32>}, {pipeline_mode = #tpu.pipeline_mode<synchronous>, transform_indices = @transform_10, window_bounds = array<i64: 32, 32>}, {pipeline_mode = #tpu.pipeline_mode<synchronous>, transform_indices = @transform_11, window_bounds = array<i64: 1, 32>}, {pipeline_mode = #tpu.pipeline_mode<synchronous>, transform_indices = @transform_12, window_bounds = array<i64: 32, 32>}, {pipeline_mode = #tpu.pipeline_mode<synchronous>, transform_indices = @transform_13, window_bounds = array<i64: 1, 32>}, {transform_indices = @transform_14, window_bounds = array<i64: 128, 32>}, {transform_indices = @transform_15, window_bounds = array<i64: 1, 48, 32>}]} {
    %c0_i32 = arith.constant 0 : i32
    %0 = arith.cmpi eq, %arg1, %c0_i32 : i32
    %1 = arith.extui %0 : i1 to i32
    %c0_i32_0 = arith.constant 0 : i32
    %2 = arith.cmpi ne, %1, %c0_i32_0 : i32
    scf.if %2 {
      %cst_47 = arith.constant 0.000000e+00 : f32
      %76 = vector.broadcast %cst_47 : f32 to vector<48x32xf32>
      %c0_48 = arith.constant 0 : index
      %c0_49 = arith.constant 0 : index
      %c0_50 = arith.constant 0 : index
      %77 = vector.load %arg17[%c0_48, %c0_49, %c0_50] : memref<1x48x32xf32, #tpu.memory_space<vmem>>, vector<1x48x32xf32>
      %78 = vector.shape_cast %77 : vector<1x48x32xf32> to vector<48x32xf32>
      %79 = vector.shape_cast %76 : vector<48x32xf32> to vector<1x48x32xf32>
      tpu.vector_store %arg17[%c0_48, %c0_49, %c0_50], %79 {strides = array<i32>} : memref<1x48x32xf32, #tpu.memory_space<vmem>>, vector<1x48x32xf32>,
    } else {
    }
    %c0 = arith.constant 0 : index
    %c0_1 = arith.constant 0 : index
    %3 = vector.load %arg2[%c0, %c0_1] : memref<48x32xbf16, #tpu.memory_space<vmem>>, vector<48x32xbf16>
    %4 = tpu.iota {dimensions = array<i32: 1>} : vector<128x48xi32>
    %c0_2 = arith.constant 0 : index
    %c0_3 = arith.constant 0 : index
    %5 = vector.load %arg5[%c0_2, %c0_3] : memref<128x1xi32, #tpu.memory_space<vmem>>, vector<128x1xi32>
    %6 = vector.broadcast %5 : vector<128x1xi32> to vector<128x48xi32>
    %7 = arith.cmpi eq, %4, %6 : vector<128x48xi32>
    %8 = arith.extui %7 : vector<128x48xi1> to vector<128x48xi32>
    %9 = arith.sitofp %8 : vector<128x48xi32> to vector<128x48xf32>
    %10 = arith.truncf %9 : vector<128x48xf32> to vector<128x48xbf16>
    %c0_4 = arith.constant 0 : index
    %c0_5 = arith.constant 0 : index
    %11 = vector.load %arg4[%c0_4, %c0_5] : memref<128x1xi32, #tpu.memory_space<vmem>>, vector<128x1xi32>
    %12 = vector.broadcast %11 : vector<128x1xi32> to vector<128x48xi32>
    %13 = arith.cmpi eq, %4, %12 : vector<128x48xi32>
    %14 = arith.extui %13 : vector<128x48xi1> to vector<128x48xi32>
    %15 = arith.sitofp %14 : vector<128x48xi32> to vector<128x48xf32>
    %16 = arith.truncf %15 : vector<128x48xf32> to vector<128x48xbf16>
    %cst = arith.constant dense<0.000000e+00> : vector<128x32xf32>
    %17 = tpu.matmul %10, %3, %cst {dimension_numbers = #tpu.dot_dimension_numbers<[1], [0], [0], [1], [0, 0, 1, 1], [], []>} : vector<128x48xbf16>, vector<48x32xbf16>, vector<128x32xf32> -> vector<128x32xf32>
    %cst_6 = arith.constant dense<0.000000e+00> : vector<128x32xf32>
    %18 = tpu.matmul %16, %3, %cst_6 {dimension_numbers = #tpu.dot_dimension_numbers<[1], [0], [0], [1], [0, 0, 1, 1], [], []>} : vector<128x48xbf16>, vector<48x32xbf16>, vector<128x32xf32> -> vector<128x32xf32>
    %c0_7 = arith.constant 0 : index
    %c0_8 = arith.constant 0 : index
    %19 = vector.load %arg3[%c0_7, %c0_8] : memref<128x32xf32, #tpu.memory_space<vmem>>, vector<128x32xf32>
    %20 = arith.truncf %17 : vector<128x32xf32> to vector<128x32xbf16>
    %c0_9 = arith.constant 0 : index
    %c0_10 = arith.constant 0 : index
    %21 = vector.load %arg8[%c0_9, %c0_10] : memref<32x32xbf16, #tpu.memory_space<vmem>>, vector<32x32xbf16>
    %cst_11 = arith.constant dense<0.000000e+00> : vector<128x32xf32>
    %22 = tpu.matmul %20, %21, %cst_11 {dimension_numbers = #tpu.dot_dimension_numbers<[1], [0], [0], [1], [0, 0, 1, 1], [], []>} : vector<128x32xbf16>, vector<32x32xbf16>, vector<128x32xf32> -> vector<128x32xf32>
    %23 = arith.truncf %18 : vector<128x32xf32> to vector<128x32xbf16>
    %c0_12 = arith.constant 0 : index
    %c0_13 = arith.constant 0 : index
    %24 = vector.load %arg9[%c0_12, %c0_13] : memref<32x32xbf16, #tpu.memory_space<vmem>>, vector<32x32xbf16>
    %cst_14 = arith.constant dense<0.000000e+00> : vector<128x32xf32>
    %25 = tpu.matmul %23, %24, %cst_14 {dimension_numbers = #tpu.dot_dimension_numbers<[1], [0], [0], [1], [0, 0, 1, 1], [], []>} : vector<128x32xbf16>, vector<32x32xbf16>, vector<128x32xf32> -> vector<128x32xf32>
    %26 = arith.addf %22, %25 : vector<128x32xf32>
    %27 = arith.truncf %19 : vector<128x32xf32> to vector<128x32xbf16>
    %c0_15 = arith.constant 0 : index
    %c0_16 = arith.constant 0 : index
    %28 = vector.load %arg10[%c0_15, %c0_16] : memref<32x32xbf16, #tpu.memory_space<vmem>>, vector<32x32xbf16>
    %cst_17 = arith.constant dense<0.000000e+00> : vector<128x32xf32>
    %29 = tpu.matmul %27, %28, %cst_17 {dimension_numbers = #tpu.dot_dimension_numbers<[1], [0], [0], [1], [0, 0, 1, 1], [], []>} : vector<128x32xbf16>, vector<32x32xbf16>, vector<128x32xf32> -> vector<128x32xf32>
    %30 = arith.addf %26, %29 : vector<128x32xf32>
    %c0_18 = arith.constant 0 : index
    %c0_19 = arith.constant 0 : index
    %31 = vector.load %arg11[%c0_18, %c0_19] : memref<1x32xf32, #tpu.memory_space<vmem>>, vector<1x32xf32>
    %32 = vector.broadcast %31 : vector<1x32xf32> to vector<128x32xf32>
    %33 = arith.addf %30, %32 : vector<128x32xf32>
    %cst_20 = arith.constant 0.000000e+00 : f32
    %34 = vector.broadcast %cst_20 : f32 to vector<128x32xf32>
    %35 = arith.cmpf ogt, %33, %34 : vector<128x32xf32>
    %cst_21 = arith.constant 0.00999999977 : f32
    %36 = vector.broadcast %cst_21 : f32 to vector<128x32xf32>
    %37 = arith.mulf %36, %33 : vector<128x32xf32>
    %38 = arith.select %35, %33, %37 : vector<128x32xi1>, vector<128x32xf32>
    %39 = arith.truncf %38 : vector<128x32xf32> to vector<128x32xbf16>
    %c0_22 = arith.constant 0 : index
    %c0_23 = arith.constant 0 : index
    %40 = vector.load %arg12[%c0_22, %c0_23] : memref<32x32xbf16, #tpu.memory_space<vmem>>, vector<32x32xbf16>
    %cst_24 = arith.constant dense<0.000000e+00> : vector<128x32xf32>
    %41 = tpu.matmul %39, %40, %cst_24 {dimension_numbers = #tpu.dot_dimension_numbers<[1], [0], [0], [1], [0, 0, 1, 1], [], []>} : vector<128x32xbf16>, vector<32x32xbf16>, vector<128x32xf32> -> vector<128x32xf32>
    %c0_25 = arith.constant 0 : index
    %c0_26 = arith.constant 0 : index
    %42 = vector.load %arg13[%c0_25, %c0_26] : memref<1x32xf32, #tpu.memory_space<vmem>>, vector<1x32xf32>
    %43 = vector.broadcast %42 : vector<1x32xf32> to vector<128x32xf32>
    %44 = arith.addf %41, %43 : vector<128x32xf32>
    %cst_27 = arith.constant 0.000000e+00 : f32
    %45 = vector.broadcast %cst_27 : f32 to vector<128x32xf32>
    %46 = arith.cmpf ogt, %44, %45 : vector<128x32xf32>
    %cst_28 = arith.constant 0.00999999977 : f32
    %47 = vector.broadcast %cst_28 : f32 to vector<128x32xf32>
    %48 = arith.mulf %47, %44 : vector<128x32xf32>
    %49 = arith.select %46, %44, %48 : vector<128x32xi1>, vector<128x32xf32>
    %50 = arith.truncf %49 : vector<128x32xf32> to vector<128x32xbf16>
    %c0_29 = arith.constant 0 : index
    %c0_30 = arith.constant 0 : index
    %51 = vector.load %arg14[%c0_29, %c0_30] : memref<32x32xbf16, #tpu.memory_space<vmem>>, vector<32x32xbf16>
    %cst_31 = arith.constant dense<0.000000e+00> : vector<128x32xf32>
    %52 = tpu.matmul %50, %51, %cst_31 {dimension_numbers = #tpu.dot_dimension_numbers<[1], [0], [0], [1], [0, 0, 1, 1], [], []>} : vector<128x32xbf16>, vector<32x32xbf16>, vector<128x32xf32> -> vector<128x32xf32>
    %c0_32 = arith.constant 0 : index
    %c0_33 = arith.constant 0 : index
    %53 = vector.load %arg15[%c0_32, %c0_33] : memref<1x32xf32, #tpu.memory_space<vmem>>, vector<1x32xf32>
    %54 = vector.broadcast %53 : vector<1x32xf32> to vector<128x32xf32>
    %55 = arith.addf %52, %54 : vector<128x32xf32>
    %56 = arith.addf %19, %55 : vector<128x32xf32>
    %c0_34 = arith.constant 0 : index
    %c0_35 = arith.constant 0 : index
    %57 = vector.load %arg16[%c0_34, %c0_35] : memref<128x32xf32, #tpu.memory_space<vmem>>, vector<128x32xf32>
    tpu.vector_store %arg16[%c0_34, %c0_35], %56 {strides = array<i32>} : memref<128x32xf32, #tpu.memory_space<vmem>>, vector<128x32xf32>,
    %58 = tpu.iota {dimensions = array<i32: 0>} : vector<48x128xi32>
    %c0_36 = arith.constant 0 : index
    %c0_37 = arith.constant 0 : index
    %59 = vector.load %arg6[%c0_36, %c0_37] : memref<1x128xi32, #tpu.memory_space<vmem>>, vector<1x128xi32>
    %60 = vector.broadcast %59 : vector<1x128xi32> to vector<48x128xi32>
    %61 = arith.cmpi eq, %58, %60 : vector<48x128xi32>
    %62 = arith.extui %61 : vector<48x128xi1> to vector<48x128xi32>
    %63 = arith.sitofp %62 : vector<48x128xi32> to vector<48x128xf32>
    %64 = arith.truncf %63 : vector<48x128xf32> to vector<48x128xbf16>
    %c0_38 = arith.constant 0 : index
    %c0_39 = arith.constant 0 : index
    %65 = vector.load %arg7[%c0_38, %c0_39] : memref<128x1xf32, #tpu.memory_space<vmem>>, vector<128x1xf32>
    %66 = vector.broadcast %65 : vector<128x1xf32> to vector<128x32xf32>
    %67 = arith.mulf %55, %66 : vector<128x32xf32>
    %68 = arith.truncf %67 : vector<128x32xf32> to vector<128x32xbf16>
    %c0_40 = arith.constant 0 : index
    %c0_41 = arith.constant 0 : index
    %c0_42 = arith.constant 0 : index
    %69 = vector.load %arg17[%c0_40, %c0_41, %c0_42] : memref<1x48x32xf32, #tpu.memory_space<vmem>>, vector<1x48x32xf32>
    %70 = vector.shape_cast %69 : vector<1x48x32xf32> to vector<48x32xf32>
    %cst_43 = arith.constant dense<0.000000e+00> : vector<48x32xf32>
    %71 = tpu.matmul %64, %68, %cst_43 {dimension_numbers = #tpu.dot_dimension_numbers<[1], [0], [0], [1], [0, 0, 1, 1], [], []>} : vector<48x128xbf16>, vector<128x32xbf16>, vector<48x32xf32> -> vector<48x32xf32>
    %72 = arith.addf %70, %71 : vector<48x32xf32>
    %c0_44 = arith.constant 0 : index
    %c0_45 = arith.constant 0 : index
    %c0_46 = arith.constant 0 : index
    %73 = vector.load %arg17[%c0_44, %c0_45, %c0_46] : memref<1x48x32xf32, #tpu.memory_space<vmem>>, vector<1x48x32xf32>
    %74 = vector.shape_cast %73 : vector<1x48x32xf32> to vector<48x32xf32>
    %75 = vector.shape_cast %72 : vector<48x32xf32> to vector<1x48x32xf32>
    tpu.vector_store %arg17[%c0_44, %c0_45, %c0_46], %75 {strides = array<i32>} : memref<1x48x32xf32, #tpu.memory_space<vmem>>, vector<1x48x32xf32>,
    return
  }
  func.func @transform_0(%arg0: i32, %arg1: i32) -> (i32, i32) {
    %c0_i32 = arith.constant 0 : i32
    %c0_i32_0 = arith.constant 0 : i32
    %c0_i32_1 = arith.constant 0 : i32
    return %c0_i32, %c0_i32_0 : i32, i32
  }
  func.func @transform_1(%arg0: i32, %arg1: i32) -> (i32, i32) {
    %c2_i32 = arith.constant 2 : i32
    %0 = arith.muli %arg0, %c2_i32 : i32
    %1 = arith.addi %0, %arg1 : i32
    %c0_i32 = arith.constant 0 : i32
    %c0_i32_0 = arith.constant 0 : i32
    return %1, %c0_i32 : i32, i32
  }
  func.func @transform_2(%arg0: i32, %arg1: i32) -> (i32, i32) {
    %c2_i32 = arith.constant 2 : i32
    %0 = arith.muli %arg0, %c2_i32 : i32
    %1 = arith.addi %0, %arg1 : i32
    %c0_i32 = arith.constant 0 : i32
    %c0_i32_0 = arith.constant 0 : i32
    return %1, %c0_i32 : i32, i32
  }
  func.func @transform_3(%arg0: i32, %arg1: i32) -> (i32, i32) {
    %c2_i32 = arith.constant 2 : i32
    %0 = arith.muli %arg0, %c2_i32 : i32
    %1 = arith.addi %0, %arg1 : i32
    %c0_i32 = arith.constant 0 : i32
    %c0_i32_0 = arith.constant 0 : i32
    return %1, %c0_i32 : i32, i32
  }
  func.func @transform_4(%arg0: i32, %arg1: i32) -> (i32, i32) {
    %c2_i32 = arith.constant 2 : i32
    %0 = arith.muli %arg0, %c2_i32 : i32
    %1 = arith.addi %0, %arg1 : i32
    %c0_i32 = arith.constant 0 : i32
    %c0_i32_0 = arith.constant 0 : i32
    return %c0_i32, %1 : i32, i32
  }
  func.func @transform_5(%arg0: i32, %arg1: i32) -> (i32, i32) {
    %c2_i32 = arith.constant 2 : i32
    %0 = arith.muli %arg0, %c2_i32 : i32
    %1 = arith.addi %0, %arg1 : i32
    %c0_i32 = arith.constant 0 : i32
    %c0_i32_0 = arith.constant 0 : i32
    return %1, %c0_i32 : i32, i32
  }
  func.func @transform_6(%arg0: i32, %arg1: i32) -> (i32, i32) {
    %c0_i32 = arith.constant 0 : i32
    %c0_i32_0 = arith.constant 0 : i32
    %c0_i32_1 = arith.constant 0 : i32
    return %c0_i32, %c0_i32_0 : i32, i32
  }
  func.func @transform_7(%arg0: i32, %arg1: i32) -> (i32, i32) {
    %c0_i32 = arith.constant 0 : i32
    %c0_i32_0 = arith.constant 0 : i32
    %c0_i32_1 = arith.constant 0 : i32
    return %c0_i32, %c0_i32_0 : i32, i32
  }
  func.func @transform_8(%arg0: i32, %arg1: i32) -> (i32, i32) {
    %c0_i32 = arith.constant 0 : i32
    %c0_i32_0 = arith.constant 0 : i32
    %c0_i32_1 = arith.constant 0 : i32
    return %c0_i32, %c0_i32_0 : i32, i32
  }
  func.func @transform_9(%arg0: i32, %arg1: i32) -> (i32, i32) {
    %c0_i32 = arith.constant 0 : i32
    %c0_i32_0 = arith.constant 0 : i32
    %c0_i32_1 = arith.constant 0 : i32
    return %c0_i32, %c0_i32_0 : i32, i32
  }
  func.func @transform_10(%arg0: i32, %arg1: i32) -> (i32, i32) {
    %c0_i32 = arith.constant 0 : i32
    %c0_i32_0 = arith.constant 0 : i32
    %c0_i32_1 = arith.constant 0 : i32
    return %c0_i32, %c0_i32_0 : i32, i32
  }
  func.func @transform_11(%arg0: i32, %arg1: i32) -> (i32, i32) {
    %c0_i32 = arith.constant 0 : i32
    %c0_i32_0 = arith.constant 0 : i32
    %c0_i32_1 = arith.constant 0 : i32
    return %c0_i32, %c0_i32_0 : i32, i32
  }
  func.func @transform_12(%arg0: i32, %arg1: i32) -> (i32, i32) {
    %c0_i32 = arith.constant 0 : i32
    %c0_i32_0 = arith.constant 0 : i32
    %c0_i32_1 = arith.constant 0 : i32
    return %c0_i32, %c0_i32_0 : i32, i32
  }
  func.func @transform_13(%arg0: i32, %arg1: i32) -> (i32, i32) {
    %c0_i32 = arith.constant 0 : i32
    %c0_i32_0 = arith.constant 0 : i32
    %c0_i32_1 = arith.constant 0 : i32
    return %c0_i32, %c0_i32_0 : i32, i32
  }
  func.func @transform_14(%arg0: i32, %arg1: i32) -> (i32, i32) {
    %c2_i32 = arith.constant 2 : i32
    %0 = arith.muli %arg0, %c2_i32 : i32
    %1 = arith.addi %0, %arg1 : i32
    %c0_i32 = arith.constant 0 : i32
    %c0_i32_0 = arith.constant 0 : i32
    return %1, %c0_i32 : i32, i32
  }
  func.func @transform_15(%arg0: i32, %arg1: i32) -> (i32, i32, i32) {
    %c0_i32 = arith.constant 0 : i32
    %c0_i32_0 = arith.constant 0 : i32
    %c0_i32_1 = arith.constant 0 : i32
    return %arg0, %c0_i32, %c0_i32_0 : i32, i32, i32
  }
}

module attributes {stable_mosaic.version = 11 : i64} {
  func.func @node_update_kernel(%arg0: i32, %arg1: memref<8x32xf32, #tpu.memory_space<vmem>>, %arg2: memref<8x32xf32, #tpu.memory_space<vmem>>, %arg3: memref<32x32xbf16, #tpu.memory_space<vmem>>, %arg4: memref<32x32xbf16, #tpu.memory_space<vmem>>, %arg5: memref<1x32xf32, #tpu.memory_space<vmem>>, %arg6: memref<32x32xbf16, #tpu.memory_space<vmem>>, %arg7: memref<1x32xf32, #tpu.memory_space<vmem>>, %arg8: memref<32x32xbf16, #tpu.memory_space<vmem>>, %arg9: memref<1x32xf32, #tpu.memory_space<vmem>>, %arg10: memref<8x32xf32, #tpu.memory_space<vmem>>) attributes {dimension_semantics = [#tpu.dimension_semantics<parallel>], iteration_bounds = array<i64: 6>, scalar_prefetch = 0 : i64, scratch_operands = 0 : i64, tpu.core_type = #tpu.core_type<tc>, window_params = [{transform_indices = @transform_0, window_bounds = array<i64: 8, 32>}, {transform_indices = @transform_1, window_bounds = array<i64: 8, 32>}, {pipeline_mode = #tpu.pipeline_mode<synchronous>, transform_indices = @transform_2, window_bounds = array<i64: 32, 32>}, {pipeline_mode = #tpu.pipeline_mode<synchronous>, transform_indices = @transform_3, window_bounds = array<i64: 32, 32>}, {pipeline_mode = #tpu.pipeline_mode<synchronous>, transform_indices = @transform_4, window_bounds = array<i64: 1, 32>}, {pipeline_mode = #tpu.pipeline_mode<synchronous>, transform_indices = @transform_5, window_bounds = array<i64: 32, 32>}, {pipeline_mode = #tpu.pipeline_mode<synchronous>, transform_indices = @transform_6, window_bounds = array<i64: 1, 32>}, {pipeline_mode = #tpu.pipeline_mode<synchronous>, transform_indices = @transform_7, window_bounds = array<i64: 32, 32>}, {pipeline_mode = #tpu.pipeline_mode<synchronous>, transform_indices = @transform_8, window_bounds = array<i64: 1, 32>}, {transform_indices = @transform_9, window_bounds = array<i64: 8, 32>}]} {
    %c0 = arith.constant 0 : index
    %c0_0 = arith.constant 0 : index
    %0 = vector.load %arg1[%c0, %c0_0] : memref<8x32xf32, #tpu.memory_space<vmem>>, vector<8x32xf32>
    %1 = arith.truncf %0 : vector<8x32xf32> to vector<8x32xbf16>
    %c0_1 = arith.constant 0 : index
    %c0_2 = arith.constant 0 : index
    %2 = vector.load %arg3[%c0_1, %c0_2] : memref<32x32xbf16, #tpu.memory_space<vmem>>, vector<32x32xbf16>
    %cst = arith.constant dense<0.000000e+00> : vector<8x32xf32>
    %3 = tpu.matmul %1, %2, %cst {dimension_numbers = #tpu.dot_dimension_numbers<[1], [0], [0], [1], [0, 0, 1, 1], [], []>} : vector<8x32xbf16>, vector<32x32xbf16>, vector<8x32xf32> -> vector<8x32xf32>
    %c0_3 = arith.constant 0 : index
    %c0_4 = arith.constant 0 : index
    %4 = vector.load %arg2[%c0_3, %c0_4] : memref<8x32xf32, #tpu.memory_space<vmem>>, vector<8x32xf32>
    %5 = arith.truncf %4 : vector<8x32xf32> to vector<8x32xbf16>
    %c0_5 = arith.constant 0 : index
    %c0_6 = arith.constant 0 : index
    %6 = vector.load %arg4[%c0_5, %c0_6] : memref<32x32xbf16, #tpu.memory_space<vmem>>, vector<32x32xbf16>
    %cst_7 = arith.constant dense<0.000000e+00> : vector<8x32xf32>
    %7 = tpu.matmul %5, %6, %cst_7 {dimension_numbers = #tpu.dot_dimension_numbers<[1], [0], [0], [1], [0, 0, 1, 1], [], []>} : vector<8x32xbf16>, vector<32x32xbf16>, vector<8x32xf32> -> vector<8x32xf32>
    %8 = arith.addf %3, %7 : vector<8x32xf32>
    %c0_8 = arith.constant 0 : index
    %c0_9 = arith.constant 0 : index
    %9 = vector.load %arg5[%c0_8, %c0_9] : memref<1x32xf32, #tpu.memory_space<vmem>>, vector<1x32xf32>
    %10 = vector.broadcast %9 : vector<1x32xf32> to vector<8x32xf32>
    %11 = arith.addf %8, %10 : vector<8x32xf32>
    %cst_10 = arith.constant 0.000000e+00 : f32
    %12 = vector.broadcast %cst_10 : f32 to vector<8x32xf32>
    %13 = arith.cmpf ogt, %11, %12 : vector<8x32xf32>
    %cst_11 = arith.constant 0.00999999977 : f32
    %14 = vector.broadcast %cst_11 : f32 to vector<8x32xf32>
    %15 = arith.mulf %14, %11 : vector<8x32xf32>
    %16 = arith.select %13, %11, %15 : vector<8x32xi1>, vector<8x32xf32>
    %17 = arith.truncf %16 : vector<8x32xf32> to vector<8x32xbf16>
    %c0_12 = arith.constant 0 : index
    %c0_13 = arith.constant 0 : index
    %18 = vector.load %arg6[%c0_12, %c0_13] : memref<32x32xbf16, #tpu.memory_space<vmem>>, vector<32x32xbf16>
    %cst_14 = arith.constant dense<0.000000e+00> : vector<8x32xf32>
    %19 = tpu.matmul %17, %18, %cst_14 {dimension_numbers = #tpu.dot_dimension_numbers<[1], [0], [0], [1], [0, 0, 1, 1], [], []>} : vector<8x32xbf16>, vector<32x32xbf16>, vector<8x32xf32> -> vector<8x32xf32>
    %c0_15 = arith.constant 0 : index
    %c0_16 = arith.constant 0 : index
    %20 = vector.load %arg7[%c0_15, %c0_16] : memref<1x32xf32, #tpu.memory_space<vmem>>, vector<1x32xf32>
    %21 = vector.broadcast %20 : vector<1x32xf32> to vector<8x32xf32>
    %22 = arith.addf %19, %21 : vector<8x32xf32>
    %cst_17 = arith.constant 0.000000e+00 : f32
    %23 = vector.broadcast %cst_17 : f32 to vector<8x32xf32>
    %24 = arith.cmpf ogt, %22, %23 : vector<8x32xf32>
    %cst_18 = arith.constant 0.00999999977 : f32
    %25 = vector.broadcast %cst_18 : f32 to vector<8x32xf32>
    %26 = arith.mulf %25, %22 : vector<8x32xf32>
    %27 = arith.select %24, %22, %26 : vector<8x32xi1>, vector<8x32xf32>
    %28 = arith.truncf %27 : vector<8x32xf32> to vector<8x32xbf16>
    %c0_19 = arith.constant 0 : index
    %c0_20 = arith.constant 0 : index
    %29 = vector.load %arg8[%c0_19, %c0_20] : memref<32x32xbf16, #tpu.memory_space<vmem>>, vector<32x32xbf16>
    %cst_21 = arith.constant dense<0.000000e+00> : vector<8x32xf32>
    %30 = tpu.matmul %28, %29, %cst_21 {dimension_numbers = #tpu.dot_dimension_numbers<[1], [0], [0], [1], [0, 0, 1, 1], [], []>} : vector<8x32xbf16>, vector<32x32xbf16>, vector<8x32xf32> -> vector<8x32xf32>
    %c0_22 = arith.constant 0 : index
    %c0_23 = arith.constant 0 : index
    %31 = vector.load %arg9[%c0_22, %c0_23] : memref<1x32xf32, #tpu.memory_space<vmem>>, vector<1x32xf32>
    %32 = vector.broadcast %31 : vector<1x32xf32> to vector<8x32xf32>
    %33 = arith.addf %30, %32 : vector<8x32xf32>
    %34 = arith.addf %0, %33 : vector<8x32xf32>
    %c0_24 = arith.constant 0 : index
    %c0_25 = arith.constant 0 : index
    %35 = vector.load %arg10[%c0_24, %c0_25] : memref<8x32xf32, #tpu.memory_space<vmem>>, vector<8x32xf32>
    tpu.vector_store %arg10[%c0_24, %c0_25], %34 {strides = array<i32>} : memref<8x32xf32, #tpu.memory_space<vmem>>, vector<8x32xf32>,
    return
  }
  func.func @transform_0(%arg0: i32) -> (i32, i32) {
    %c0_i32 = arith.constant 0 : i32
    %c0_i32_0 = arith.constant 0 : i32
    return %arg0, %c0_i32 : i32, i32
  }
  func.func @transform_1(%arg0: i32) -> (i32, i32) {
    %c0_i32 = arith.constant 0 : i32
    %c0_i32_0 = arith.constant 0 : i32
    return %arg0, %c0_i32 : i32, i32
  }
  func.func @transform_2(%arg0: i32) -> (i32, i32) {
    %c0_i32 = arith.constant 0 : i32
    %c0_i32_0 = arith.constant 0 : i32
    %c0_i32_1 = arith.constant 0 : i32
    return %c0_i32, %c0_i32_0 : i32, i32
  }
  func.func @transform_3(%arg0: i32) -> (i32, i32) {
    %c0_i32 = arith.constant 0 : i32
    %c0_i32_0 = arith.constant 0 : i32
    %c0_i32_1 = arith.constant 0 : i32
    return %c0_i32, %c0_i32_0 : i32, i32
  }
  func.func @transform_4(%arg0: i32) -> (i32, i32) {
    %c0_i32 = arith.constant 0 : i32
    %c0_i32_0 = arith.constant 0 : i32
    %c0_i32_1 = arith.constant 0 : i32
    return %c0_i32, %c0_i32_0 : i32, i32
  }
  func.func @transform_5(%arg0: i32) -> (i32, i32) {
    %c0_i32 = arith.constant 0 : i32
    %c0_i32_0 = arith.constant 0 : i32
    %c0_i32_1 = arith.constant 0 : i32
    return %c0_i32, %c0_i32_0 : i32, i32
  }
  func.func @transform_6(%arg0: i32) -> (i32, i32) {
    %c0_i32 = arith.constant 0 : i32
    %c0_i32_0 = arith.constant 0 : i32
    %c0_i32_1 = arith.constant 0 : i32
    return %c0_i32, %c0_i32_0 : i32, i32
  }
  func.func @transform_7(%arg0: i32) -> (i32, i32) {
    %c0_i32 = arith.constant 0 : i32
    %c0_i32_0 = arith.constant 0 : i32
    %c0_i32_1 = arith.constant 0 : i32
    return %c0_i32, %c0_i32_0 : i32, i32
  }
  func.func @transform_8(%arg0: i32) -> (i32, i32) {
    %c0_i32 = arith.constant 0 : i32
    %c0_i32_0 = arith.constant 0 : i32
    %c0_i32_1 = arith.constant 0 : i32
    return %c0_i32, %c0_i32_0 : i32, i32
  }
  func.func @transform_9(%arg0: i32) -> (i32, i32) {
    %c0_i32 = arith.constant 0 : i32
    %c0_i32_0 = arith.constant 0 : i32
    return %arg0, %c0_i32 : i32, i32
  }
}

module attributes {stable_mosaic.version = 11 : i64} {
  func.func @decoder_kernel(%arg0: i32, %arg1: memref<32x48xbf16, #tpu.memory_space<vmem>>, %arg2: memref<32x128xf32, #tpu.memory_space<vmem>>, %arg3: memref<1x128xi32, #tpu.memory_space<vmem>>, %arg4: memref<1x128xi32, #tpu.memory_space<vmem>>, %arg5: memref<32x32xbf16, #tpu.memory_space<vmem>>, %arg6: memref<32x32xbf16, #tpu.memory_space<vmem>>, %arg7: memref<32x32xbf16, #tpu.memory_space<vmem>>, %arg8: memref<32x1xf32, #tpu.memory_space<vmem>>, %arg9: memref<32x32xbf16, #tpu.memory_space<vmem>>, %arg10: memref<32x1xf32, #tpu.memory_space<vmem>>, %arg11: memref<8x32xf32, #tpu.memory_space<vmem>>, %arg12: memref<8x1xf32, #tpu.memory_space<vmem>>, %arg13: memref<8x128xf32, #tpu.memory_space<vmem>>) attributes {dimension_semantics = [#tpu.dimension_semantics<parallel>], iteration_bounds = array<i64: 4>, scalar_prefetch = 0 : i64, scratch_operands = 0 : i64, tpu.core_type = #tpu.core_type<tc>, window_params = [{pipeline_mode = #tpu.pipeline_mode<synchronous>, transform_indices = @transform_0, window_bounds = array<i64: 32, 48>}, {transform_indices = @transform_1, window_bounds = array<i64: 32, 128>}, {transform_indices = @transform_2, window_bounds = array<i64: 1, 128>}, {transform_indices = @transform_3, window_bounds = array<i64: 1, 128>}, {pipeline_mode = #tpu.pipeline_mode<synchronous>, transform_indices = @transform_4, window_bounds = array<i64: 32, 32>}, {pipeline_mode = #tpu.pipeline_mode<synchronous>, transform_indices = @transform_5, window_bounds = array<i64: 32, 32>}, {pipeline_mode = #tpu.pipeline_mode<synchronous>, transform_indices = @transform_6, window_bounds = array<i64: 32, 32>}, {pipeline_mode = #tpu.pipeline_mode<synchronous>, transform_indices = @transform_7, window_bounds = array<i64: 32, 1>}, {pipeline_mode = #tpu.pipeline_mode<synchronous>, transform_indices = @transform_8, window_bounds = array<i64: 32, 32>}, {pipeline_mode = #tpu.pipeline_mode<synchronous>, transform_indices = @transform_9, window_bounds = array<i64: 32, 1>}, {pipeline_mode = #tpu.pipeline_mode<synchronous>, transform_indices = @transform_10, window_bounds = array<i64: 8, 32>}, {pipeline_mode = #tpu.pipeline_mode<synchronous>, transform_indices = @transform_11, window_bounds = array<i64: 8, 1>}, {transform_indices = @transform_12, window_bounds = array<i64: 8, 128>}]} {
    %c0 = arith.constant 0 : index
    %c0_0 = arith.constant 0 : index
    %0 = vector.load %arg1[%c0, %c0_0] : memref<32x48xbf16, #tpu.memory_space<vmem>>, vector<32x48xbf16>
    %1 = tpu.iota {dimensions = array<i32: 0>} : vector<48x128xi32>
    %c0_1 = arith.constant 0 : index
    %c0_2 = arith.constant 0 : index
    %2 = vector.load %arg3[%c0_1, %c0_2] : memref<1x128xi32, #tpu.memory_space<vmem>>, vector<1x128xi32>
    %3 = vector.broadcast %2 : vector<1x128xi32> to vector<48x128xi32>
    %4 = arith.cmpi eq, %1, %3 : vector<48x128xi32>
    %5 = arith.extui %4 : vector<48x128xi1> to vector<48x128xi32>
    %6 = arith.sitofp %5 : vector<48x128xi32> to vector<48x128xf32>
    %7 = arith.truncf %6 : vector<48x128xf32> to vector<48x128xbf16>
    %c0_3 = arith.constant 0 : index
    %c0_4 = arith.constant 0 : index
    %8 = vector.load %arg4[%c0_3, %c0_4] : memref<1x128xi32, #tpu.memory_space<vmem>>, vector<1x128xi32>
    %9 = vector.broadcast %8 : vector<1x128xi32> to vector<48x128xi32>
    %10 = arith.cmpi eq, %1, %9 : vector<48x128xi32>
    %11 = arith.extui %10 : vector<48x128xi1> to vector<48x128xi32>
    %12 = arith.sitofp %11 : vector<48x128xi32> to vector<48x128xf32>
    %13 = arith.truncf %12 : vector<48x128xf32> to vector<48x128xbf16>
    %cst = arith.constant dense<0.000000e+00> : vector<32x128xf32>
    %14 = tpu.matmul %0, %7, %cst {dimension_numbers = #tpu.dot_dimension_numbers<[1], [0], [0], [1], [0, 0, 1, 1], [], []>} : vector<32x48xbf16>, vector<48x128xbf16>, vector<32x128xf32> -> vector<32x128xf32>
    %cst_5 = arith.constant dense<0.000000e+00> : vector<32x128xf32>
    %15 = tpu.matmul %0, %13, %cst_5 {dimension_numbers = #tpu.dot_dimension_numbers<[1], [0], [0], [1], [0, 0, 1, 1], [], []>} : vector<32x48xbf16>, vector<48x128xbf16>, vector<32x128xf32> -> vector<32x128xf32>
    %c0_6 = arith.constant 0 : index
    %c0_7 = arith.constant 0 : index
    %16 = vector.load %arg5[%c0_6, %c0_7] : memref<32x32xbf16, #tpu.memory_space<vmem>>, vector<32x32xbf16>
    %17 = arith.truncf %14 : vector<32x128xf32> to vector<32x128xbf16>
    %cst_8 = arith.constant dense<0.000000e+00> : vector<32x128xf32>
    %18 = tpu.matmul %16, %17, %cst_8 {dimension_numbers = #tpu.dot_dimension_numbers<[1], [0], [0], [1], [0, 0, 1, 1], [], []>} : vector<32x32xbf16>, vector<32x128xbf16>, vector<32x128xf32> -> vector<32x128xf32>
    %c0_9 = arith.constant 0 : index
    %c0_10 = arith.constant 0 : index
    %19 = vector.load %arg6[%c0_9, %c0_10] : memref<32x32xbf16, #tpu.memory_space<vmem>>, vector<32x32xbf16>
    %c0_11 = arith.constant 0 : index
    %c0_12 = arith.constant 0 : index
    %20 = vector.load %arg2[%c0_11, %c0_12] : memref<32x128xf32, #tpu.memory_space<vmem>>, vector<32x128xf32>
    %21 = arith.truncf %20 : vector<32x128xf32> to vector<32x128xbf16>
    %cst_13 = arith.constant dense<0.000000e+00> : vector<32x128xf32>
    %22 = tpu.matmul %19, %21, %cst_13 {dimension_numbers = #tpu.dot_dimension_numbers<[1], [0], [0], [1], [0, 0, 1, 1], [], []>} : vector<32x32xbf16>, vector<32x128xbf16>, vector<32x128xf32> -> vector<32x128xf32>
    %23 = arith.addf %18, %22 : vector<32x128xf32>
    %c0_14 = arith.constant 0 : index
    %c0_15 = arith.constant 0 : index
    %24 = vector.load %arg7[%c0_14, %c0_15] : memref<32x32xbf16, #tpu.memory_space<vmem>>, vector<32x32xbf16>
    %25 = arith.truncf %15 : vector<32x128xf32> to vector<32x128xbf16>
    %cst_16 = arith.constant dense<0.000000e+00> : vector<32x128xf32>
    %26 = tpu.matmul %24, %25, %cst_16 {dimension_numbers = #tpu.dot_dimension_numbers<[1], [0], [0], [1], [0, 0, 1, 1], [], []>} : vector<32x32xbf16>, vector<32x128xbf16>, vector<32x128xf32> -> vector<32x128xf32>
    %27 = arith.addf %23, %26 : vector<32x128xf32>
    %c0_17 = arith.constant 0 : index
    %c0_18 = arith.constant 0 : index
    %28 = vector.load %arg8[%c0_17, %c0_18] : memref<32x1xf32, #tpu.memory_space<vmem>>, vector<32x1xf32>
    %29 = vector.broadcast %28 : vector<32x1xf32> to vector<32x128xf32>
    %30 = arith.addf %27, %29 : vector<32x128xf32>
    %cst_19 = arith.constant 0.000000e+00 : f32
    %31 = vector.broadcast %cst_19 : f32 to vector<32x128xf32>
    %32 = arith.cmpf ogt, %30, %31 : vector<32x128xf32>
    %cst_20 = arith.constant 0.00999999977 : f32
    %33 = vector.broadcast %cst_20 : f32 to vector<32x128xf32>
    %34 = arith.mulf %33, %30 : vector<32x128xf32>
    %35 = arith.select %32, %30, %34 : vector<32x128xi1>, vector<32x128xf32>
    %c0_21 = arith.constant 0 : index
    %c0_22 = arith.constant 0 : index
    %36 = vector.load %arg9[%c0_21, %c0_22] : memref<32x32xbf16, #tpu.memory_space<vmem>>, vector<32x32xbf16>
    %37 = arith.truncf %35 : vector<32x128xf32> to vector<32x128xbf16>
    %cst_23 = arith.constant dense<0.000000e+00> : vector<32x128xf32>
    %38 = tpu.matmul %36, %37, %cst_23 {dimension_numbers = #tpu.dot_dimension_numbers<[1], [0], [0], [1], [0, 0, 1, 1], [], []>} : vector<32x32xbf16>, vector<32x128xbf16>, vector<32x128xf32> -> vector<32x128xf32>
    %c0_24 = arith.constant 0 : index
    %c0_25 = arith.constant 0 : index
    %39 = vector.load %arg10[%c0_24, %c0_25] : memref<32x1xf32, #tpu.memory_space<vmem>>, vector<32x1xf32>
    %40 = vector.broadcast %39 : vector<32x1xf32> to vector<32x128xf32>
    %41 = arith.addf %38, %40 : vector<32x128xf32>
    %cst_26 = arith.constant 0.000000e+00 : f32
    %42 = vector.broadcast %cst_26 : f32 to vector<32x128xf32>
    %43 = arith.cmpf ogt, %41, %42 : vector<32x128xf32>
    %cst_27 = arith.constant 0.00999999977 : f32
    %44 = vector.broadcast %cst_27 : f32 to vector<32x128xf32>
    %45 = arith.mulf %44, %41 : vector<32x128xf32>
    %46 = arith.select %43, %41, %45 : vector<32x128xi1>, vector<32x128xf32>
    %c0_28 = arith.constant 0 : index
    %c0_29 = arith.constant 0 : index
    %47 = vector.load %arg11[%c0_28, %c0_29] : memref<8x32xf32, #tpu.memory_space<vmem>>, vector<8x32xf32>
    %cst_30 = arith.constant dense<0.000000e+00> : vector<8x128xf32>
    %48 = tpu.matmul %47, %46, %cst_30 {dimension_numbers = #tpu.dot_dimension_numbers<[1], [0], [0], [1], [0, 0, 1, 1], [], []>} : vector<8x32xf32>, vector<32x128xf32>, vector<8x128xf32> -> vector<8x128xf32>
    %c0_31 = arith.constant 0 : index
    %c0_32 = arith.constant 0 : index
    %49 = vector.load %arg12[%c0_31, %c0_32] : memref<8x1xf32, #tpu.memory_space<vmem>>, vector<8x1xf32>
    %50 = vector.broadcast %49 : vector<8x1xf32> to vector<8x128xf32>
    %51 = arith.addf %48, %50 : vector<8x128xf32>
    %c0_33 = arith.constant 0 : index
    %c0_34 = arith.constant 0 : index
    %52 = vector.load %arg13[%c0_33, %c0_34] : memref<8x128xf32, #tpu.memory_space<vmem>>, vector<8x128xf32>
    tpu.vector_store %arg13[%c0_33, %c0_34], %51 {strides = array<i32>} : memref<8x128xf32, #tpu.memory_space<vmem>>, vector<8x128xf32>,
    return
  }
  func.func @transform_0(%arg0: i32) -> (i32, i32) {
    %c0_i32 = arith.constant 0 : i32
    %c0_i32_0 = arith.constant 0 : i32
    %c0_i32_1 = arith.constant 0 : i32
    return %c0_i32, %c0_i32_0 : i32, i32
  }
  func.func @transform_1(%arg0: i32) -> (i32, i32) {
    %c0_i32 = arith.constant 0 : i32
    %c0_i32_0 = arith.constant 0 : i32
    return %c0_i32, %arg0 : i32, i32
  }
  func.func @transform_2(%arg0: i32) -> (i32, i32) {
    %c0_i32 = arith.constant 0 : i32
    %c0_i32_0 = arith.constant 0 : i32
    return %c0_i32, %arg0 : i32, i32
  }
  func.func @transform_3(%arg0: i32) -> (i32, i32) {
    %c0_i32 = arith.constant 0 : i32
    %c0_i32_0 = arith.constant 0 : i32
    return %c0_i32, %arg0 : i32, i32
  }
  func.func @transform_4(%arg0: i32) -> (i32, i32) {
    %c0_i32 = arith.constant 0 : i32
    %c0_i32_0 = arith.constant 0 : i32
    %c0_i32_1 = arith.constant 0 : i32
    return %c0_i32, %c0_i32_0 : i32, i32
  }
  func.func @transform_5(%arg0: i32) -> (i32, i32) {
    %c0_i32 = arith.constant 0 : i32
    %c0_i32_0 = arith.constant 0 : i32
    %c0_i32_1 = arith.constant 0 : i32
    return %c0_i32, %c0_i32_0 : i32, i32
  }
  func.func @transform_6(%arg0: i32) -> (i32, i32) {
    %c0_i32 = arith.constant 0 : i32
    %c0_i32_0 = arith.constant 0 : i32
    %c0_i32_1 = arith.constant 0 : i32
    return %c0_i32, %c0_i32_0 : i32, i32
  }
  func.func @transform_7(%arg0: i32) -> (i32, i32) {
    %c0_i32 = arith.constant 0 : i32
    %c0_i32_0 = arith.constant 0 : i32
    %c0_i32_1 = arith.constant 0 : i32
    return %c0_i32, %c0_i32_0 : i32, i32
  }
  func.func @transform_8(%arg0: i32) -> (i32, i32) {
    %c0_i32 = arith.constant 0 : i32
    %c0_i32_0 = arith.constant 0 : i32
    %c0_i32_1 = arith.constant 0 : i32
    return %c0_i32, %c0_i32_0 : i32, i32
  }
  func.func @transform_9(%arg0: i32) -> (i32, i32) {
    %c0_i32 = arith.constant 0 : i32
    %c0_i32_0 = arith.constant 0 : i32
    %c0_i32_1 = arith.constant 0 : i32
    return %c0_i32, %c0_i32_0 : i32, i32
  }
  func.func @transform_10(%arg0: i32) -> (i32, i32) {
    %c0_i32 = arith.constant 0 : i32
    %c0_i32_0 = arith.constant 0 : i32
    %c0_i32_1 = arith.constant 0 : i32
    return %c0_i32, %c0_i32_0 : i32, i32
  }
  func.func @transform_11(%arg0: i32) -> (i32, i32) {
    %c0_i32 = arith.constant 0 : i32
    %c0_i32_0 = arith.constant 0 : i32
    %c0_i32_1 = arith.constant 0 : i32
    return %c0_i32, %c0_i32_0 : i32, i32
  }
  func.func @transform_12(%arg0: i32) -> (i32, i32) {
    %c0_i32 = arith.constant 0 : i32
    %c0_i32_0 = arith.constant 0 : i32
    return %c0_i32, %arg0 : i32, i32
  }
}

</mosaic_0001>

<bundles_post_ra>
// kernel: forward_dynamics_pallas.9
= control target key start
LH: loop header
LB: loop body
LE: loop exit
PB: predicated region body
PF: predicated region fallthrough
CT: control target
= control target key end

     0   :  { %s545_s24 = smov 0   ;;  %s599_s0 = inlined_call_operand.vmem [shape: f32[48,11], index: 0, kind: input, shape index: {}]   ;;  %s600_s1 = inlined_call_operand.vmem [shape: bf16[11,32], index: 1, kind: input, shape index: {}]   ;;  %s601_s2 = inlined_call_operand.vmem [shape: f32[1,32], index: 2, kind: input, shape index: {}]   ;;  %s602_s3 = inlined_call_operand.vmem [shape: bf16[32,32], index: 3, kind: input, shape index: {}]   ;;  %s603_s4 = inlined_call_operand.vmem [shape: f32[1,32], index: 4, kind: input, shape index: {}]   ;;  %s604_s5 = inlined_call_operand.vmem [shape: bf16[32,32], index: 5, kind: input, shape index: {}]   ;;  %s605_s6 = inlined_call_operand.vmem [shape: f32[1,32], index: 6, kind: input, shape index: {}]   ;;  %s606_s7 = inlined_call_operand.vmem [shape: f32[48,32], index: 7, kind: output, shape index: {}]  }
   0x1 LB: > { %s447_s25 = sadd.s32 4294967295, %s502_s24   ;;  %p451_p0 = scmp.ge.s32.totalorder %s502_s24, 1  ;;  %s502_s24 = sphi %s545_s24, %s17_s24  }
   0x2   : > { %p236_p1 = scmp.lt.s32.totalorder %s502_s24, 7 }
   0x4   : > { %p237_p2 = pnand %p451_p0, %p236_p1 }
   0x5   : > { %p266_p3 = scmp.lt.s32.totalorder (!%p237_p2), %s447_s25, 5 }
   0x6   : > { %240 = sbr.rel (%p237_p2) target bundleno = 426 (0x1aa), region = 48 }
   0xb   : > { %v456_v0 = vld [vmem:[%s600_s1] sm:$0xf]  ;;  %v479_v1 = vld [vmem:[%s600_s1] sm:$0x30]  ;;  %vm302_vm0 = vcmask 1044480   ;;  %vm303_vm1 = vcmask 1045504  }
   0xc   : > { %v457_v2 = vor.u32 %v479_v1, %v456_v0  ;;  %v504_v3 = vmov 65535   ;;  %s608_s25 = smov (!%p266_p3, %s447_s25), 5  ;;  %vm298_vm2 = vcmask 89088   ;;  %v481_v9 = vld [vmem:[%s602_s3 + $0x8] sm:$0xff]  ;;  %v480_v10 = vld [vmem:[%s602_s3] sm:$0xff]  ;;  %vm341_vm4 = vcmask 261120  }
   0xd   : > { %v304_v4 = vsel %vm302_vm0, 4294967295, %v504_v3  ;;  %s452_s30 = sshll.u32 %s608_s25, 3  ;;  %351 = vmatpush.bf16.msra.mxu1 %v481_v9  ;;  %v493_v11 = vld [vmem:[%s601_s2] ss:$0 sm:$0xff]  ;;  %v483_v18 = vld [vmem:[%s604_s5 + $0x8] sm:$0xff] }
   0xe   : > { %v305_v5 = vsel %vm303_vm1, %v304_v4, 0  ;;  %s269_s10 = scalar_lea.vmem %s599_s0, %s452_s30  ;;  %386 = vmatpush.bf16.msra.mxu2 %v483_v18  ;;  %v482_v19 = vld [vmem:[%s604_s5] sm:$0xff]  ;;  %s273_s29 = scalar_lea.vmem %s606_s7, %s452_s30 }
   0xf   : > { %v307_v6 = vand.u32 %v457_v2, %v305_v5  ;;  %v275_v7 = vld [vmem:[%s269_s10] sm:$0xff] }
  0x10   : > { %v289_v8 = vpack.c.bf16 %v275_v7, %v275_v7  ;;  %v494_v20 = vld [vmem:[%s603_s4] ss:$0 sm:$0xff] }
  0x11   : > { %316 = vmatpush.bf16.msra.mxu0 %v307_v6  ;;  %352 = vmatpush.bf16.msra.mxu1 %v480_v10  ;;  %v495_v27 = vld [vmem:[%s605_s6] ss:$0 sm:$0xff] }
  0x12   : > { %387 = vmatpush.bf16.msra.mxu2 %v482_v19 }
  0x14   : > { %458 = vmatmul.msk.bf16.vlgmr.msra.gmra.mxu0 %vm298_vm2, %v289_v8 }
  0x91   : > { %v318_v12 = vpop.f32.mrf.mxu0 }
  0x92   : > { %v319_v13 = vadd.f32 %v493_v11, %v318_v12 }
  0x94   : > { %vm322_vm3 = vcmp.gt.f32.partialorder %v319_v13, 0.0  ;;  %v323_v14 = vmul.f32 0.01, %v319_v13 }
  0x96   : > { %v324_v15 = vsel %vm322_vm3, %v319_v13, %v323_v14 }
  0x97   : > { %v325_v16 = vpack.c.bf16 %v324_v15, %v324_v15 }
  0x99   : > { %v320_v17 = vpop.f32.mrf.mxu0  ;;  %467 = vmatmul.msk.bf16.vlgmr.msra.gmra.mxu1 %vm341_vm4, %v325_v16 }
 0x116   : > { %v354_v21 = vpop.f32.mrf.mxu1 }
 0x117   : > { %v355_v22 = vadd.f32 %v494_v20, %v354_v21 }
 0x119   : > { %vm358_vm5 = vcmp.gt.f32.partialorder %v355_v22, 0.0  ;;  %v359_v23 = vmul.f32 0.01, %v355_v22 }
 0x11b   : > { %v360_v24 = vsel %vm358_vm5, %v355_v22, %v359_v23 }
 0x11c   : > { %v361_v25 = vpack.c.bf16 %v360_v24, %v360_v24 }
 0x11e   : > { %v356_v26 = vpop.f32.mrf.mxu1  ;;  %476 = vmatmul.msk.bf16.vlgmr.msra.gmra.mxu2 %vm341_vm4, %v361_v25 }
 0x1a1   : > { %v389_v28 = vpop.f32.mrf.mxu2 }
 0x1a2   : > { %v390_v29 = vadd.f32 %v495_v27, %v389_v28 }
 0x1a4   : > { %393 = vst.msk [vmem:[%s273_s29] sm:$0xff] %vm341_vm4, %v390_v29 }
 0x1a9   : > { %v391_v30 = vpop.f32.mrf.mxu2 }
 0x1aa PF: > { %s17_s24 = sadd.s32 1, %s502_s24  }
 0x1ab   : > { %p14_p4 = scmp.ge.s32.totalorder %s17_s24, 8  }
 0x1ad   :  { %16 = sbr.rel (!%p14_p4) target bundleno = 1 (0x1), region = 78 }

// kernel: forward_dynamics_pallas.10
= control target key start
LH: loop header
LB: loop body
LE: loop exit
PB: predicated region body
PF: predicated region fallthrough
CT: control target
= control target key end

     0   :  { %s885_s24 = smov 0   ;;  %s1045_s0 = inlined_call_operand.vmem [shape: f32[512,3], index: 0, kind: input, shape index: {}]   ;;  %s1046_s1 = inlined_call_operand.vmem [shape: bf16[3,32], index: 1, kind: input, shape index: {}]   ;;  %s1047_s2 = inlined_call_operand.vmem [shape: f32[1,32], index: 2, kind: input, shape index: {}]   ;;  %s1048_s3 = inlined_call_operand.vmem [shape: bf16[32,32], index: 3, kind: input, shape index: {}]   ;;  %s1049_s4 = inlined_call_operand.vmem [shape: f32[1,32], index: 4, kind: input, shape index: {}]   ;;  %s1050_s5 = inlined_call_operand.vmem [shape: bf16[32,32], index: 5, kind: input, shape index: {}]   ;;  %s1051_s6 = inlined_call_operand.vmem [shape: f32[1,32], index: 6, kind: input, shape index: {}]   ;;  %s1052_s7 = inlined_call_operand.vmem [shape: f32[512,32], index: 7, kind: output, shape index: {}]  }
   0x1 LB: > { %s764_s25 = sadd.s32 4294967295, %s842_s24   ;;  %p768_p0 = scmp.ge.s32.totalorder %s842_s24, 1  ;;  %s842_s24 = sphi %s885_s24, %s17_s24  }
   0x2   : > { %p238_p1 = scmp.lt.s32.totalorder %s842_s24, 5 }
   0x4   : > { %p239_p2 = pnand %p768_p0, %p238_p1 }
   0x5   : > { %s769_s28 = sshll.u32 (!%p239_p2), %s764_s25, 4 }
   0x6   : > { %242 = sbr.rel (%p239_p2) target bundleno = 562 (0x232), region = 48  ;;  %p271_p3 = scmp.lt.s32.totalorder (!%p239_p2), %s769_s28, 63 }
   0xb   : > { %v299_v0 = vld [vmem:[%s1046_s1] sm:$0x3]  ;;  %vm347_vm0 = vcmask 1040384   ;;  %vm348_vm1 = vcmask 1041408   ;;  %v844_v1 = vmov 65535   ;;  %s1054_s28 = smov (!%p271_p3, %s769_s28), 63 }
   0xc   : > { %v349_v2 = vsel %vm347_vm0, 4294967295, %v844_v1  ;;  %s770_s29 = sshll.u32 %s1054_s28, 3  ;;  %vm322_vm2 = vcmask 23552   ;;  %v816_v29 = vld [vmem:[%s1048_s3 + $0x8] sm:$0xff]  ;;  %v815_v30 = vld [vmem:[%s1048_s3] sm:$0xff]  ;;  %vm474_vm5 = vcmask 261120  }
   0xd   : > { %v350_v3 = vsel %vm348_vm1, %v349_v2, 0  ;;  %s904_s9 = scalar_lea.vmem %s1045_s0, %s770_s29  ;;  %505 = vmatpush.bf16.msra.mxu1 %v816_v29  ;;  %v939_v32 = vld [vmem:[%s1047_s2] ss:$0 sm:$0xff]  ;;  %s1008_s27 = scalar_lea.vmem %s1052_s7, %s770_s29 }
   0xe   : > { %v352_v4 = vand.u32 %v350_v3, %v299_v0  ;;  %v283_v5 = vld [vmem:[%s904_s9] sm:$0xff]  ;;  %v284_v6 = vld [vmem:[%s904_s9 + $0x8] sm:$0xff]  ;;  %v285_v8 = vld [vmem:[%s904_s9 + $0x10] sm:$0xff] }
   0xf   : > { %v311_v7 = vpack.c.bf16 %v284_v6, %v283_v5  ;;  %v286_v9 = vld [vmem:[%s904_s9 + $0x18] sm:$0xff]  ;;  %v287_v11 = vld [vmem:[%s904_s9 + $0x20] sm:$0xff]  ;;  %v288_v12 = vld [vmem:[%s904_s9 + $0x28] sm:$0xff] }
  0x10   : > { %361 = vmatpush.bf16.msra.mxu0 %v352_v4  ;;  %819 = vmatpush.bf16.msra.mxu3 %v352_v4  ;;  %v312_v10 = vpack.c.bf16 %v286_v9, %v285_v8  ;;  %v313_v13 = vpack.c.bf16 %v288_v12, %v287_v11  ;;  %v289_v14 = vld [vmem:[%s904_s9 + $0x30] sm:$0xff]  ;;  %v290_v15 = vld [vmem:[%s904_s9 + $0x38] sm:$0xff]  ;;  %v291_v17 = vld [vmem:[%s904_s9 + $0x40] sm:$0xff] }
  0x11   : > { %v314_v16 = vpack.c.bf16 %v290_v15, %v289_v14  ;;  %v292_v18 = vld [vmem:[%s904_s9 + $0x48] sm:$0xff]  ;;  %v297_v20 = vld [vmem:[%s904_s9 + $0x70] sm:$0xff]  ;;  %v298_v21 = vld [vmem:[%s904_s9 + $0x78] sm:$0xff]  ;;  %506 = vmatpush.bf16.msra.mxu1 %v815_v30 }
  0x12   : > { %v315_v19 = vpack.c.bf16 %v292_v18, %v291_v17  ;;  %v318_v22 = vpack.c.bf16 %v298_v21, %v297_v20  ;;  %v293_v23 = vld [vmem:[%s904_s9 + $0x50] sm:$0xff]  ;;  %v294_v24 = vld [vmem:[%s904_s9 + $0x58] sm:$0xff]  ;;  %v295_v26 = vld [vmem:[%s904_s9 + $0x60] sm:$0xff] }
  0x13   : > { %773 = vmatmul.msk.bf16.vlgmr.msra.gmra.mxu0 %vm322_vm2, %v311_v7  ;;  %v316_v25 = vpack.c.bf16 %v294_v24, %v293_v23  ;;  %v296_v27 = vld [vmem:[%s904_s9 + $0x68] sm:$0xff] }
  0x14   : > { %780 = vmatmul.msk.bf16.vlgmr.msra.gmra.mxu3 %vm322_vm2, %v318_v22  ;;  %v317_v28 = vpack.c.bf16 %v296_v27, %v295_v26 }
  0x15   : > { %820 = vmatpush.bf16.msrb.mxu3 %v816_v29 }
  0x19   : > { %821 = vmatpush.bf16.msrb.mxu3 %v815_v30 }
  0x23   : > { %774 = vmatmul.msk.bf16.gmra.mxu0 %vm322_vm2, %v312_v10 }
  0x33   : > { %775 = vmatmul.msk.bf16.gmra.mxu0 %vm322_vm2, %v313_v13 }
  0x43   : > { %776 = vmatmul.msk.bf16.gmra.mxu0 %vm322_vm2, %v314_v16 }
  0x53   : > { %777 = vmatmul.msk.bf16.gmra.mxu0 %vm322_vm2, %v315_v19 }
  0x63   : > { %778 = vmatmul.msk.bf16.gmra.mxu0 %vm322_vm2, %v316_v25 }
  0x73   : > { %779 = vmatmul.msk.bf16.gmra.mxu0 %vm322_vm2, %v317_v28 }
  0x90   : > { %v363_v31 = vpop.f32.mrf.mxu0 }
  0x91   : > { %v364_v33 = vadd.f32 %v939_v32, %v363_v31 }
  0x93   : > { %v419_v35 = vmul.f32 0.01, %v364_v33  ;;  %vm403_vm3 = vcmp.gt.f32.partialorder %v364_v33, 0.0 }
  0x95   : > { %v435_v38 = vsel %vm403_vm3, %v364_v33, %v419_v35 }
  0x97   : > { %v398_v24 = vpop.f32.mrf.mxu3 }
  0x98   : > { %v365_v34 = vpop.f32.mrf.mxu0 }
  0x99   : > { %v366_v36 = vadd.f32 %v939_v32, %v365_v34  ;;  %v399_v34 = vadd.f32 %v939_v32, %v398_v24 }
  0x9b   : > { %vm404_vm4 = vcmp.gt.f32.partialorder %v366_v36, 0.0  ;;  %v420_v37 = vmul.f32 0.01, %v366_v36  ;;  %vm417_vm2 = vcmp.gt.f32.partialorder %v399_v34, 0.0 }
  0x9d   : > { %v436_v39 = vsel %vm404_vm4, %v366_v36, %v420_v37  ;;  %v818_v36 = vld [vmem:[%s1050_s5 + $0x8] sm:$0xff]  ;;  %v433_v37 = vmul.f32 0.01, %v399_v34 }
  0x9e   : > { %v451_v40 = vpack.c.bf16 %v436_v39, %v435_v38  ;;  %649 = vmatpush.bf16.msra.mxu2 %v818_v36  ;;  %822 = vmatpush.bf16.msra.mxu3 %v818_v36  ;;  %v817_v39 = vld [vmem:[%s1050_s5] sm:$0xff] }
  0x9f   : > { %v400_v33 = vpop.f32.mrf.mxu3 }
  0xa0   : > { %v368_v41 = vpop.f32.mrf.mxu0  ;;  %789 = vmatmul.msk.bf16.vlgmr.msra.gmra.mxu1 %vm474_vm5, %v451_v40  ;;  %v401_v35 = vadd.f32 %v939_v32, %v400_v33  ;;  %v449_v40 = vsel %vm417_vm2, %v399_v34, %v433_v37 }
  0xa1   : > { %v369_v42 = vadd.f32 %v939_v32, %v368_v41 }
  0xa2   : > { %v434_v38 = vmul.f32 0.01, %v401_v35  ;;  %vm418_vm3 = vcmp.gt.f32.partialorder %v401_v35, 0.0  ;;  %650 = vmatpush.bf16.msra.mxu2 %v817_v39  ;;  %823 = vmatpush.bf16.msra.mxu3 %v817_v39 }
  0xa3   : > { %v421_v44 = vmul.f32 0.01, %v369_v42  ;;  %vm405_vm6 = vcmp.gt.f32.partialorder %v369_v42, 0.0 }
  0xa4   : > { %v450_v41 = vsel %vm418_vm3, %v401_v35, %v434_v38 }
  0xa5   : > { %v437_v47 = vsel %vm405_vm6, %v369_v42, %v421_v44  ;;  %v458_v42 = vpack.c.bf16 %v450_v41, %v449_v40 }
  0xa8   : > { %v370_v43 = vpop.f32.mrf.mxu0 }
  0xa9   : > { %v371_v45 = vadd.f32 %v939_v32, %v370_v43  ;;  %v974_v43 = vld [vmem:[%s1049_s4] ss:$0 sm:$0xff] }
  0xab   : > { %vm406_vm7 = vcmp.gt.f32.partialorder %v371_v45, 0.0  ;;  %v422_v46 = vmul.f32 0.01, %v371_v45 }
  0xad   : > { %v438_v48 = vsel %vm406_vm7, %v371_v45, %v422_v46 }
  0xae   : > { %v452_v49 = vpack.c.bf16 %v438_v48, %v437_v47 }
  0xb0   : > { %v373_v50 = vpop.f32.mrf.mxu0  ;;  %790 = vmatmul.msk.bf16.gmra.mxu1 %vm474_vm5, %v452_v49 }
  0xb1   : > { %v374_v51 = vadd.f32 %v939_v32, %v373_v50 }
  0xb3   : > { %v423_v53 = vmul.f32 0.01, %v374_v51  ;;  %vm407_vm8 = vcmp.gt.f32.partialorder %v374_v51, 0.0 }
  0xb5   : > { %v439_v56 = vsel %vm407_vm8, %v374_v51, %v423_v53 }
  0xb8   : > { %v375_v52 = vpop.f32.mrf.mxu0 }
  0xb9   : > { %v376_v54 = vadd.f32 %v939_v32, %v375_v52 }
  0xbb   : > { %vm408_vm9 = vcmp.gt.f32.partialorder %v376_v54, 0.0  ;;  %v424_v55 = vmul.f32 0.01, %v376_v54 }
  0xbd   : > { %v440_v57 = vsel %vm408_vm9, %v376_v54, %v424_v55 }
  0xbe   : > { %v453_v58 = vpack.c.bf16 %v440_v57, %v439_v56 }
  0xc0   : > { %v378_v59 = vpop.f32.mrf.mxu0  ;;  %791 = vmatmul.msk.bf16.gmra.mxu1 %vm474_vm5, %v453_v58 }
  0xc1   : > { %v379_v60 = vadd.f32 %v939_v32, %v378_v59 }
  0xc3   : > { %v425_v62 = vmul.f32 0.01, %v379_v60  ;;  %vm409_vm10 = vcmp.gt.f32.partialorder %v379_v60, 0.0 }
  0xc5   : > { %v441_v1 = vsel %vm409_vm10, %v379_v60, %v425_v62 }
  0xc8   : > { %v380_v61 = vpop.f32.mrf.mxu0 }
  0xc9   : > { %v381_v63 = vadd.f32 %v939_v32, %v380_v61 }
  0xcb   : > { %vm410_vm11 = vcmp.gt.f32.partialorder %v381_v63, 0.0  ;;  %v426_v0 = vmul.f32 0.01, %v381_v63 }
  0xcd   : > { %v442_v2 = vsel %vm410_vm11, %v381_v63, %v426_v0 }
  0xce   : > { %v454_v3 = vpack.c.bf16 %v442_v2, %v441_v1 }
  0xd0   : > { %v383_v4 = vpop.f32.mrf.mxu0  ;;  %792 = vmatmul.msk.bf16.gmra.mxu1 %vm474_vm5, %v454_v3 }
  0xd1   : > { %v384_v5 = vadd.f32 %v939_v32, %v383_v4 }
  0xd3   : > { %v427_v7 = vmul.f32 0.01, %v384_v5  ;;  %vm411_vm12 = vcmp.gt.f32.partialorder %v384_v5, 0.0 }
  0xd5   : > { %v443_v10 = vsel %vm411_vm12, %v384_v5, %v427_v7 }
  0xd8   : > { %v385_v6 = vpop.f32.mrf.mxu0 }
  0xd9   : > { %v386_v8 = vadd.f32 %v939_v32, %v385_v6 }
  0xdb   : > { %vm412_vm13 = vcmp.gt.f32.partialorder %v386_v8, 0.0  ;;  %v428_v9 = vmul.f32 0.01, %v386_v8 }
  0xdd   : > { %v444_v11 = vsel %vm412_vm13, %v386_v8, %v428_v9 }
  0xde   : > { %v455_v12 = vpack.c.bf16 %v444_v11, %v443_v10 }
  0xe0   : > { %v388_v13 = vpop.f32.mrf.mxu0  ;;  %793 = vmatmul.msk.bf16.gmra.mxu1 %vm474_vm5, %v455_v12 }
  0xe1   : > { %v389_v14 = vadd.f32 %v939_v32, %v388_v13 }
  0xe3   : > { %v429_v16 = vmul.f32 0.01, %v389_v14  ;;  %vm413_vm14 = vcmp.gt.f32.partialorder %v389_v14, 0.0 }
  0xe5   : > { %v445_v19 = vsel %vm413_vm14, %v389_v14, %v429_v16 }
  0xe8   : > { %v390_v15 = vpop.f32.mrf.mxu0 }
  0xe9   : > { %v391_v17 = vadd.f32 %v939_v32, %v390_v15 }
  0xeb   : > { %vm414_vm15 = vcmp.gt.f32.partialorder %v391_v17, 0.0  ;;  %v430_v18 = vmul.f32 0.01, %v391_v17 }
  0xed   : > { %v446_v20 = vsel %vm414_vm15, %v391_v17, %v430_v18 }
  0xee   : > { %v456_v21 = vpack.c.bf16 %v446_v20, %v445_v19 }
  0xf0   : > { %v393_v22 = vpop.f32.mrf.mxu0  ;;  %794 = vmatmul.msk.bf16.gmra.mxu1 %vm474_vm5, %v456_v21 }
  0xf1   : > { %v394_v23 = vadd.f32 %v939_v32, %v393_v22 }
  0xf3   : > { %v431_v26 = vmul.f32 0.01, %v394_v23  ;;  %vm415_vm0 = vcmp.gt.f32.partialorder %v394_v23, 0.0 }
  0xf5   : > { %v447_v29 = vsel %vm415_vm0, %v394_v23, %v431_v26 }
  0xf8   : > { %v395_v25 = vpop.f32.mrf.mxu0 }
  0xf9   : > { %v396_v27 = vadd.f32 %v939_v32, %v395_v25 }
  0xfb   : > { %vm416_vm1 = vcmp.gt.f32.partialorder %v396_v27, 0.0  ;;  %v432_v28 = vmul.f32 0.01, %v396_v27 }
  0xfd   : > { %v448_v30 = vsel %vm416_vm1, %v396_v27, %v432_v28 }
  0xfe   : > { %v457_v31 = vpack.c.bf16 %v448_v30, %v447_v29 }
 0x100   : > { %795 = vmatmul.msk.bf16.vlgmr.msrb.gmra.mxu3 %vm474_vm5, %v457_v31 }
 0x110   : > { %796 = vmatmul.msk.bf16.gmra.mxu3 %vm474_vm5, %v458_v42 }
 0x11d   : > { %v508_v32 = vpop.f32.mrf.mxu1 }
 0x11e   : > { %v509_v44 = vadd.f32 %v974_v43, %v508_v32 }
 0x120   : > { %v564_v46 = vmul.f32 0.01, %v509_v44  ;;  %vm548_vm4 = vcmp.gt.f32.partialorder %v509_v44, 0.0 }
 0x122   : > { %v580_v49 = vsel %vm548_vm4, %v509_v44, %v564_v46 }
 0x125   : > { %v510_v45 = vpop.f32.mrf.mxu1 }
 0x126   : > { %v511_v47 = vadd.f32 %v974_v43, %v510_v45 }
 0x128   : > { %vm549_vm6 = vcmp.gt.f32.partialorder %v511_v47, 0.0  ;;  %v565_v48 = vmul.f32 0.01, %v511_v47 }
 0x12a   : > { %v581_v50 = vsel %vm549_vm6, %v511_v47, %v565_v48 }
 0x12b   : > { %v596_v51 = vpack.c.bf16 %v581_v50, %v580_v49 }
 0x12d   : > { %v513_v52 = vpop.f32.mrf.mxu1  ;;  %805 = vmatmul.msk.bf16.vlgmr.msra.gmra.mxu2 %vm474_vm5, %v596_v51 }
 0x12e   : > { %v514_v53 = vadd.f32 %v974_v43, %v513_v52  ;;  %v835_v52 = vld [vmem:[%s1051_s6] ss:$0 sm:$0xff] }
 0x130   : > { %v566_v55 = vmul.f32 0.01, %v514_v53  ;;  %vm550_vm7 = vcmp.gt.f32.partialorder %v514_v53, 0.0 }
 0x132   : > { %v582_v58 = vsel %vm550_vm7, %v514_v53, %v566_v55 }
 0x135   : > { %v515_v54 = vpop.f32.mrf.mxu1 }
 0x136   : > { %v516_v56 = vadd.f32 %v974_v43, %v515_v54 }
 0x138   : > { %vm551_vm8 = vcmp.gt.f32.partialorder %v516_v56, 0.0  ;;  %v567_v57 = vmul.f32 0.01, %v516_v56 }
 0x13a   : > { %v583_v59 = vsel %vm551_vm8, %v516_v56, %v567_v57 }
 0x13b   : > { %v597_v60 = vpack.c.bf16 %v583_v59, %v582_v58 }
 0x13d   : > { %v518_v61 = vpop.f32.mrf.mxu1  ;;  %806 = vmatmul.msk.bf16.gmra.mxu2 %vm474_vm5, %v597_v60 }
 0x13e   : > { %v519_v62 = vadd.f32 %v974_v43, %v518_v61 }
 0x140   : > { %v568_v0 = vmul.f32 0.01, %v519_v62  ;;  %vm552_vm9 = vcmp.gt.f32.partialorder %v519_v62, 0.0 }
 0x142   : > { %v584_v3 = vsel %vm552_vm9, %v519_v62, %v568_v0 }
 0x145   : > { %v520_v63 = vpop.f32.mrf.mxu1 }
 0x146   : > { %v521_v1 = vadd.f32 %v974_v43, %v520_v63 }
 0x148   : > { %vm553_vm10 = vcmp.gt.f32.partialorder %v521_v1, 0.0  ;;  %v569_v2 = vmul.f32 0.01, %v521_v1 }
 0x14a   : > { %v585_v4 = vsel %vm553_vm10, %v521_v1, %v569_v2 }
 0x14b   : > { %v598_v5 = vpack.c.bf16 %v585_v4, %v584_v3 }
 0x14d   : > { %v523_v6 = vpop.f32.mrf.mxu1  ;;  %807 = vmatmul.msk.bf16.gmra.mxu2 %vm474_vm5, %v598_v5 }
 0x14e   : > { %v524_v7 = vadd.f32 %v974_v43, %v523_v6 }
 0x150   : > { %v570_v9 = vmul.f32 0.01, %v524_v7  ;;  %vm554_vm11 = vcmp.gt.f32.partialorder %v524_v7, 0.0 }
 0x152   : > { %v586_v12 = vsel %vm554_vm11, %v524_v7, %v570_v9 }
 0x155   : > { %v525_v8 = vpop.f32.mrf.mxu1 }
 0x156   : > { %v526_v10 = vadd.f32 %v974_v43, %v525_v8 }
 0x158   : > { %vm555_vm12 = vcmp.gt.f32.partialorder %v526_v10, 0.0  ;;  %v571_v11 = vmul.f32 0.01, %v526_v10 }
 0x15a   : > { %v587_v13 = vsel %vm555_vm12, %v526_v10, %v571_v11 }
 0x15b   : > { %v599_v14 = vpack.c.bf16 %v587_v13, %v586_v12 }
 0x15d   : > { %v528_v15 = vpop.f32.mrf.mxu1  ;;  %808 = vmatmul.msk.bf16.gmra.mxu2 %vm474_vm5, %v599_v14 }
 0x15e   : > { %v529_v16 = vadd.f32 %v974_v43, %v528_v15 }
 0x160   : > { %v572_v18 = vmul.f32 0.01, %v529_v16  ;;  %vm556_vm13 = vcmp.gt.f32.partialorder %v529_v16, 0.0 }
 0x162   : > { %v588_v21 = vsel %vm556_vm13, %v529_v16, %v572_v18 }
 0x165   : > { %v530_v17 = vpop.f32.mrf.mxu1 }
 0x166   : > { %v531_v19 = vadd.f32 %v974_v43, %v530_v17 }
 0x168   : > { %vm557_vm14 = vcmp.gt.f32.partialorder %v531_v19, 0.0  ;;  %v573_v20 = vmul.f32 0.01, %v531_v19 }
 0x16a   : > { %v589_v22 = vsel %vm557_vm14, %v531_v19, %v573_v20 }
 0x16b   : > { %v600_v23 = vpack.c.bf16 %v589_v22, %v588_v21 }
 0x16d   : > { %v533_v24 = vpop.f32.mrf.mxu1  ;;  %809 = vmatmul.msk.bf16.gmra.mxu2 %vm474_vm5, %v600_v23 }
 0x16e   : > { %v534_v25 = vadd.f32 %v974_v43, %v533_v24 }
 0x170   : > { %v574_v27 = vmul.f32 0.01, %v534_v25  ;;  %vm558_vm15 = vcmp.gt.f32.partialorder %v534_v25, 0.0 }
 0x172   : > { %v590_v30 = vsel %vm558_vm15, %v534_v25, %v574_v27 }
 0x175   : > { %v535_v26 = vpop.f32.mrf.mxu1 }
 0x176   : > { %v536_v28 = vadd.f32 %v974_v43, %v535_v26 }
 0x178   : > { %vm559_vm0 = vcmp.gt.f32.partialorder %v536_v28, 0.0  ;;  %v575_v29 = vmul.f32 0.01, %v536_v28 }
 0x17a   : > { %v591_v31 = vsel %vm559_vm0, %v536_v28, %v575_v29 }
 0x17b   : > { %v601_v33 = vpack.c.bf16 %v591_v31, %v590_v30 }
 0x17d   : > { %810 = vmatmul.msk.bf16.gmra.mxu2 %vm474_vm5, %v601_v33 }
 0x183   : > { %v538_v34 = vpop.f32.mrf.mxu3 }
 0x184   : > { %v539_v35 = vadd.f32 %v974_v43, %v538_v34 }
 0x186   : > { %v576_v37 = vmul.f32 0.01, %v539_v35  ;;  %vm560_vm1 = vcmp.gt.f32.partialorder %v539_v35, 0.0 }
 0x188   : > { %v592_v40 = vsel %vm560_vm1, %v539_v35, %v576_v37 }
 0x18b   : > { %v540_v36 = vpop.f32.mrf.mxu3 }
 0x18c   : > { %v541_v38 = vadd.f32 %v974_v43, %v540_v36 }
 0x18e   : > { %vm561_vm2 = vcmp.gt.f32.partialorder %v541_v38, 0.0  ;;  %v577_v39 = vmul.f32 0.01, %v541_v38 }
 0x190   : > { %v593_v41 = vsel %vm561_vm2, %v541_v38, %v577_v39 }
 0x191   : > { %v602_v42 = vpack.c.bf16 %v593_v41, %v592_v40 }
 0x193   : > { %v543_v32 = vpop.f32.mrf.mxu3  ;;  %811 = vmatmul.msk.bf16.vlgmr.msra.gmra.mxu3 %vm474_vm5, %v602_v42 }
 0x194   : > { %v544_v44 = vadd.f32 %v974_v43, %v543_v32 }
 0x196   : > { %v578_v46 = vmul.f32 0.01, %v544_v44  ;;  %vm562_vm3 = vcmp.gt.f32.partialorder %v544_v44, 0.0 }
 0x198   : > { %v594_v49 = vsel %vm562_vm3, %v544_v44, %v578_v46 }
 0x19b   : > { %v545_v45 = vpop.f32.mrf.mxu3 }
 0x19c   : > { %v546_v47 = vadd.f32 %v974_v43, %v545_v45 }
 0x19e   : > { %vm563_vm4 = vcmp.gt.f32.partialorder %v546_v47, 0.0  ;;  %v579_v48 = vmul.f32 0.01, %v546_v47 }
 0x1a0   : > { %v595_v50 = vsel %vm563_vm4, %v546_v47, %v579_v48 }
 0x1a1   : > { %v603_v51 = vpack.c.bf16 %v595_v50, %v594_v49 }
 0x1a3   : > { %812 = vmatmul.msk.bf16.gmra.mxu3 %vm474_vm5, %v603_v51 }
 0x1b0   : > { %v652_v43 = vpop.f32.mrf.mxu2 }
 0x1b1   : > { %v653_v53 = vadd.f32 %v835_v52, %v652_v43 }
 0x1b3   : > { %692 = vst.msk [vmem:[%s1008_s27] sm:$0xff] %vm474_vm5, %v653_v53 }
 0x1b8   : > { %v654_v54 = vpop.f32.mrf.mxu2 }
 0x1b9   : > { %v655_v55 = vadd.f32 %v835_v52, %v654_v54 }
 0x1bb   : > { %693 = vst.msk [vmem:[%s1008_s27 + $0x8] sm:$0xff] %vm474_vm5, %v655_v55 }
 0x1c0   : > { %v657_v56 = vpop.f32.mrf.mxu2 }
 0x1c1   : > { %v658_v57 = vadd.f32 %v835_v52, %v657_v56 }
 0x1c3   : > { %694 = vst.msk [vmem:[%s1008_s27 + $0x10] sm:$0xff] %vm474_vm5, %v658_v57 }
 0x1c8   : > { %v659_v58 = vpop.f32.mrf.mxu2 }
 0x1c9   : > { %v660_v59 = vadd.f32 %v835_v52, %v659_v58 }
 0x1cb   : > { %695 = vst.msk [vmem:[%s1008_s27 + $0x18] sm:$0xff] %vm474_vm5, %v660_v59 }
 0x1d0   : > { %v662_v60 = vpop.f32.mrf.mxu2 }
 0x1d1   : > { %v663_v61 = vadd.f32 %v835_v52, %v662_v60 }
 0x1d3   : > { %696 = vst.msk [vmem:[%s1008_s27 + $0x20] sm:$0xff] %vm474_vm5, %v663_v61 }
 0x1d8   : > { %v664_v62 = vpop.f32.mrf.mxu2 }
 0x1d9   : > { %v665_v63 = vadd.f32 %v835_v52, %v664_v62 }
 0x1db   : > { %697 = vst.msk [vmem:[%s1008_s27 + $0x28] sm:$0xff] %vm474_vm5, %v665_v63 }
 0x1e0   : > { %v667_v0 = vpop.f32.mrf.mxu2 }
 0x1e1   : > { %v668_v1 = vadd.f32 %v835_v52, %v667_v0 }
 0x1e3   : > { %698 = vst.msk [vmem:[%s1008_s27 + $0x30] sm:$0xff] %vm474_vm5, %v668_v1 }
 0x1e8   : > { %v669_v2 = vpop.f32.mrf.mxu2 }
 0x1e9   : > { %v670_v3 = vadd.f32 %v835_v52, %v669_v2 }
 0x1eb   : > { %699 = vst.msk [vmem:[%s1008_s27 + $0x38] sm:$0xff] %vm474_vm5, %v670_v3 }
 0x1f0   : > { %v672_v4 = vpop.f32.mrf.mxu2 }
 0x1f1   : > { %v673_v5 = vadd.f32 %v835_v52, %v672_v4 }
 0x1f3   : > { %700 = vst.msk [vmem:[%s1008_s27 + $0x40] sm:$0xff] %vm474_vm5, %v673_v5 }
 0x1f8   : > { %v674_v6 = vpop.f32.mrf.mxu2 }
 0x1f9   : > { %v675_v7 = vadd.f32 %v835_v52, %v674_v6 }
 0x1fb   : > { %701 = vst.msk [vmem:[%s1008_s27 + $0x48] sm:$0xff] %vm474_vm5, %v675_v7 }
 0x200   : > { %v677_v8 = vpop.f32.mrf.mxu2 }
 0x201   : > { %v678_v9 = vadd.f32 %v835_v52, %v677_v8 }
 0x203   : > { %702 = vst.msk [vmem:[%s1008_s27 + $0x50] sm:$0xff] %vm474_vm5, %v678_v9 }
 0x208   : > { %v679_v10 = vpop.f32.mrf.mxu2 }
 0x209   : > { %v680_v11 = vadd.f32 %v835_v52, %v679_v10 }
 0x20b   : > { %703 = vst.msk [vmem:[%s1008_s27 + $0x58] sm:$0xff] %vm474_vm5, %v680_v11 }
 0x216   : > { %v682_v12 = vpop.f32.mrf.mxu3 }
 0x217   : > { %v683_v13 = vadd.f32 %v835_v52, %v682_v12 }
 0x219   : > { %704 = vst.msk [vmem:[%s1008_s27 + $0x60] sm:$0xff] %vm474_vm5, %v683_v13 }
 0x21e   : > { %v684_v14 = vpop.f32.mrf.mxu3 }
 0x21f   : > { %v685_v15 = vadd.f32 %v835_v52, %v684_v14 }
 0x221   : > { %705 = vst.msk [vmem:[%s1008_s27 + $0x68] sm:$0xff] %vm474_vm5, %v685_v15 }
 0x226   : > { %v687_v16 = vpop.f32.mrf.mxu3 }
 0x227   : > { %v688_v17 = vadd.f32 %v835_v52, %v687_v16 }
 0x229   : > { %706 = vst.msk [vmem:[%s1008_s27 + $0x70] sm:$0xff] %vm474_vm5, %v688_v17 }
 0x22e   : > { %v689_v18 = vpop.f32.mrf.mxu3 }
 0x22f   : > { %v690_v19 = vadd.f32 %v835_v52, %v689_v18 }
 0x231   : > { %707 = vst.msk [vmem:[%s1008_s27 + $0x78] sm:$0xff] %vm474_vm5, %v690_v19 }
 0x232 PF: > { %s17_s24 = sadd.s32 1, %s842_s24  }
 0x233   : > { %p14_p4 = scmp.ge.s32.totalorder %s17_s24, 6  }
 0x235   :  { %16 = sbr.rel (!%p14_p4) target bundleno = 1 (0x1), region = 78 }

// kernel: forward_dynamics_pallas.12
= control target key start
LH: loop header
LB: loop body
LE: loop exit
PB: predicated region body
PF: predicated region fallthrough
CT: control target
= control target key end

     0   :  { %s690_s30 = smov 0   ;;  %s753_s0 = inlined_call_operand.vmem [shape: f32[48,32], index: 0, kind: input, shape index: {}]   ;;  %s754_s1 = inlined_call_operand.vmem [shape: f32[48,32], index: 1, kind: input, shape index: {}]   ;;  %s755_s2 = inlined_call_operand.vmem [shape: bf16[32,32], index: 2, kind: input, shape index: {}]   ;;  %s756_s3 = inlined_call_operand.vmem [shape: bf16[32,32], index: 3, kind: input, shape index: {}]   ;;  %s757_s4 = inlined_call_operand.vmem [shape: f32[1,32], index: 4, kind: input, shape index: {}]   ;;  %s758_s5 = inlined_call_operand.vmem [shape: bf16[32,32], index: 5, kind: input, shape index: {}]   ;;  %s759_s6 = inlined_call_operand.vmem [shape: f32[1,32], index: 6, kind: input, shape index: {}]   ;;  %s760_s7 = inlined_call_operand.vmem [shape: bf16[32,32], index: 7, kind: input, shape index: {}]   ;;  %s761_s8 = inlined_call_operand.vmem [shape: f32[1,32], index: 8, kind: input, shape index: {}]   ;;  %s762_s9 = inlined_call_operand.vmem [shape: f32[48,32], index: 9, kind: output, shape index: {}]  }
   0x1 LB: > { %s567_s10 = sadd.s32 4294967295, %s638_s30   ;;  %p571_p0 = scmp.ge.s32.totalorder %s638_s30, 1  ;;  %s638_s30 = sphi %s690_s30, %s19_s30  }
   0x2   : > { %p295_p1 = scmp.lt.s32.totalorder %s638_s30, 7 }
   0x4   : > { %p296_p2 = pnand %p571_p0, %p295_p1 }
   0x5   : > { %p333_p3 = scmp.lt.s32.totalorder (!%p296_p2), %s567_s10, 5 }
   0x6   : > { %299 = sbr.rel (%p296_p2) target bundleno = 434 (0x1b2), region = 56 }
   0xb   : > { %v616_v0 = vld [vmem:[%s756_s3 + $0x8] sm:$0xff]  ;;  %v615_v2 = vld [vmem:[%s756_s3] sm:$0xff]  ;;  %s764_s10 = smov (!%p333_p3, %s567_s10), 5  ;;  %vm370_vm0 = vcmask 261120  }
   0xc   : > { %v614_v1 = vld [vmem:[%s755_s2 + $0x8] sm:$0xff]  ;;  %380 = vmatpush.bf16.msra.mxu0 %v616_v0  ;;  %v613_v3 = vld [vmem:[%s755_s2] sm:$0xff]  ;;  %s710_s19 = sshll.u32 %s764_s10, 3 }
   0xd   : > { %408 = vmatpush.bf16.msra.mxu1 %v614_v1  ;;  %s340_s22 = scalar_lea.vmem %s754_s1, %s710_s19  ;;  %s336_s25 = scalar_lea.vmem %s753_s0, %s710_s19  ;;  %v618_v8 = vld [vmem:[%s758_s5 + $0x8] sm:$0xff]  ;;  %v617_v9 = vld [vmem:[%s758_s5] sm:$0xff] }
   0xe   : > { %v352_v4 = vld [vmem:[%s340_s22] sm:$0xff]  ;;  %453 = vmatpush.bf16.msra.mxu2 %v618_v8  ;;  %v620_v20 = vld [vmem:[%s760_s7 + $0x8] sm:$0xff]  ;;  %s344_s23 = scalar_lea.vmem %s762_s9, %s710_s19 }
   0xf   : > { %v353_v5 = vpack.c.bf16 %v352_v4, %v352_v4  ;;  %v346_v6 = vld [vmem:[%s336_s25] sm:$0xff]  ;;  %493 = vmatpush.bf16.msra.mxu3 %v620_v20 }
  0x10   : > { %381 = vmatpush.bf16.msra.mxu0 %v615_v2  ;;  %v347_v7 = vpack.c.bf16 %v346_v6, %v346_v6  ;;  %v629_v11 = vld [vmem:[%s757_s4] ss:$0 sm:$0xff] }
  0x11   : > { %409 = vmatpush.bf16.msra.mxu1 %v613_v3  ;;  %v619_v21 = vld [vmem:[%s760_s7] sm:$0xff] }
  0x12   : > { %454 = vmatpush.bf16.msra.mxu2 %v617_v9  ;;  %v630_v22 = vld [vmem:[%s759_s6] ss:$0 sm:$0xff] }
  0x13   : > { %583 = vmatmul.msk.bf16.vlgmr.msra.gmra.mxu0 %vm370_vm0, %v353_v5  ;;  %494 = vmatpush.bf16.msra.mxu3 %v619_v21  ;;  %v631_v29 = vld [vmem:[%s761_s8] ss:$0 sm:$0xff] }
  0x14   : > { %592 = vmatmul.msk.bf16.vlgmr.msra.gmra.mxu1 %vm370_vm0, %v347_v7 }
  0x90   : > { %v383_v10 = vpop.f32.mrf.mxu0 }
  0x91   : > { %v411_v12 = vpop.f32.mrf.mxu1 }
  0x92   : > { %v412_v13 = vadd.f32 %v411_v12, %v383_v10 }
  0x94   : > { %v419_v14 = vadd.f32 %v629_v11, %v412_v13 }
  0x96   : > { %v421_v15 = vmul.f32 0.01, %v419_v14  ;;  %vm420_vm1 = vcmp.gt.f32.partialorder %v419_v14, 0.0 }
  0x98   : > { %v385_v16 = vpop.f32.mrf.mxu0  ;;  %v422_v17 = vsel %vm420_vm1, %v419_v14, %v421_v15 }
  0x99   : > { %v413_v18 = vpop.f32.mrf.mxu1  ;;  %v423_v19 = vpack.c.bf16 %v422_v17, %v422_v17 }
  0x9b   : > { %601 = vmatmul.msk.bf16.vlgmr.msra.gmra.mxu2 %vm370_vm0, %v423_v19 }
 0x11e   : > { %v456_v23 = vpop.f32.mrf.mxu2 }
 0x11f   : > { %v457_v24 = vadd.f32 %v630_v22, %v456_v23 }
 0x121   : > { %vm460_vm2 = vcmp.gt.f32.partialorder %v457_v24, 0.0  ;;  %v461_v25 = vmul.f32 0.01, %v457_v24 }
 0x123   : > { %v462_v26 = vsel %vm460_vm2, %v457_v24, %v461_v25 }
 0x124   : > { %v463_v27 = vpack.c.bf16 %v462_v26, %v462_v26 }
 0x126   : > { %v458_v28 = vpop.f32.mrf.mxu2  ;;  %610 = vmatmul.msk.bf16.vlgmr.msra.gmra.mxu3 %vm370_vm0, %v463_v27 }
 0x1a9   : > { %v496_v30 = vpop.f32.mrf.mxu3 }
 0x1aa   : > { %v497_v31 = vadd.f32 %v631_v29, %v496_v30 }
 0x1ac   : > { %v500_v32 = vadd.f32 %v497_v31, %v346_v6 }
 0x1ae   : > { %501 = vst.msk [vmem:[%s344_s23] sm:$0xff] %vm370_vm0, %v500_v32 }
 0x1b1   : > { %v498_v33 = vpop.f32.mrf.mxu3 }
 0x1b2 PF: > { %s19_s30 = sadd.s32 1, %s638_s30  }
 0x1b3   : > { %p16_p4 = scmp.ge.s32.totalorder %s19_s30, 8  }
 0x1b5   :  { %18 = sbr.rel (!%p16_p4) target bundleno = 1 (0x1), region = 89 }

// kernel: forward_dynamics_pallas.11
= control target key start
LH: loop header
LB: loop body
LE: loop exit
PB: predicated region body
PF: predicated region fallthrough
CT: control target
= control target key end

     0   :  { %s2507_s18 = smov 0   ;;  %s2509_s19 = smov 0   ;;  %s3147_s0 = inlined_call_operand.vmem [shape: bf16[48,32], index: 0, kind: input, shape index: {}]   ;;  %s3148_s1 = inlined_call_operand.vmem [shape: f32[512,32], index: 1, kind: input, shape index: {}]   ;;  %s3149_s2 = inlined_call_operand.vmem [shape: s32[512,1], index: 2, kind: input, shape index: {}]   ;;  %s3150_s3 = inlined_call_operand.vmem [shape: s32[512,1], index: 3, kind: input, shape index: {}]   ;;  %s3151_s4 = inlined_call_operand.vmem [shape: s32[1,512], index: 4, kind: input, shape index: {}]   ;;  %s3152_s5 = inlined_call_operand.vmem [shape: f32[512,1], index: 5, kind: input, shape index: {}]   ;;  %s3153_s6 = inlined_call_operand.vmem [shape: bf16[32,32], index: 6, kind: input, shape index: {}]   ;;  %s3154_s7 = inlined_call_operand.vmem [shape: bf16[32,32], index: 7, kind: input, shape index: {}]   ;;  %s3155_s8 = inlined_call_operand.vmem [shape: bf16[32,32], index: 8, kind: input, shape index: {}]   ;;  %s3156_s9 = inlined_call_operand.vmem [shape: f32[1,32], index: 9, kind: input, shape index: {}]   ;;  %s3157_s10 = inlined_call_operand.vmem [shape: bf16[32,32], index: 10, kind: input, shape index: {}]   ;;  %s3158_s11 = inlined_call_operand.vmem [shape: f32[1,32], index: 11, kind: input, shape index: {}]   ;;  %s3159_s12 = inlined_call_operand.vmem [shape: bf16[32,32], index: 12, kind: input, shape index: {}]   ;;  %s3160_s13 = inlined_call_operand.vmem [shape: f32[1,32], index: 13, kind: input, shape index: {}]   ;;  %s3161_s14 = inlined_call_operand.vmem [shape: f32[512,32], index: 14, kind: output, shape index: {0}]   ;;  %s3162_s15 = inlined_call_operand.vmem [shape: f32[2,48,32], index: 15, kind: output, shape index: {1}]  }
   0x1   :  { %3167 = sst [smem:[#allocation7_spill]] %s3148_s1  ;;  %s2511_s20 = smov 0  }
   0x2   :  { %3168 = sst [smem:[#allocation8_spill]] %s3158_s11  ;;  %s2513_s21 = smov 0  }
   0x3   :  { %3169 = sst [smem:[#allocation9_spill]] %s3159_s12  ;;  %s2515_s22 = smov 0  }
   0x4   :  { %3170 = sst [smem:[#allocation10_spill]] %s3160_s13 }
   0x5 LB: > { %3171 = sst [smem:[#allocation2_spill]] %s2413_s20  ;;  %s35_s23 = sadd.s32 1, %s2413_s20  ;;  %s2421_s22 = sphi %s2515_s22, %s26_s22   ;;  %s2417_s21 = sphi %s2513_s21, %s3185_s21   ;;  %s2413_s20 = sphi %s2511_s20, %s3184_s20   ;;  %s2409_s19 = sphi %s2509_s19, %s3183_s19   ;;  %s2405_s18 = sphi %s2507_s18, %s3182_s18  }
   0x6   : > { %3172 = sst [smem:[#allocation3_spill]] %s2417_s21  ;;  %s38_s24 = sadd.s32 1, %s2417_s21 }
   0x7   : > { %3173 = sst [smem:[#allocation4_spill]] %s2421_s22  ;;  %p36_p0 = scmp.ge.s32.totalorder %s35_s23, 2 }
   0x8   : > { %p2142_p1 = scmp.ge.s32.totalorder %s2421_s22, 1  ;;  %p538_p2 = scmp.lt.s32.totalorder %s2421_s22, 5 }
   0x9   : > { %s3187_s23 = smov (%p36_p0, %s35_s23), 0  ;;  %s3189_s24 = smov (!%p36_p0, %s38_s24), %s2417_s21 }
   0xa   : > { %3174 = sst [smem:[#allocation5_spill]] %s3187_s23  ;;  %p539_p3 = pnand %p2142_p1, %p538_p2 }
   0xb   : > { %p40_p4 = scmp.ge.s32.totalorder %s3189_s24, 2  ;;  %s2143_s25 = sshll.u32 (!%p539_p3), %s2409_s19, 1 }
   0xc   : > { %542 = sbr.rel (%p539_p3) target bundleno = 1192 (0x4a8), region = 76  ;;  %s622_s26 = sadd.s32 (!%p539_p3), %s2405_s18, %s2143_s25 }
   0xd   : > { %s3191_s24 = smov (%p40_p4, %s3189_s24), 0  ;;  %s2144_s27 = sshll.u32 (!%p539_p3), %s622_s26, 4 }
   0xe   : > { %3175 = sst [smem:[#allocation6_spill]] %s3191_s24  ;;  %p653_p5 = scmp.lt.s32.totalorder (!%p539_p3), %s622_s26, 3 }
   0xf   : > { %p624_p6 = scmp.lt.s32.totalorder (!%p539_p3), %s2144_s27, 63  ;;  %p678_p7 = scmp.lt.s32.totalorder (!%p539_p3), %s2409_s19, 1 }
  0x10   : > { %s3176_s1 = sld [smem:[#allocation7_spill]] (!%p539_p3)  ;;  %p2160_p8 = scmp.ne.s32.totalorder (!%p539_p3), %s2405_s18, 0 }
  0x11   : > { %s3193_s26 = smov (!%p653_p5, %s622_s26), 3  ;;  %s3195_s27 = smov (!%p624_p6, %s2144_s27), 63 }
  0x12   : > { %s2145_s16 = sshll.u32 %s3195_s27, 3  ;;  %s3197_s19 = smov (!%p678_p7, %s2409_s19), 1 }
  0x13   : > { %s2558_s20 = scalar_lea.vmem %s3149_s2, %s2145_s16  ;;  %s2563_s11 = scalar_lea.vmem %s3150_s3, %s2145_s16 }
  0x14   : > { %s2568_s27 = scalar_lea.vmem %s3152_s5, %s2145_s16  ;;  %s2573_s24 = scalar_lea.vmem %s3161_s14, %s2145_s16 }
  0x15   : > { %s2331_s17 = smul.u32 48, %s3197_s19 }
  0x16   : > { %s2553_s23 = scalar_lea.vmem %s3176_s1, %s2145_s16  ;;  %687 = sbr.rel (%p2160_p8) target bundleno = 34 (0x22), region = 80 }
  0x17   : > { %s2579_s1 = scalar_lea.vmem %s3162_s15, %s2331_s17 }
  0x1b   : > { %vm688_vm0 = vcmask 261120   ;;  %v2423_v0 = vmov 0.0  }
  0x1c   : > { %689 = vst.msk [vmem:[%s2579_s1] sm:$0xff] %vm688_vm0, %v2423_v0 }
  0x1d   : > { %690 = vst.msk [vmem:[%s2579_s1 + $0x8] sm:$0xff] %vm688_vm0, %v2423_v0 }
  0x1e   : > { %691 = vst.msk [vmem:[%s2579_s1 + $0x10] sm:$0xff] %vm688_vm0, %v2423_v0 }
  0x1f   : > { %692 = vst.msk [vmem:[%s2579_s1 + $0x18] sm:$0xff] %vm688_vm0, %v2423_v0 }
  0x20   : > { %693 = vst.msk [vmem:[%s2579_s1 + $0x20] sm:$0xff] %vm688_vm0, %v2423_v0 }
  0x21   : > { %694 = vst.msk [vmem:[%s2579_s1 + $0x28] sm:$0xff] %vm688_vm0, %v2423_v0 }
  0x22 PF: > { %v825_v1 = vld [vmem:[%s2558_s20 + $0x10] sm:$0xff]  ;;  %v823_v2 = vld [vmem:[%s2558_s20] sm:$0xff]  ;;  %v2424_v4 = vmov 0   ;;  %v826_v5 = vld [vmem:[%s2558_s20 + $0x18] sm:$0xff]  ;;  %v701_v52 = vlaneseq  ;;  %v2425_v62 = vmov 0.0   ;;  %vm961_vm3 = vcmask 392192  }
  0x23   : > { %v717_v3 = vld [vmem:[%s2563_s11 + $0x70] sm:$0xff]  ;;  %2378 = vset.pattern.permute.xlu2 %v2424_v4  ;;  %2377 = vset.pattern.permute.xlu1 %v2424_v4  ;;  %v824_v6 = vld [vmem:[%s2558_s20 + $0x8] sm:$0xff]  ;;  %v718_v7 = vld [vmem:[%s2563_s11 + $0x78] sm:$0xff]  ;;  %s3178_s12 = sld [smem:[#allocation8_spill]] }
  0x24   : > { %2376 = vset.pattern.permute.xlu0 %v2424_v4  ;;  %846 = vperm.xlu2 %2378, %v825_v1   ;;  %v829_v8 = vld [vmem:[%s2558_s20 + $0x30] sm:$0xff]  ;;  %v828_v9 = vld [vmem:[%s2558_s20 + $0x28] sm:$0xff]  ;;  %v827_v10 = vld [vmem:[%s2558_s20 + $0x20] sm:$0xff]  ;;  %v2644_v56 = vand.u32 127, %v701_v52  ;;  %s3179_s19 = sld [smem:[#allocation10_spill]] }
  0x25   : > { %840 = vperm.xlu1 %2377, %v823_v2   ;;  %762 = vperm.xlu0 %2376, %v717_v3   ;;  %v832_v11 = vld [vmem:[%s2558_s20 + $0x48] sm:$0xff]  ;;  %v831_v12 = vld [vmem:[%s2558_s20 + $0x40] sm:$0xff]  ;;  %v830_v13 = vld [vmem:[%s2558_s20 + $0x38] sm:$0xff] }
  0x26   : > { %v835_v14 = vld [vmem:[%s2558_s20 + $0x60] sm:$0xff]  ;;  %v834_v15 = vld [vmem:[%s2558_s20 + $0x58] sm:$0xff]  ;;  %v833_v16 = vld [vmem:[%s2558_s20 + $0x50] sm:$0xff] }
  0x27   : > { %v838_v17 = vld [vmem:[%s2558_s20 + $0x78] sm:$0xff]  ;;  %v837_v18 = vld [vmem:[%s2558_s20 + $0x70] sm:$0xff]  ;;  %v836_v19 = vld [vmem:[%s2558_s20 + $0x68] sm:$0xff]  ;;  %s3180_s20 = scalar_lea.vmem %s3151_s4, %s3193_s26 }
  0x28   : > { %v705_v20 = vld [vmem:[%s2563_s11 + $0x10] sm:$0xff]  ;;  %v704_v21 = vld [vmem:[%s2563_s11 + $0x8] sm:$0xff]  ;;  %v703_v22 = vld [vmem:[%s2563_s11] sm:$0xff] }
  0x29   : > { %v708_v23 = vld [vmem:[%s2563_s11 + $0x28] sm:$0xff]  ;;  %v707_v24 = vld [vmem:[%s2563_s11 + $0x20] sm:$0xff]  ;;  %v706_v25 = vld [vmem:[%s2563_s11 + $0x18] sm:$0xff] }
  0x2a   : > { %v711_v26 = vld [vmem:[%s2563_s11 + $0x40] sm:$0xff]  ;;  %v710_v27 = vld [vmem:[%s2563_s11 + $0x38] sm:$0xff]  ;;  %v709_v28 = vld [vmem:[%s2563_s11 + $0x30] sm:$0xff] }
  0x2b   : > { %v714_v29 = vld [vmem:[%s2563_s11 + $0x58] sm:$0xff]  ;;  %v713_v30 = vld [vmem:[%s2563_s11 + $0x50] sm:$0xff]  ;;  %v712_v31 = vld [vmem:[%s2563_s11 + $0x48] sm:$0xff] }
  0x2c   : > { %849 = vperm.xlu2 %2378, %v826_v5   ;;  %v1826_v32 = vld [vmem:[%s2568_s27 + $0x70] sm:$0xff]  ;;  %v716_v33 = vld [vmem:[%s2563_s11 + $0x68] sm:$0xff]  ;;  %v715_v34 = vld [vmem:[%s2563_s11 + $0x60] sm:$0xff] }
  0x2d   : > { %843 = vperm.xlu1 %2377, %v824_v6   ;;  %765 = vperm.xlu0 %2376, %v718_v7   ;;  %v2317_v35 = vld [vmem:[%s3147_s0 + $0x10] sm:$0xff]  ;;  %v1825_v36 = vld [vmem:[%s2568_s27 + $0x68] sm:$0xff]  ;;  %v1824_v37 = vld [vmem:[%s2568_s27 + $0x60] sm:$0xff] }
  0x2e   : > { %2328 = vmatpush.bf16.msra.mxu1 %v2317_v35  ;;  %991 = vmatpush.bf16.msra.mxu0 %v2317_v35  ;;  %v1827_v38 = vld [vmem:[%s2568_s27 + $0x78] sm:$0xff]  ;;  %v2316_v39 = vld [vmem:[%s3147_s0 + $0x8] sm:$0xff]  ;;  %v2315_v40 = vld [vmem:[%s3147_s0] sm:$0xff] }
  0x2f   : > { %v1820_v41 = vld [vmem:[%s2568_s27 + $0x40] sm:$0xff]  ;;  %v1823_v42 = vld [vmem:[%s2568_s27 + $0x58] sm:$0xff]  ;;  %v1822_v43 = vld [vmem:[%s2568_s27 + $0x50] sm:$0xff] }
  0x30   : > { %v1819_v44 = vld [vmem:[%s2568_s27 + $0x38] sm:$0xff]  ;;  %v1818_v46 = vld [vmem:[%s2568_s27 + $0x30] sm:$0xff]  ;;  %v1821_v47 = vld [vmem:[%s2568_s27 + $0x48] sm:$0xff] }
  0x31   : > { %v1814_v48 = vld [vmem:[%s2568_s27 + $0x10] sm:$0xff]  ;;  %v1817_v49 = vld [vmem:[%s2568_s27 + $0x28] sm:$0xff]  ;;  %v1816_v50 = vld [vmem:[%s2568_s27 + $0x20] sm:$0xff] }
  0x32   : > { %2329 = vmatpush.bf16.msra.mxu1 %v2316_v39  ;;  %992 = vmatpush.bf16.msra.mxu0 %v2316_v39  ;;  %v1813_v55 = vld [vmem:[%s2568_s27 + $0x8] sm:$0xff]  ;;  %v1812_v57 = vld [vmem:[%s2568_s27] sm:$0xff]  ;;  %v1815_v58 = vld [vmem:[%s2568_s27 + $0x18] sm:$0xff]  ;;  %s3177_s27 = sld [smem:[#allocation9_spill]] }
  0x34   : > { %858 = vperm.xlu2 %2378, %v829_v8  }
  0x35   : > { %855 = vperm.xlu1 %2377, %v828_v9   ;;  %852 = vperm.xlu0 %2376, %v827_v10  }
  0x36   : > { %2330 = vmatpush.bf16.msra.mxu1 %v2315_v40  ;;  %993 = vmatpush.bf16.msra.mxu0 %v2315_v40 }
  0x3a   : > { %1064 = vmatpush.bf16.msrb.mxu1 %v2317_v35 }
  0x3c   : > { %867 = vperm.xlu2 %2378, %v832_v11  }
  0x3d   : > { %864 = vperm.xlu1 %2377, %v831_v12   ;;  %861 = vperm.xlu0 %2376, %v830_v13  }
  0x3e   : > { %1065 = vmatpush.bf16.msrb.mxu1 %v2316_v39 }
  0x42   : > { %1066 = vmatpush.bf16.msrb.mxu1 %v2315_v40 }
  0x44   : > { %876 = vperm.xlu2 %2378, %v835_v14  }
  0x45   : > { %873 = vperm.xlu1 %2377, %v834_v15   ;;  %870 = vperm.xlu0 %2376, %v833_v16  }
  0x4c   : > { %885 = vperm.xlu2 %2378, %v838_v17  }
  0x4d   : > { %882 = vperm.xlu1 %2377, %v837_v18   ;;  %879 = vperm.xlu0 %2376, %v836_v19  }
  0x54   : > { %726 = vperm.xlu2 %2378, %v705_v20  }
  0x55   : > { %723 = vperm.xlu1 %2377, %v704_v21   ;;  %720 = vperm.xlu0 %2376, %v703_v22  }
  0x5c   : > { %735 = vperm.xlu2 %2378, %v708_v23  }
  0x5d   : > { %732 = vperm.xlu1 %2377, %v707_v24   ;;  %729 = vperm.xlu0 %2376, %v706_v25  }
  0x64   : > { %744 = vperm.xlu2 %2378, %v711_v26  }
  0x65   : > { %741 = vperm.xlu1 %2377, %v710_v27   ;;  %738 = vperm.xlu0 %2376, %v709_v28  }
  0x6c   : > { %753 = vperm.xlu2 %2378, %v714_v29  }
  0x6d   : > { %750 = vperm.xlu1 %2377, %v713_v30   ;;  %747 = vperm.xlu0 %2376, %v712_v31  }
  0x74   : > { %1900 = vperm.xlu2 %2378, %v1826_v32  }
  0x75   : > { %759 = vperm.xlu1 %2377, %v716_v33   ;;  %756 = vperm.xlu0 %2376, %v715_v34  }
  0x7c   : > { %1895 = vperm.xlu2 %2378, %v1825_v36  }
  0x7d   : > { %1890 = vperm.xlu1 %2377, %v1824_v37   ;;  %1905 = vperm.xlu0 %2376, %v1827_v38  }
  0x7e   : > { %v847_v45 = vpop.permute.xlu2 %846 }
  0x7f   : > { %vm889_vm8 = vcmp.eq.s32.totalorder %v2644_v56, %v847_v45 }
  0x80   : > { %v2179_v17 = vsel %vm889_vm8, 1.0, %v2425_v62 }
  0x84   : > { %1870 = vperm.xlu2 %2378, %v1820_v41  }
  0x85   : > { %1885 = vperm.xlu1 %2377, %v1823_v42   ;;  %1880 = vperm.xlu0 %2376, %v1822_v43  }
  0x86   : > { %v850_v51 = vpop.permute.xlu2 %849 }
  0x87   : > { %vm890_vm9 = vcmp.eq.s32.totalorder %v2644_v56, %v850_v51 }
  0x88   : > { %v2180_v18 = vsel %vm890_vm9, 1.0, %v2425_v62 }
  0x89   : > { %v936_v25 = vpack.c.bf16 %v2180_v18, %v2179_v17 }
  0x8c   : > { %1865 = vperm.xlu2 %2378, %v1819_v44  }
  0x8d   : > { %1860 = vperm.xlu1 %2377, %v1818_v46   ;;  %1875 = vperm.xlu0 %2376, %v1821_v47  }
  0x8e   : > { %v2648_v59 = vpop.permute.xlu2 %858 }
  0x94   : > { %1840 = vperm.xlu2 %2378, %v1814_v48  }
  0x95   : > { %1855 = vperm.xlu1 %2377, %v1817_v49   ;;  %1850 = vperm.xlu0 %2376, %v1816_v50  }
  0x96   : > { %v2655_v4 = vpop.permute.xlu2 %867 }
  0x97   : > { %v841_v53 = vpop.permute.xlu1 %840  ;;  %v763_v54 = vpop.permute.xlu0 %762  ;;  %vm896_vm9 = vcmp.eq.s32.totalorder %v2644_v56, %v2655_v4 }
  0x98   : > { %vm781_vm1 = vcmp.eq.s32.totalorder %v2644_v56, %v763_v54  ;;  %vm887_vm4 = vcmp.eq.s32.totalorder %v2644_v56, %v841_v53  ;;  %v2186_v49 = vsel %vm896_vm9, 1.0, %v2425_v62 }
  0x99   : > { %v2175_v63 = vsel %vm781_vm1, 1.0, %v2425_v62  ;;  %v2177_v5 = vsel %vm887_vm4, 1.0, %v2425_v62 }
  0x9c   : > { %1835 = vperm.xlu2 %2378, %v1813_v55  }
  0x9d   : > { %1830 = vperm.xlu1 %2377, %v1812_v57   ;;  %1845 = vperm.xlu0 %2376, %v1815_v58  }
  0x9e   : > { %v877_v10 = vpop.permute.xlu2 %876 }
  0x9f   : > { %v844_v60 = vpop.permute.xlu1 %843  ;;  %v766_v61 = vpop.permute.xlu0 %765  ;;  %vm899_vm10 = vcmp.eq.s32.totalorder %v2644_v56, %v877_v10 }
  0xa0   : > { %vm782_vm2 = vcmp.eq.s32.totalorder %v2644_v56, %v766_v61  ;;  %vm888_vm5 = vcmp.eq.s32.totalorder %v2644_v56, %v844_v60  ;;  %v2683_v21 = vsel %vm899_vm10, 1.0, %v2425_v62 }
  0xa1   : > { %v2176_v0 = vsel %vm782_vm2, 1.0, %v2425_v62  ;;  %v2178_v6 = vsel %vm888_vm5, 1.0, %v2425_v62  ;;  %vm893_vm5 = vcmp.eq.s32.totalorder %v2644_v56, %v2648_v59 }
  0xa2   : > { %v822_v1 = vpack.c.bf16 %v2176_v0, %v2175_v63  ;;  %v935_v9 = vpack.c.bf16 %v2178_v6, %v2177_v5  ;;  %v2183_v41 = vsel %vm893_vm5, 1.0, %v2425_v62  ;;  %v2320_v5 = vld [vmem:[%s3154_s7] sm:$0xff] }
  0xa4   : > { %2212 = vmatmul.msk.bf16.vlgmr.msra.gmra.mxu1 %vm961_vm3, %v822_v1 }
  0xa6   : > { %v886_v16 = vpop.permute.xlu2 %885 }
  0xa7   : > { %v856_v2 = vpop.permute.xlu1 %855  ;;  %v853_v3 = vpop.permute.xlu0 %852  ;;  %vm902_vm11 = vcmp.eq.s32.totalorder %v2644_v56, %v886_v16  ;;  %v2319_v16 = vld [vmem:[%s3153_s6 + $0x8] sm:$0xff] }
  0xa8   : > { %v2686_v22 = vsel %vm902_vm11, 1.0, %v2425_v62  ;;  %vm892_vm0 = vcmp.eq.s32.totalorder %v2644_v56, %v856_v2  ;;  %vm891_vm1 = vcmp.eq.s32.totalorder %v2644_v56, %v853_v3  ;;  %v2321_v2 = vld [vmem:[%s3154_s7 + $0x8] sm:$0xff]  ;;  %1276 = vmatpush.bf16.msra.mxu3 %v2319_v16  ;;  %v2841_v16 = vld [vmem:[%s2553_s23 + $0x30] sm:$0xff] }
  0xa9   : > { %v2182_v33 = vsel %vm892_vm0, 1.0, %v2425_v62  ;;  %v2181_v34 = vsel %vm891_vm1, 1.0, %v2425_v62  ;;  %1191 = vmatpush.bf16.msra.mxu2 %v2321_v2  ;;  %v2804_v2 = vld [vmem:[%s2553_s23] sm:$0xff] }
  0xaa   : > { %v937_v36 = vpack.c.bf16 %v2182_v33, %v2181_v34 }
  0xad   : > { %1192 = vmatpush.bf16.msra.mxu2 %v2320_v5 }
  0xae   : > { %v727_v37 = vpop.permute.xlu2 %726 }
  0xaf   : > { %v2661_v7 = vpop.permute.xlu1 %864  ;;  %v862_v8 = vpop.permute.xlu0 %861  ;;  %vm769_vm4 = vcmp.eq.s32.totalorder %v2644_v56, %v727_v37 }
  0xb0   : > { %v2163_v39 = vsel %vm769_vm4, 1.0, %v2425_v62  ;;  %vm895_vm10 = vcmp.eq.s32.totalorder %v2644_v56, %v2661_v7  ;;  %vm1160_vm4 = vcmask 261120  }
  0xb1   : > { %v2185_v50 = vsel %vm895_vm10, 1.0, %v2425_v62 }
  0xb2   : > { %v939_v54 = vpack.c.bf16 %v2186_v49, %v2185_v50 }
  0xb4   : > { %2213 = vmatmul.msk.bf16.vlgmr.msrb.gmra.mxu1 %vm961_vm3, %v935_v9 }
  0xb6   : > { %v736_v45 = vpop.permute.xlu2 %735 }
  0xb7   : > { %v874_v11 = vpop.permute.xlu1 %873  ;;  %v871_v12 = vpop.permute.xlu0 %870  ;;  %vm772_vm8 = vcmp.eq.s32.totalorder %v2644_v56, %v736_v45 }
  0xb8   : > { %vm898_vm6 = vcmp.eq.s32.totalorder %v2644_v56, %v874_v11  ;;  %vm897_vm7 = vcmp.eq.s32.totalorder %v2644_v56, %v871_v12  ;;  %v2166_v47 = vsel %vm772_vm8, 1.0, %v2425_v62 }
  0xb9   : > { %v2667_v13 = vsel %vm898_vm6, 1.0, %v2425_v62  ;;  %v2670_v14 = vsel %vm897_vm7, 1.0, %v2425_v62  ;;  %vm894_vm6 = vcmp.eq.s32.totalorder %v2644_v56, %v862_v8 }
  0xba   : > { %v940_v15 = vpack.c.bf16 %v2667_v13, %v2670_v14  ;;  %v2184_v42 = vsel %vm894_vm6, 1.0, %v2425_v62 }
  0xbb   : > { %v938_v44 = vpack.c.bf16 %v2184_v42, %v2183_v41  ;;  %v2323_v41 = vld [vmem:[%s3155_s8 + $0x8] sm:$0xff] }
  0xbc   : > { %1373 = vmatpush.bf16.msrb.mxu2 %v2323_v41  ;;  %v2324_v41 = vld [vmem:[%s3157_s10] sm:$0xff] }
  0xbe   : > { %v745_v60 = vpop.permute.xlu2 %744 }
  0xbf   : > { %v883_v19 = vpop.permute.xlu1 %882  ;;  %v880_v20 = vpop.permute.xlu0 %879 }
  0xc0   : > { %vm901_vm12 = vcmp.eq.s32.totalorder %v2644_v56, %v883_v19  ;;  %vm900_vm13 = vcmp.eq.s32.totalorder %v2644_v56, %v880_v20 }
  0xc1   : > { %v2689_v23 = vsel %vm901_vm12, 1.0, %v2425_v62  ;;  %v2692_v24 = vsel %vm900_vm13, 1.0, %v2425_v62 }
  0xc2   : > { %v942_v26 = vpack.c.bf16 %v2686_v22, %v2689_v23  ;;  %v941_v27 = vpack.c.bf16 %v2692_v24, %v2683_v21 }
  0xc4   : > { %2214 = vmatmul.msk.bf16.gmra.mxu1 %vm961_vm3, %v936_v25 }
  0xc6   : > { %v754_v3 = vpop.permute.xlu2 %753 }
  0xc7   : > { %v724_v28 = vpop.permute.xlu1 %723  ;;  %v721_v29 = vpop.permute.xlu0 %720  ;;  %vm778_vm0 = vcmp.eq.s32.totalorder %v2644_v56, %v754_v3  ;;  %v2807_v3 = vld [vmem:[%s2553_s23 + $0x8] sm:$0xff] }
  0xc8   : > { %vm768_vm14 = vcmp.eq.s32.totalorder %v2644_v56, %v724_v28  ;;  %vm767_vm15 = vcmp.eq.s32.totalorder %v2644_v56, %v721_v29  ;;  %v2172_v6 = vsel %vm778_vm0, 1.0, %v2425_v62 }
  0xc9   : > { %v2162_v30 = vsel %vm768_vm14, 1.0, %v2425_v62  ;;  %v2161_v31 = vsel %vm767_vm15, 1.0, %v2425_v62  ;;  %vm775_vm14 = vcmp.eq.s32.totalorder %v2644_v56, %v745_v60 }
  0xca   : > { %v815_v32 = vpack.c.bf16 %v2162_v30, %v2161_v31  ;;  %v2169_v63 = vsel %vm775_vm14, 1.0, %v2425_v62 }
  0xcc   : > { %2205 = vmatmul.msk.bf16.vlgmr.msra.gmra.mxu0 %vm961_vm3, %v815_v32 }
  0xcf   : > { %v730_v35 = vpop.permute.xlu0 %729  ;;  %v733_v43 = vpop.permute.xlu1 %732 }
  0xd0   : > { %vm770_vm2 = vcmp.eq.s32.totalorder %v2644_v56, %v730_v35  ;;  %vm771_vm7 = vcmp.eq.s32.totalorder %v2644_v56, %v733_v43 }
  0xd1   : > { %v2164_v38 = vsel %vm770_vm2, 1.0, %v2425_v62  ;;  %v2165_v46 = vsel %vm771_vm7, 1.0, %v2425_v62 }
  0xd2   : > { %v816_v40 = vpack.c.bf16 %v2164_v38, %v2163_v39  ;;  %v817_v48 = vpack.c.bf16 %v2166_v47, %v2165_v46 }
  0xd4   : > { %2215 = vmatmul.msk.bf16.gmra.mxu1 %vm961_vm3, %v937_v36 }
  0xd7   : > { %v742_v51 = vpop.permute.xlu1 %741  ;;  %v739_v53 = vpop.permute.xlu0 %738 }
  0xd8   : > { %vm774_vm11 = vcmp.eq.s32.totalorder %v2644_v56, %v742_v51  ;;  %vm773_vm12 = vcmp.eq.s32.totalorder %v2644_v56, %v739_v53  ;;  %v2322_v51 = vld [vmem:[%s3155_s8] sm:$0xff] }
  0xd9   : > { %v2168_v55 = vsel %vm774_vm11, 1.0, %v2425_v62  ;;  %v2167_v57 = vsel %vm773_vm12, 1.0, %v2425_v62  ;;  %1374 = vmatpush.bf16.msrb.mxu2 %v2322_v51 }
  0xda   : > { %v818_v58 = vpack.c.bf16 %v2168_v55, %v2167_v57 }
  0xdc   : > { %2206 = vmatmul.msk.bf16.gmra.mxu0 %vm961_vm3, %v816_v40 }
  0xdf   : > { %v748_v59 = vpop.permute.xlu0 %747  ;;  %v751_v1 = vpop.permute.xlu1 %750 }
  0xe0   : > { %vm776_vm13 = vcmp.eq.s32.totalorder %v2644_v56, %v748_v59  ;;  %vm777_vm15 = vcmp.eq.s32.totalorder %v2644_v56, %v751_v1 }
  0xe1   : > { %v2170_v61 = vsel %vm776_vm13, 1.0, %v2425_v62  ;;  %v2171_v4 = vsel %vm777_vm15, 1.0, %v2425_v62 }
  0xe2   : > { %v819_v0 = vpack.c.bf16 %v2170_v61, %v2169_v63  ;;  %v820_v7 = vpack.c.bf16 %v2172_v6, %v2171_v4  ;;  %v1319_v4 = vpack.c.bf16 %v2807_v3, %v2804_v2  ;;  %v2817_v6 = vld [vmem:[%s2553_s23 + $0x10] sm:$0xff] }
  0xe4   : > { %2216 = vmatmul.msk.bf16.gmra.mxu1 %vm961_vm3, %v938_v44 }
  0xe7   : > { %v760_v8 = vpop.permute.xlu1 %759  ;;  %v757_v9 = vpop.permute.xlu0 %756 }
  0xe8   : > { %vm780_vm1 = vcmp.eq.s32.totalorder %v2644_v56, %v760_v8  ;;  %vm779_vm2 = vcmp.eq.s32.totalorder %v2644_v56, %v757_v9  ;;  %v2318_v56 = vld [vmem:[%s3153_s6] sm:$0xff] }
  0xe9   : > { %v2174_v11 = vsel %vm780_vm1, 1.0, %v2425_v62  ;;  %v2173_v12 = vsel %vm779_vm2, 1.0, %v2425_v62  ;;  %1277 = vmatpush.bf16.msra.mxu3 %v2318_v56  ;;  %v2844_v56 = vld [vmem:[%s2553_s23 + $0x38] sm:$0xff] }
  0xea   : > { %v821_v14 = vpack.c.bf16 %v2174_v11, %v2173_v12  ;;  %v2828_v12 = vld [vmem:[%s2553_s23 + $0x20] sm:$0xff] }
  0xec   : > { %2207 = vmatmul.msk.bf16.gmra.mxu0 %vm961_vm3, %v817_v48 }
  0xf4   : > { %2217 = vmatmul.msk.bf16.gmra.mxu1 %vm961_vm3, %v939_v54 }
  0xfc   : > { %2208 = vmatmul.msk.bf16.gmra.mxu0 %vm961_vm3, %v818_v58 }
 0x104   : > { %2218 = vmatmul.msk.bf16.gmra.mxu1 %vm961_vm3, %v940_v15 }
 0x10c   : > { %2209 = vmatmul.msk.bf16.gmra.mxu0 %vm961_vm3, %v819_v0 }
 0x114   : > { %2219 = vmatmul.msk.bf16.gmra.mxu1 %vm961_vm3, %v941_v27 }
 0x11c   : > { %2210 = vmatmul.msk.bf16.gmra.mxu0 %vm961_vm3, %v820_v7  ;;  %v2820_v7 = vld [vmem:[%s2553_s23 + $0x18] sm:$0xff] }
 0x11d   : > { %v1320_v9 = vpack.c.bf16 %v2820_v7, %v2817_v6 }
 0x121   : > { %v2761_v10 = vpop.f32.mrf.mxu1 }
 0x124   : > { %2220 = vmatmul.msk.bf16.gmra.mxu1 %vm961_vm3, %v942_v26 }
 0x129   : > { %v2771_v13 = vpop.f32.mrf.mxu1 }
 0x12a   : > { %v1131_v15 = vpack.c.bf16 %v2771_v13, %v2761_v10 }
 0x12c   : > { %2211 = vmatmul.msk.bf16.gmra.mxu0 %vm961_vm3, %v821_v14  ;;  %v2831_v14 = vld [vmem:[%s2553_s23 + $0x28] sm:$0xff] }
 0x12d   : > { %v1321_v13 = vpack.c.bf16 %v2831_v14, %v2828_v12 }
 0x131   : > { %v1068_v17 = vpop.f32.mrf.mxu1 }
 0x139   : > { %v1070_v62 = vpop.f32.mrf.mxu1 }
 0x13a   : > { %v1136_v18 = vpack.c.bf16 %v1070_v62, %v1068_v17  ;;  %v1322_v62 = vpack.c.bf16 %v2844_v56, %v2841_v16 }
 0x13c   : > { %2229 = vmatmul.msk.bf16.vlgmr.msra.gmra.mxu2 %vm1160_vm4, %v1136_v18 }
 0x141   : > { %v1073_v19 = vpop.f32.mrf.mxu1 }
 0x149   : > { %v995_v20 = vpop.f32.mrf.mxu0  ;;  %v1075_v21 = vpop.f32.mrf.mxu1 }
 0x14a   : > { %v1137_v22 = vpack.c.bf16 %v1075_v21, %v1073_v19  ;;  %v2854_v19 = vld [vmem:[%s2553_s23 + $0x40] sm:$0xff] }
 0x14c   : > { %2230 = vmatmul.msk.bf16.gmra.mxu2 %vm1160_vm4, %v1137_v22 }
 0x151   : > { %v997_v23 = vpop.f32.mrf.mxu0  ;;  %v1078_v24 = vpop.f32.mrf.mxu1 }
 0x152   : > { %v1124_v25 = vpack.c.bf16 %v997_v23, %v995_v20  ;;  %v2857_v20 = vld [vmem:[%s2553_s23 + $0x48] sm:$0xff] }
 0x153   : > { %v1323_v22 = vpack.c.bf16 %v2857_v20, %v2854_v19 }
 0x154   : > { %2245 = vmatmul.msk.bf16.vlgmr.msra.gmra.mxu3 %vm1160_vm4, %v1124_v25  ;;  %v2870_v25 = vld [vmem:[%s2553_s23 + $0x58] sm:$0xff] }
 0x159   : > { %v1000_v26 = vpop.f32.mrf.mxu0  ;;  %v1080_v27 = vpop.f32.mrf.mxu1 }
 0x15a   : > { %v1138_v28 = vpack.c.bf16 %v1080_v27, %v1078_v24  ;;  %v2867_v24 = vld [vmem:[%s2553_s23 + $0x50] sm:$0xff] }
 0x15b   : > { %v1324_v27 = vpack.c.bf16 %v2870_v25, %v2867_v24 }
 0x15c   : > { %2231 = vmatmul.msk.bf16.gmra.mxu2 %vm1160_vm4, %v1138_v28 }
 0x161   : > { %v1002_v29 = vpop.f32.mrf.mxu0  ;;  %v1083_v30 = vpop.f32.mrf.mxu1 }
 0x162   : > { %v1125_v31 = vpack.c.bf16 %v1002_v29, %v1000_v26  ;;  %v2325_v29 = vld [vmem:[%s3157_s10 + $0x8] sm:$0xff] }
 0x163   : > { %1558 = vmatpush.bf16.msrb.mxu3 %v2325_v29 }
 0x164   : > { %2246 = vmatmul.msk.bf16.gmra.mxu3 %vm1160_vm4, %v1125_v31  ;;  %v2886_v31 = vld [vmem:[%s2553_s23 + $0x68] sm:$0xff] }
 0x167   : > { %1559 = vmatpush.bf16.msrb.mxu3 %v2324_v41 }
 0x169   : > { %v1005_v32 = vpop.f32.mrf.mxu0  ;;  %v1085_v33 = vpop.f32.mrf.mxu1 }
 0x16a   : > { %v1139_v34 = vpack.c.bf16 %v1085_v33, %v1083_v30  ;;  %v2883_v30 = vld [vmem:[%s2553_s23 + $0x60] sm:$0xff] }
 0x16b   : > { %v1325_v33 = vpack.c.bf16 %v2886_v31, %v2883_v30 }
 0x16c   : > { %2232 = vmatmul.msk.bf16.gmra.mxu2 %vm1160_vm4, %v1139_v34 }
 0x171   : > { %v1007_v35 = vpop.f32.mrf.mxu0  ;;  %v1088_v36 = vpop.f32.mrf.mxu1 }
 0x172   : > { %v1126_v37 = vpack.c.bf16 %v1007_v35, %v1005_v32 }
 0x174   : > { %2247 = vmatmul.msk.bf16.gmra.mxu3 %vm1160_vm4, %v1126_v37  ;;  %v2899_v37 = vld [vmem:[%s2553_s23 + $0x78] sm:$0xff] }
 0x179   : > { %v1010_v38 = vpop.f32.mrf.mxu0  ;;  %v1090_v39 = vpop.f32.mrf.mxu1 }
 0x17a   : > { %v1140_v40 = vpack.c.bf16 %v1090_v39, %v1088_v36  ;;  %v2896_v36 = vld [vmem:[%s2553_s23 + $0x70] sm:$0xff] }
 0x17c   : > { %2233 = vmatmul.msk.bf16.gmra.mxu2 %vm1160_vm4, %v1140_v40  ;;  %v1326_v40 = vpack.c.bf16 %v2899_v37, %v2896_v36 }
 0x181   : > { %v1012_v42 = vpop.f32.mrf.mxu0  ;;  %v1093_v43 = vpop.f32.mrf.mxu1 }
 0x182   : > { %v1127_v44 = vpack.c.bf16 %v1012_v42, %v1010_v38 }
 0x184   : > { %2248 = vmatmul.msk.bf16.gmra.mxu3 %vm1160_vm4, %v1127_v44 }
 0x189   : > { %v1015_v45 = vpop.f32.mrf.mxu0  ;;  %v1095_v46 = vpop.f32.mrf.mxu1 }
 0x18a   : > { %v1141_v47 = vpack.c.bf16 %v1095_v46, %v1093_v43 }
 0x18c   : > { %2234 = vmatmul.msk.bf16.gmra.mxu2 %vm1160_vm4, %v1141_v47 }
 0x191   : > { %v1017_v48 = vpop.f32.mrf.mxu0  ;;  %v1098_v49 = vpop.f32.mrf.mxu1 }
 0x192   : > { %v1128_v50 = vpack.c.bf16 %v1017_v48, %v1015_v45 }
 0x194   : > { %2249 = vmatmul.msk.bf16.gmra.mxu3 %vm1160_vm4, %v1128_v50 }
 0x199   : > { %v1020_v53 = vpop.f32.mrf.mxu0  ;;  %v1100_v54 = vpop.f32.mrf.mxu1 }
 0x19a   : > { %v1142_v55 = vpack.c.bf16 %v1100_v54, %v1098_v49  ;;  %v2916_v49 = vld [vmem:[%s3156_s9] ss:$0 sm:$0xff] }
 0x19c   : > { %2235 = vmatmul.msk.bf16.gmra.mxu2 %vm1160_vm4, %v1142_v55 }
 0x1a1   : > { %v1022_v57 = vpop.f32.mrf.mxu0  ;;  %v1103_v58 = vpop.f32.mrf.mxu1 }
 0x1a2   : > { %v1129_v59 = vpack.c.bf16 %v1022_v57, %v1020_v53 }
 0x1a4   : > { %2250 = vmatmul.msk.bf16.gmra.mxu3 %vm1160_vm4, %v1129_v59 }
 0x1a9   : > { %v1025_v60 = vpop.f32.mrf.mxu0  ;;  %v1105_v61 = vpop.f32.mrf.mxu1 }
 0x1aa   : > { %v1143_v63 = vpack.c.bf16 %v1105_v61, %v1103_v58 }
 0x1ac   : > { %2236 = vmatmul.msk.bf16.gmra.mxu2 %vm1160_vm4, %v1143_v63 }
 0x1b1   : > { %v1027_v0 = vpop.f32.mrf.mxu0 }
 0x1b2   : > { %v1130_v1 = vpack.c.bf16 %v1027_v0, %v1025_v60 }
 0x1b4   : > { %2251 = vmatmul.msk.bf16.gmra.mxu3 %vm1160_vm4, %v1130_v1 }
 0x1bc   : > { %2261 = vmatmul.msk.bf16.vlgmr.msrb.gmra.mxu2 %vm1160_vm4, %v1319_v4 }
 0x1bf   : > { %v1194_v5 = vpop.f32.mrf.mxu2 }
 0x1c4   : > { %2252 = vmatmul.msk.bf16.gmra.mxu3 %vm1160_vm4, %v1131_v15 }
 0x1c7   : > { %v1196_v8 = vpop.f32.mrf.mxu2 }
 0x1cc   : > { %2262 = vmatmul.msk.bf16.gmra.mxu2 %vm1160_vm4, %v1320_v9 }
 0x1cf   : > { %v2825_v11 = vpop.f32.mrf.mxu2 }
 0x1d7   : > { %v2833_v10 = vpop.f32.mrf.mxu2  ;;  %v1279_v34 = vpop.f32.mrf.mxu3 }
 0x1d8   : > { %v1280_v47 = vadd.f32 %v1279_v34, %v1194_v5 }
 0x1dc   : > { %2263 = vmatmul.msk.bf16.gmra.mxu2 %vm1160_vm4, %v1321_v13 }
 0x1df   : > { %v2838_v15 = vpop.f32.mrf.mxu2  ;;  %v1281_v38 = vpop.f32.mrf.mxu3 }
 0x1e0   : > { %v1282_v51 = vadd.f32 %v1281_v38, %v1196_v8 }
 0x1e7   : > { %v2846_v17 = vpop.f32.mrf.mxu2  ;;  %v1284_v43 = vpop.f32.mrf.mxu3 }
 0x1e8   : > { %v1285_v4 = vadd.f32 %v1284_v43, %v2825_v11 }
 0x1ec   : > { %2264 = vmatmul.msk.bf16.gmra.mxu2 %vm1160_vm4, %v1322_v62 }
 0x1ef   : > { %v2851_v18 = vpop.f32.mrf.mxu2  ;;  %v1286_v45 = vpop.f32.mrf.mxu3 }
 0x1f0   : > { %v1287_v8 = vadd.f32 %v1286_v45, %v2833_v10 }
 0x1f7   : > { %v2859_v21 = vpop.f32.mrf.mxu2  ;;  %v1289_v50 = vpop.f32.mrf.mxu3 }
 0x1f8   : > { %v1290_v41 = vadd.f32 %v1289_v50, %v2838_v15 }
 0x1fc   : > { %2265 = vmatmul.msk.bf16.gmra.mxu2 %vm1160_vm4, %v1323_v22 }
 0x1ff   : > { %v2864_v23 = vpop.f32.mrf.mxu2  ;;  %v1291_v63 = vpop.f32.mrf.mxu3 }
 0x200   : > { %v1292_v45 = vadd.f32 %v1291_v63, %v2846_v17 }
 0x207   : > { %v2872_v26 = vpop.f32.mrf.mxu2  ;;  %v1294_v22 = vpop.f32.mrf.mxu3 }
 0x20c   : > { %2266 = vmatmul.msk.bf16.gmra.mxu2 %vm1160_vm4, %v1324_v27 }
 0x20f   : > { %v2877_v28 = vpop.f32.mrf.mxu2  ;;  %v1296_v43 = vpop.f32.mrf.mxu3 }
 0x217   : > { %v2888_v32 = vpop.f32.mrf.mxu2 }
 0x21c   : > { %2267 = vmatmul.msk.bf16.gmra.mxu2 %vm1160_vm4, %v1325_v33 }
 0x21f   : > { %v2893_v35 = vpop.f32.mrf.mxu2 }
 0x227   : > { %v2901_v39 = vpop.f32.mrf.mxu2 }
 0x22c   : > { %2268 = vmatmul.msk.bf16.gmra.mxu2 %vm1160_vm4, %v1326_v40 }
 0x22f   : > { %v2909_v42 = vpop.f32.mrf.mxu2 }
 0x237   : > { %v2911_v44 = vpop.f32.mrf.mxu2 }
 0x23f   : > { %v1376_v46 = vpop.f32.mrf.mxu2 }
 0x240   : > { %v1416_v48 = vadd.f32 %v1376_v46, %v1280_v47 }
 0x242   : > { %v1436_v53 = vadd.f32 %v2916_v49, %v1416_v48 }
 0x244   : > { %v1468_v57 = vmul.f32 0.01, %v1436_v53  ;;  %vm1452_vm3 = vcmp.gt.f32.partialorder %v1436_v53, 0.0 }
 0x246   : > { %v1484_v60 = vsel %vm1452_vm3, %v1436_v53, %v1468_v57 }
 0x247   : > { %v1378_v54 = vpop.f32.mrf.mxu2 }
 0x248   : > { %v1417_v55 = vadd.f32 %v1378_v54, %v1282_v51 }
 0x24a   : > { %v1437_v58 = vadd.f32 %v2916_v49, %v1417_v55  ;;  %v1299_v55 = vpop.f32.mrf.mxu3 }
 0x24c   : > { %vm1453_vm5 = vcmp.gt.f32.partialorder %v1437_v58, 0.0  ;;  %v1469_v59 = vmul.f32 0.01, %v1437_v58 }
 0x24e   : > { %v1485_v61 = vsel %vm1453_vm5, %v1437_v58, %v1469_v59  ;;  %v1295_v59 = vadd.f32 %v1294_v22, %v2851_v18  ;;  %v1300_v22 = vadd.f32 %v1299_v55, %v2864_v23 }
 0x24f   : > { %v1381_v0 = vpop.f32.mrf.mxu2  ;;  %v1500_v1 = vpack.c.bf16 %v1485_v61, %v1484_v60  ;;  %v1297_v60 = vadd.f32 %v1296_v43, %v2859_v21 }
 0x250   : > { %v1418_v5 = vadd.f32 %v1381_v0, %v1285_v4 }
 0x251   : > { %2277 = vmatmul.msk.bf16.vlgmr.msrb.gmra.mxu3 %vm1160_vm4, %v1500_v1 }
 0x252   : > { %v1438_v9 = vadd.f32 %v2916_v49, %v1418_v5  ;;  %v1301_v63 = vpop.f32.mrf.mxu3 }
 0x254   : > { %v1470_v27 = vmul.f32 0.01, %v1438_v9  ;;  %vm1454_vm6 = vcmp.gt.f32.partialorder %v1438_v9, 0.0 }
 0x256   : > { %v1486_v34 = vsel %vm1454_vm6, %v1438_v9, %v1470_v27 }
 0x257   : > { %v1383_v13 = vpop.f32.mrf.mxu2 }
 0x258   : > { %v1419_v62 = vadd.f32 %v1383_v13, %v1287_v8 }
 0x25a   : > { %v1439_v29 = vadd.f32 %v2916_v49, %v1419_v62  ;;  %v1304_v27 = vpop.f32.mrf.mxu3 }
 0x25c   : > { %vm1455_vm7 = vcmp.gt.f32.partialorder %v1439_v29, 0.0  ;;  %v1471_v33 = vmul.f32 0.01, %v1439_v29 }
 0x25e   : > { %v1487_v38 = vsel %vm1455_vm7, %v1439_v29, %v1471_v33  ;;  %v1302_v29 = vadd.f32 %v1301_v63, %v2872_v26 }
 0x25f   : > { %v1386_v40 = vpop.f32.mrf.mxu2  ;;  %v1501_v11 = vpack.c.bf16 %v1487_v38, %v1486_v34 }
 0x260   : > { %v1420_v10 = vadd.f32 %v1386_v40, %v1290_v41 }
 0x261   : > { %2278 = vmatmul.msk.bf16.gmra.mxu3 %vm1160_vm4, %v1501_v11 }
 0x262   : > { %v1440_v46 = vadd.f32 %v2916_v49, %v1420_v10  ;;  %v1306_v41 = vpop.f32.mrf.mxu3 }
 0x264   : > { %v1472_v51 = vmul.f32 0.01, %v1440_v46  ;;  %vm1456_vm8 = vcmp.gt.f32.partialorder %v1440_v46, 0.0 }
 0x266   : > { %v1488_v57 = vsel %vm1456_vm8, %v1440_v46, %v1472_v51  ;;  %v1307_v51 = vadd.f32 %v1306_v41, %v2888_v32 }
 0x267   : > { %v1388_v47 = vpop.f32.mrf.mxu2 }
 0x268   : > { %v1421_v48 = vadd.f32 %v1388_v47, %v1292_v45  ;;  %v1305_v47 = vadd.f32 %v1304_v27, %v2877_v28 }
 0x26a   : > { %v1441_v53 = vadd.f32 %v2916_v49, %v1421_v48  ;;  %v1309_v48 = vpop.f32.mrf.mxu3 }
 0x26c   : > { %vm1457_vm9 = vcmp.gt.f32.partialorder %v1441_v53, 0.0  ;;  %v1473_v54 = vmul.f32 0.01, %v1441_v53 }
 0x26e   : > { %v1489_v58 = vsel %vm1457_vm9, %v1441_v53, %v1473_v54 }
 0x26f   : > { %v1391_v15 = vpop.f32.mrf.mxu2  ;;  %v1502_v50 = vpack.c.bf16 %v1489_v58, %v1488_v57 }
 0x270   : > { %v1422_v17 = vadd.f32 %v1391_v15, %v1295_v59 }
 0x271   : > { %2279 = vmatmul.msk.bf16.gmra.mxu3 %vm1160_vm4, %v1502_v50 }
 0x272   : > { %v1442_v61 = vadd.f32 %v2916_v49, %v1422_v17  ;;  %v1311_v17 = vpop.f32.mrf.mxu3 }
 0x273   : > { %v1312_v63 = vadd.f32 %v1311_v17, %v2901_v39 }
 0x274   : > { %v1474_v4 = vmul.f32 0.01, %v1442_v61  ;;  %vm1458_vm10 = vcmp.gt.f32.partialorder %v1442_v61, 0.0 }
 0x276   : > { %v1490_v9 = vsel %vm1458_vm10, %v1442_v61, %v1474_v4  ;;  %v1310_v61 = vadd.f32 %v1309_v48, %v2893_v35 }
 0x277   : > { %v1393_v0 = vpop.f32.mrf.mxu2 }
 0x278   : > { %v1423_v1 = vadd.f32 %v1393_v0, %v1297_v60 }
 0x27a   : > { %v1443_v5 = vadd.f32 %v2916_v49, %v1423_v1 }
 0x27c   : > { %vm1459_vm11 = vcmp.gt.f32.partialorder %v1443_v5, 0.0  ;;  %v1475_v8 = vmul.f32 0.01, %v1443_v5 }
 0x27e   : > { %v1491_v13 = vsel %vm1459_vm11, %v1443_v5, %v1475_v8  ;;  %v1314_v5 = vpop.f32.mrf.mxu3 }
 0x27f   : > { %v1396_v62 = vpop.f32.mrf.mxu2  ;;  %v1503_v18 = vpack.c.bf16 %v1491_v13, %v1490_v9  ;;  %v1315_v27 = vadd.f32 %v1314_v5, %v2909_v42 }
 0x280   : > { %v1424_v21 = vadd.f32 %v1396_v62, %v1300_v22 }
 0x281   : > { %2280 = vmatmul.msk.bf16.gmra.mxu3 %vm1160_vm4, %v1503_v18 }
 0x282   : > { %v1444_v33 = vadd.f32 %v2916_v49, %v1424_v21 }
 0x284   : > { %v1476_v40 = vmul.f32 0.01, %v1444_v33  ;;  %vm1460_vm12 = vcmp.gt.f32.partialorder %v1444_v33, 0.0 }
 0x286   : > { %v1492_v43 = vsel %vm1460_vm12, %v1444_v33, %v1476_v40  ;;  %v1316_v21 = vpop.f32.mrf.mxu3  ;;  %v2327_v40 = vld [vmem:[%s3177_s27 + $0x8] sm:$0xff] }
 0x287   : > { %v1398_v34 = vpop.f32.mrf.mxu2  ;;  %1707 = vmatpush.bf16.msrb.mxu0 %v2327_v40 }
 0x288   : > { %v1425_v38 = vadd.f32 %v1398_v34, %v1302_v29  ;;  %v1317_v29 = vadd.f32 %v1316_v21, %v2911_v44  ;;  %v2326_v44 = vld [vmem:[%s3177_s27] sm:$0xff] }
 0x28a   : > { %v1445_v11 = vadd.f32 %v2916_v49, %v1425_v38 }
 0x28b   : > { %1708 = vmatpush.bf16.msrb.mxu0 %v2326_v44 }
 0x28c   : > { %vm1461_vm13 = vcmp.gt.f32.partialorder %v1445_v11, 0.0  ;;  %v1477_v10 = vmul.f32 0.01, %v1445_v11 }
 0x28e   : > { %v1493_v45 = vsel %vm1461_vm13, %v1445_v11, %v1477_v10 }
 0x28f   : > { %v1401_v23 = vpop.f32.mrf.mxu2  ;;  %v1504_v46 = vpack.c.bf16 %v1493_v45, %v1492_v43 }
 0x290   : > { %v1426_v26 = vadd.f32 %v1401_v23, %v1305_v47 }
 0x291   : > { %2281 = vmatmul.msk.bf16.gmra.mxu3 %vm1160_vm4, %v1504_v46  ;;  %v2965_v46 = vld [vmem:[%s3178_s12] ss:$0 sm:$0xff] }
 0x292   : > { %v1446_v53 = vadd.f32 %v2916_v49, %v1426_v26 }
 0x294   : > { %v1478_v57 = vmul.f32 0.01, %v1446_v53  ;;  %vm1462_vm14 = vcmp.gt.f32.partialorder %v1446_v53, 0.0 }
 0x296   : > { %v1494_v50 = vsel %vm1462_vm14, %v1446_v53, %v1478_v57 }
 0x297   : > { %v1403_v54 = vpop.f32.mrf.mxu2 }
 0x298   : > { %v1427_v55 = vadd.f32 %v1403_v54, %v1307_v51 }
 0x29a   : > { %v1447_v58 = vadd.f32 %v2916_v49, %v1427_v55 }
 0x29c   : > { %vm1463_vm15 = vcmp.gt.f32.partialorder %v1447_v58, 0.0  ;;  %v1479_v15 = vmul.f32 0.01, %v1447_v58 }
 0x29e   : > { %v1495_v59 = vsel %vm1463_vm15, %v1447_v58, %v1479_v15 }
 0x29f   : > { %v1406_v28 = vpop.f32.mrf.mxu2  ;;  %v1505_v60 = vpack.c.bf16 %v1495_v59, %v1494_v50 }
 0x2a0   : > { %v1428_v32 = vadd.f32 %v1406_v28, %v1310_v61 }
 0x2a1   : > { %2282 = vmatmul.msk.bf16.gmra.mxu3 %vm1160_vm4, %v1505_v60 }
 0x2a2   : > { %v1448_v0 = vadd.f32 %v2916_v49, %v1428_v32 }
 0x2a4   : > { %v1480_v8 = vmul.f32 0.01, %v1448_v0  ;;  %vm1464_vm0 = vcmp.gt.f32.partialorder %v1448_v0, 0.0 }
 0x2a6   : > { %v1496_v62 = vsel %vm1464_vm0, %v1448_v0, %v1480_v8 }
 0x2a7   : > { %v1408_v1 = vpop.f32.mrf.mxu2 }
 0x2a8   : > { %v1429_v4 = vadd.f32 %v1408_v1, %v1312_v63 }
 0x2aa   : > { %v1449_v9 = vadd.f32 %v2916_v49, %v1429_v4 }
 0x2ac   : > { %vm1465_vm1 = vcmp.gt.f32.partialorder %v1449_v9, 0.0  ;;  %v1481_v13 = vmul.f32 0.01, %v1449_v9 }
 0x2ae   : > { %v1497_v18 = vsel %vm1465_vm1, %v1449_v9, %v1481_v13 }
 0x2af   : > { %v1411_v22 = vpop.f32.mrf.mxu2  ;;  %v1506_v35 = vpack.c.bf16 %v1497_v18, %v1496_v62 }
 0x2b0   : > { %v1430_v39 = vadd.f32 %v1411_v22, %v1315_v27 }
 0x2b1   : > { %2283 = vmatmul.msk.bf16.gmra.mxu3 %vm1160_vm4, %v1506_v35 }
 0x2b2   : > { %v1450_v33 = vadd.f32 %v2916_v49, %v1430_v39 }
 0x2b4   : > { %v1482_v11 = vmul.f32 0.01, %v1450_v33  ;;  %vm1466_vm2 = vcmp.gt.f32.partialorder %v1450_v33, 0.0 }
 0x2b6   : > { %v1498_v10 = vsel %vm1466_vm2, %v1450_v33, %v1482_v11 }
 0x2b7   : > { %v1413_v34 = vpop.f32.mrf.mxu2 }
 0x2b8   : > { %v1431_v38 = vadd.f32 %v1413_v34, %v1317_v29 }
 0x2ba   : > { %v1451_v41 = vadd.f32 %v2916_v49, %v1431_v38 }
 0x2bc   : > { %vm1467_vm3 = vcmp.gt.f32.partialorder %v1451_v41, 0.0  ;;  %v1483_v42 = vmul.f32 0.01, %v1451_v41 }
 0x2be   : > { %v1499_v43 = vsel %vm1467_vm3, %v1451_v41, %v1483_v42 }
 0x2bf   : > { %v1507_v45 = vpack.c.bf16 %v1499_v43, %v1498_v10 }
 0x2c1   : > { %2284 = vmatmul.msk.bf16.gmra.mxu3 %vm1160_vm4, %v1507_v45 }
 0x2d4   : > { %v1561_v23 = vpop.f32.mrf.mxu3 }
 0x2d5   : > { %v1562_v49 = vadd.f32 %v2965_v46, %v1561_v23 }
 0x2d7   : > { %v1617_v26 = vmul.f32 0.01, %v1562_v49  ;;  %vm1601_vm5 = vcmp.gt.f32.partialorder %v1562_v49, 0.0 }
 0x2d9   : > { %v1633_v53 = vsel %vm1601_vm5, %v1562_v49, %v1617_v26 }
 0x2dc   : > { %v1563_v47 = vpop.f32.mrf.mxu3 }
 0x2dd   : > { %v1564_v48 = vadd.f32 %v2965_v46, %v1563_v47 }
 0x2df   : > { %vm1602_vm6 = vcmp.gt.f32.partialorder %v1564_v48, 0.0  ;;  %v1618_v51 = vmul.f32 0.01, %v1564_v48 }
 0x2e1   : > { %v1634_v54 = vsel %vm1602_vm6, %v1564_v48, %v1618_v51 }
 0x2e2   : > { %v1649_v55 = vpack.c.bf16 %v1634_v54, %v1633_v53 }
 0x2e4   : > { %v1566_v57 = vpop.f32.mrf.mxu3  ;;  %2293 = vmatmul.msk.bf16.vlgmr.msrb.gmra.mxu0 %vm1160_vm4, %v1649_v55 }
 0x2e5   : > { %v1567_v58 = vadd.f32 %v2965_v46, %v1566_v57  ;;  %v2985_v57 = vpop.permute.xlu2 %1900 }
 0x2e7   : > { %v1619_v50 = vmul.f32 0.01, %v1567_v58  ;;  %vm1603_vm7 = vcmp.gt.f32.partialorder %v1567_v58, 0.0 }
 0x2e9   : > { %v1635_v28 = vsel %vm1603_vm7, %v1567_v58, %v1619_v50 }
 0x2ec   : > { %v1568_v15 = vpop.f32.mrf.mxu3 }
 0x2ed   : > { %v1569_v59 = vadd.f32 %v2965_v46, %v1568_v15 }
 0x2ef   : > { %vm1604_vm8 = vcmp.gt.f32.partialorder %v1569_v59, 0.0  ;;  %v1620_v17 = vmul.f32 0.01, %v1569_v59 }
 0x2f1   : > { %v1636_v60 = vsel %vm1604_vm8, %v1569_v59, %v1620_v17 }
 0x2f2   : > { %v1650_v61 = vpack.c.bf16 %v1636_v60, %v1635_v28 }
 0x2f4   : > { %v1571_v32 = vpop.f32.mrf.mxu3  ;;  %2294 = vmatmul.msk.bf16.gmra.mxu0 %vm1160_vm4, %v1650_v61  ;;  %v2989_v61 = vpop.permute.xlu2 %1895 }
 0x2f5   : > { %v1572_v63 = vadd.f32 %v2965_v46, %v1571_v32 }
 0x2f7   : > { %v1621_v1 = vmul.f32 0.01, %v1572_v63  ;;  %vm1605_vm9 = vcmp.gt.f32.partialorder %v1572_v63, 0.0 }
 0x2f9   : > { %v1637_v8 = vsel %vm1605_vm9, %v1572_v63, %v1621_v1  ;;  %v2991_v63 = vpop.permute.xlu1 %1890 }
 0x2fc   : > { %v1573_v0 = vpop.f32.mrf.mxu3 }
 0x2fd   : > { %v1574_v4 = vadd.f32 %v2965_v46, %v1573_v0 }
 0x2ff   : > { %vm1606_vm10 = vcmp.gt.f32.partialorder %v1574_v4, 0.0  ;;  %v1622_v5 = vmul.f32 0.01, %v1574_v4 }
 0x301   : > { %v1638_v9 = vsel %vm1606_vm10, %v1574_v4, %v1622_v5  ;;  %v2995_v4 = vpop.permute.xlu2 %1870 }
 0x302   : > { %v1651_v13 = vpack.c.bf16 %v1638_v9, %v1637_v8  ;;  %v2997_v8 = vpop.permute.xlu1 %1885 }
 0x304   : > { %v1576_v62 = vpop.f32.mrf.mxu3  ;;  %2295 = vmatmul.msk.bf16.gmra.mxu0 %vm1160_vm4, %v1651_v13 }
 0x305   : > { %v1577_v18 = vadd.f32 %v2965_v46, %v1576_v62 }
 0x307   : > { %v1623_v35 = vmul.f32 0.01, %v1577_v18  ;;  %vm1607_vm11 = vcmp.gt.f32.partialorder %v1577_v18, 0.0 }
 0x309   : > { %v1639_v21 = vsel %vm1607_vm11, %v1577_v18, %v1623_v35 }
 0x30c   : > { %v1578_v22 = vpop.f32.mrf.mxu3 }
 0x30d   : > { %v1579_v27 = vadd.f32 %v2965_v46, %v1578_v22 }
 0x30f   : > { %vm1608_vm12 = vcmp.gt.f32.partialorder %v1579_v27, 0.0  ;;  %v1624_v39 = vmul.f32 0.01, %v1579_v27 }
 0x311   : > { %v1640_v29 = vsel %vm1608_vm12, %v1579_v27, %v1624_v39  ;;  %v3000_v27 = vpop.permute.xlu0 %1905  ;;  %v1866_v39 = vpop.permute.xlu2 %1865 }
 0x312   : > { %v1652_v33 = vpack.c.bf16 %v1640_v29, %v1639_v21  ;;  %v1861_v21 = vpop.permute.xlu1 %1860 }
 0x314   : > { %v1581_v34 = vpop.f32.mrf.mxu3  ;;  %2296 = vmatmul.msk.bf16.gmra.mxu0 %vm1160_vm4, %v1652_v33 }
 0x315   : > { %v1582_v38 = vadd.f32 %v2965_v46, %v1581_v34 }
 0x317   : > { %v1625_v11 = vmul.f32 0.01, %v1582_v38  ;;  %vm1609_vm13 = vcmp.gt.f32.partialorder %v1582_v38, 0.0 }
 0x319   : > { %v1641_v10 = vsel %vm1609_vm13, %v1582_v38, %v1625_v11  ;;  %v3003_v29 = vpop.permute.xlu0 %1880  ;;  %v1841_v33 = vpop.permute.xlu2 %1840 }
 0x31a   : > { %v1856_v34 = vpop.permute.xlu1 %1855 }
 0x31c   : > { %v1583_v40 = vpop.f32.mrf.mxu3 }
 0x31d   : > { %v1584_v41 = vadd.f32 %v2965_v46, %v1583_v40 }
 0x31f   : > { %vm1610_vm14 = vcmp.gt.f32.partialorder %v1584_v41, 0.0  ;;  %v1626_v42 = vmul.f32 0.01, %v1584_v41 }
 0x321   : > { %v1642_v43 = vsel %vm1610_vm14, %v1584_v41, %v1626_v42  ;;  %v3014_v41 = vpop.permute.xlu0 %1875 }
 0x322   : > { %v1653_v45 = vpack.c.bf16 %v1642_v43, %v1641_v10  ;;  %v1836_v43 = vpop.permute.xlu2 %1835 }
 0x324   : > { %v1586_v44 = vpop.f32.mrf.mxu3  ;;  %2297 = vmatmul.msk.bf16.gmra.mxu0 %vm1160_vm4, %v1653_v45  ;;  %v1831_v45 = vpop.permute.xlu1 %1830 }
 0x325   : > { %v1587_v23 = vadd.f32 %v2965_v46, %v1586_v44 }
 0x327   : > { %v1627_v47 = vmul.f32 0.01, %v1587_v23  ;;  %vm1611_vm15 = vcmp.gt.f32.partialorder %v1587_v23, 0.0 }
 0x329   : > { %v1643_v51 = vsel %vm1611_vm15, %v1587_v23, %v1627_v47  ;;  %v1851_v47 = vpop.permute.xlu0 %1850 }
 0x32c   : > { %v1588_v49 = vpop.f32.mrf.mxu3 }
 0x32d   : > { %v1589_v26 = vadd.f32 %v2965_v46, %v1588_v49 }
 0x32f   : > { %vm1612_vm0 = vcmp.gt.f32.partialorder %v1589_v26, 0.0  ;;  %v1628_v48 = vmul.f32 0.01, %v1589_v26 }
 0x331   : > { %v1644_v53 = vsel %vm1612_vm0, %v1589_v26, %v1628_v48 }
 0x332   : > { %v1654_v54 = vpack.c.bf16 %v1644_v53, %v1643_v51 }
 0x334   : > { %v1591_v55 = vpop.f32.mrf.mxu3  ;;  %2298 = vmatmul.msk.bf16.gmra.mxu0 %vm1160_vm4, %v1654_v54 }
 0x335   : > { %v1592_v58 = vadd.f32 %v2965_v46, %v1591_v55 }
 0x337   : > { %v1629_v50 = vmul.f32 0.01, %v1592_v58  ;;  %vm1613_vm1 = vcmp.gt.f32.partialorder %v1592_v58, 0.0 }
 0x339   : > { %v1645_v28 = vsel %vm1613_vm1, %v1592_v58, %v1629_v50 }
 0x33c   : > { %v1593_v15 = vpop.f32.mrf.mxu3 }
 0x33d   : > { %v1594_v59 = vadd.f32 %v2965_v46, %v1593_v15 }
 0x33f   : > { %vm1614_vm2 = vcmp.gt.f32.partialorder %v1594_v59, 0.0  ;;  %v1630_v17 = vmul.f32 0.01, %v1594_v59 }
 0x341   : > { %v1646_v60 = vsel %vm1614_vm2, %v1594_v59, %v1630_v17 }
 0x342   : > { %v1655_v32 = vpack.c.bf16 %v1646_v60, %v1645_v28 }
 0x344   : > { %v1596_v0 = vpop.f32.mrf.mxu3  ;;  %2299 = vmatmul.msk.bf16.gmra.mxu0 %vm1160_vm4, %v1655_v32 }
 0x345   : > { %v1597_v1 = vadd.f32 %v2965_v46, %v1596_v0 }
 0x347   : > { %v1631_v9 = vmul.f32 0.01, %v1597_v1  ;;  %vm1615_vm3 = vcmp.gt.f32.partialorder %v1597_v1, 0.0 }
 0x349   : > { %v1647_v18 = vsel %vm1615_vm3, %v1597_v1, %v1631_v9 }
 0x34c   : > { %v1598_v5 = vpop.f32.mrf.mxu3 }
 0x34d   : > { %v1599_v13 = vadd.f32 %v2965_v46, %v1598_v5  ;;  %v3008_v46 = vld [vmem:[%s3179_s19] ss:$0 sm:$0xff] }
 0x34f   : > { %vm1616_vm5 = vcmp.gt.f32.partialorder %v1599_v13, 0.0  ;;  %v1632_v62 = vmul.f32 0.01, %v1599_v13 }
 0x351   : > { %v1648_v22 = vsel %vm1616_vm5, %v1599_v13, %v1632_v62 }
 0x352   : > { %v1656_v35 = vpack.c.bf16 %v1648_v22, %v1647_v18 }
 0x354   : > { %2300 = vmatmul.msk.bf16.gmra.mxu0 %vm1160_vm4, %v1656_v35 }
 0x361   : > { %v1710_v38 = vpop.f32.mrf.mxu0 }
 0x362   : > { %v1711_v40 = vadd.f32 %v3008_v46, %v1710_v38 }
 0x364   : > { %v1750_v11 = vadd.f32 %v1711_v40, %v2804_v2  ;;  %v3017_v44 = vmul.f32 %v1831_v45, %v1711_v40 }
 0x366   : > { %1766 = vst.msk [vmem:[%s2573_s24] sm:$0xff] %vm1160_vm4, %v1750_v11 }
 0x369   : > { %v1712_v42 = vpop.f32.mrf.mxu0 }
 0x36a   : > { %v1713_v10 = vadd.f32 %v3008_v46, %v1712_v42 }
 0x36c   : > { %v1751_v23 = vadd.f32 %v1713_v10, %v2807_v3  ;;  %v3020_v49 = vmul.f32 %v1836_v43, %v1713_v10  ;;  %v1846_v3 = vpop.permute.xlu0 %1845 }
 0x36e   : > { %1767 = vst.msk [vmem:[%s2573_s24 + $0x8] sm:$0xff] %vm1160_vm4, %v1751_v23  ;;  %v1924_v2 = vpack.c.bf16 %v3020_v49, %v3017_v44  ;;  %v1932_v44 = vld [vmem:[%s2579_s1] sm:$0xff] }
 0x371   : > { %v1715_v26 = vpop.f32.mrf.mxu0 }
 0x372   : > { %v1716_v48 = vadd.f32 %v3008_v46, %v1715_v26 }
 0x374   : > { %v1752_v51 = vadd.f32 %v1716_v48, %v2817_v6  ;;  %v3031_v55 = vmul.f32 %v1841_v33, %v1716_v48 }
 0x376   : > { %1768 = vst.msk [vmem:[%s2573_s24 + $0x10] sm:$0xff] %vm1160_vm4, %v1752_v51 }
 0x379   : > { %v1717_v53 = vpop.f32.mrf.mxu0 }
 0x37a   : > { %v1718_v54 = vadd.f32 %v3008_v46, %v1717_v53 }
 0x37c   : > { %v1753_v58 = vadd.f32 %v1718_v54, %v2820_v7  ;;  %v3034_v15 = vmul.f32 %v1846_v3, %v1718_v54 }
 0x37e   : > { %1769 = vst.msk [vmem:[%s2573_s24 + $0x18] sm:$0xff] %vm1160_vm4, %v1753_v58  ;;  %v1925_v50 = vpack.c.bf16 %v3034_v15, %v3031_v55  ;;  %v1933_v15 = vld [vmem:[%s2579_s1 + $0x8] sm:$0xff] }
 0x381   : > { %v1720_v6 = vpop.f32.mrf.mxu0 }
 0x382   : > { %v1721_v59 = vadd.f32 %v3008_v46, %v1720_v6 }
 0x384   : > { %v1754_v17 = vadd.f32 %v1721_v59, %v2828_v12  ;;  %v3045_v7 = vmul.f32 %v1851_v47, %v1721_v59 }
 0x386   : > { %1770 = vst.msk [vmem:[%s2573_s24 + $0x20] sm:$0xff] %vm1160_vm4, %v1754_v17  ;;  %v1783_v17 = vshrl.u32 %v701_v52, 7  ;;  %v2426_v52 = vmov 1.0|1.0  }
 0x388   : > { %v1788_v55 = vadd.s32 40, %v1783_v17 }
 0x389   : > { %v1722_v28 = vpop.f32.mrf.mxu0 }
 0x38a   : > { %v1723_v60 = vadd.f32 %v3008_v46, %v1722_v28 }
 0x38c   : > { %v1755_v32 = vadd.f32 %v1723_v60, %v2831_v14  ;;  %v3048_v0 = vmul.f32 %v1856_v34, %v1723_v60  ;;  %v1934_v60 = vld [vmem:[%s2579_s1 + $0x10] sm:$0xff] }
 0x38e   : > { %1771 = vst.msk [vmem:[%s2573_s24 + $0x28] sm:$0xff] %vm1160_vm4, %v1755_v32  ;;  %v1926_v1 = vpack.c.bf16 %v3048_v0, %v3045_v7  ;;  %v1935_v0 = vld [vmem:[%s2579_s1 + $0x18] sm:$0xff] }
 0x391   : > { %v1725_v5 = vpop.f32.mrf.mxu0 }
 0x392   : > { %v1726_v12 = vadd.f32 %v3008_v46, %v1725_v5 }
 0x394   : > { %v1756_v9 = vadd.f32 %v1726_v12, %v2841_v16  ;;  %v1914_v14 = vmul.f32 %v1861_v21, %v1726_v12  ;;  %v1936_v12 = vld [vmem:[%s2579_s1 + $0x20] sm:$0xff] }
 0x396   : > { %1772 = vst.msk [vmem:[%s2573_s24 + $0x30] sm:$0xff] %vm1160_vm4, %v1756_v9 }
 0x399   : > { %v1727_v13 = vpop.f32.mrf.mxu0 }
 0x39a   : > { %v1728_v62 = vadd.f32 %v3008_v46, %v1727_v13 }
 0x39c   : > { %v1757_v18 = vadd.f32 %v1728_v62, %v2844_v56  ;;  %v1915_v22 = vmul.f32 %v1866_v39, %v1728_v62  ;;  %v1937_v62 = vld [vmem:[%s2579_s1 + $0x28] sm:$0xff] }
 0x39e   : > { %1773 = vst.msk [vmem:[%s2573_s24 + $0x38] sm:$0xff] %vm1160_vm4, %v1757_v18  ;;  %v1927_v35 = vpack.c.bf16 %v1915_v22, %v1914_v14 }
 0x3a1   : > { %v1730_v33 = vpop.f32.mrf.mxu0 }
 0x3a2   : > { %v1731_v34 = vadd.f32 %v3008_v46, %v1730_v33 }
 0x3a4   : > { %v1758_v16 = vadd.f32 %v1731_v34, %v2854_v19 }
 0x3a6   : > { %1774 = vst.msk [vmem:[%s2573_s24 + $0x40] sm:$0xff] %vm1160_vm4, %v1758_v16 }
 0x3a9   : > { %v1732_v38 = vpop.f32.mrf.mxu0 }
 0x3aa   : > { %v1733_v40 = vadd.f32 %v3008_v46, %v1732_v38 }
 0x3ac   : > { %v1759_v21 = vadd.f32 %v1733_v40, %v2857_v20 }
 0x3ae   : > { %1775 = vst.msk [vmem:[%s2573_s24 + $0x48] sm:$0xff] %vm1160_vm4, %v1759_v21 }
 0x3b1   : > { %v1735_v56 = vpop.f32.mrf.mxu0 }
 0x3b2   : > { %v1736_v39 = vadd.f32 %v3008_v46, %v1735_v56 }
 0x3b4   : > { %v1760_v11 = vadd.f32 %v1736_v39, %v2867_v24 }
 0x3b6   : > { %1776 = vst.msk [vmem:[%s2573_s24 + $0x50] sm:$0xff] %vm1160_vm4, %v1760_v11 }
 0x3b9   : > { %v1737_v19 = vpop.f32.mrf.mxu0 }
 0x3ba   : > { %v1738_v42 = vadd.f32 %v3008_v46, %v1737_v19 }
 0x3bc   : > { %v1761_v10 = vadd.f32 %v1738_v42, %v2870_v25 }
 0x3be   : > { %1777 = vst.msk [vmem:[%s2573_s24 + $0x58] sm:$0xff] %vm1160_vm4, %v1761_v10 }
 0x3c1   : > { %v1740_v43 = vpop.f32.mrf.mxu0 }
 0x3c2   : > { %v1741_v20 = vadd.f32 %v3008_v46, %v1740_v43 }
 0x3c4   : > { %v1762_v45 = vadd.f32 %v1741_v20, %v2883_v30  ;;  %v1920_v6 = vmul.f32 %v2991_v63, %v1741_v20  ;;  %v1784_v63 = vadd.s32 8, %v1783_v17 }
 0x3c6   : > { %1778 = vst.msk [vmem:[%s2573_s24 + $0x60] sm:$0xff] %vm1160_vm4, %v1762_v45 }
 0x3c9   : > { %v1742_v23 = vpop.f32.mrf.mxu0 }
 0x3ca   : > { %v1743_v24 = vadd.f32 %v3008_v46, %v1742_v23 }
 0x3cc   : > { %v1763_v47 = vadd.f32 %v1743_v24, %v2886_v31  ;;  %v1921_v31 = vmul.f32 %v2989_v61, %v1743_v24 }
 0x3ce   : > { %1779 = vst.msk [vmem:[%s2573_s24 + $0x68] sm:$0xff] %vm1160_vm4, %v1763_v47  ;;  %v1930_v59 = vpack.c.bf16 %v1921_v31, %v1920_v6 }
 0x3d1   : > { %v1745_v26 = vpop.f32.mrf.mxu0 }
 0x3d2   : > { %v1746_v25 = vadd.f32 %v3008_v46, %v1745_v26 }
 0x3d4   : > { %v1764_v48 = vadd.f32 %v1746_v25, %v2896_v36  ;;  %v1922_v53 = vmul.f32 %v2985_v57, %v1746_v25  ;;  %v1919_v36 = vmul.f32 %v2997_v8, %v1738_v42  ;;  %v1917_v57 = vmul.f32 %v3014_v41, %v1733_v40  ;;  %v2382_v8 = vld [vmem:[%s3180_s20] ss:$0 sm:$0xff] }
 0x3d5   : > { %vm1791_vm6 = vcmp.eq.s32.totalorder %v1783_v17, %v2382_v8  ;;  %vm1792_vm7 = vcmp.eq.s32.totalorder %v1784_v63, %v2382_v8  ;;  %v1787_v41 = vadd.s32 32, %v1783_v17  ;;  %vm1796_vm13 = vcmp.eq.s32.totalorder %v1788_v55, %v2382_v8 }
 0x3d6   : > { %1780 = vst.msk [vmem:[%s2573_s24 + $0x70] sm:$0xff] %vm1160_vm4, %v1764_v48  ;;  %vm2307_vm8 = vmpackc.low %vm1792_vm7, %vm1791_vm6 }
 0x3d7   : > { %vm1795_vm12 = vcmp.eq.s32.totalorder %v1787_v41, %v2382_v8 }
 0x3d8   : > { %vm2311_vm14 = vmpackc.low %vm1796_vm13, %vm1795_vm12 }
 0x3d9   : > { %v1747_v51 = vpop.f32.mrf.mxu0 }
 0x3da   : > { %v1748_v30 = vadd.f32 %v3008_v46, %v1747_v51  ;;  %v1918_v46 = vmul.f32 %v3003_v29, %v1736_v39  ;;  %v1786_v29 = vadd.s32 24, %v1783_v17 }
 0x3dc   : > { %v1765_v54 = vadd.f32 %v1748_v30, %v2899_v37  ;;  %v1923_v3 = vmul.f32 %v3000_v27, %v1748_v30  ;;  %v1929_v37 = vpack.c.bf16 %v1919_v36, %v1918_v46  ;;  %v1916_v27 = vmul.f32 %v2995_v4, %v1731_v34 }
 0x3dd   : > { %v1785_v4 = vadd.s32 16, %v1783_v17  ;;  %vm1794_vm10 = vcmp.eq.s32.totalorder %v1786_v29, %v2382_v8 }
 0x3de   : > { %1781 = vst.msk [vmem:[%s2573_s24 + $0x78] sm:$0xff] %vm1160_vm4, %v1765_v54  ;;  %v1931_v58 = vpack.c.bf16 %v1923_v3, %v1922_v53  ;;  %v1928_v61 = vpack.c.bf16 %v1917_v57, %v1916_v27 }
 0x3df   : > { %vm1793_vm9 = vcmp.eq.s32.totalorder %v1785_v4, %v2382_v8 }
 0x3e0   : > { %1938 = vmatpush.bf16.msra.mxu1 %v1931_v58  ;;  %vm2309_vm11 = vmpackc.low %vm1794_vm10, %vm1793_vm9 }
 0x3e4   : > { %1939 = vmatpush.bf16.msra.mxu1 %v1930_v59 }
 0x3e8   : > { %1940 = vmatpush.bf16.msra.mxu1 %v1929_v37 }
 0x3ec   : > { %1941 = vmatpush.bf16.msra.mxu1 %v1928_v61 }
 0x3f0   : > { %1942 = vmatpush.bf16.msra.mxu1 %v1927_v35 }
 0x3f4   : > { %1943 = vmatpush.bf16.msra.mxu1 %v1926_v1 }
 0x3f8   : > { %1944 = vmatpush.bf16.msra.mxu1 %v1925_v50 }
 0x3fc   : > { %1945 = vmatpush.bf16.msra.mxu1 %v1924_v2 }
 0x3ff   : > { %2308 = vmatmul.msk.bf16.vlgmr.msra.gmra.mxu1 %vm2307_vm8, %v2426_v52 }
 0x40f   : > { %2310 = vmatmul.msk.bf16.gmra.mxu1 %vm2309_vm11, %v2426_v52 }
 0x41f   : > { %2312 = vmatmul.msk.bf16.gmra.mxu1 %vm2311_vm14, %v2426_v52 }
 0x47c   : > { %v1947_v49 = vpop.f32.mrf.mxu1 }
 0x47d   : > { %v1962_v2 = vadd.f32 %v1947_v49, %v1932_v44 }
 0x47f   : > { %1968 = vst.msk [vmem:[%s2579_s1] sm:$0xff] %vm1160_vm4, %v1962_v2 }
 0x484   : > { %v1949_v50 = vpop.f32.mrf.mxu1 }
 0x485   : > { %v1963_v28 = vadd.f32 %v1949_v50, %v1933_v15 }
 0x487   : > { %1969 = vst.msk [vmem:[%s2579_s1 + $0x8] sm:$0xff] %vm1160_vm4, %v1963_v28 }
 0x48c   : > { %v1952_v7 = vpop.f32.mrf.mxu1 }
 0x48d   : > { %v1964_v32 = vadd.f32 %v1952_v7, %v1934_v60 }
 0x48f   : > { %1970 = vst.msk [vmem:[%s2579_s1 + $0x10] sm:$0xff] %vm1160_vm4, %v1964_v32 }
 0x494   : > { %v1954_v1 = vpop.f32.mrf.mxu1 }
 0x495   : > { %v1965_v5 = vadd.f32 %v1954_v1, %v1935_v0 }
 0x497   : > { %1971 = vst.msk [vmem:[%s2579_s1 + $0x18] sm:$0xff] %vm1160_vm4, %v1965_v5 }
 0x49c   : > { %v1957_v9 = vpop.f32.mrf.mxu1 }
 0x49d   : > { %v1966_v13 = vadd.f32 %v1957_v9, %v1936_v12 }
 0x49f   : > { %1972 = vst.msk [vmem:[%s2579_s1 + $0x20] sm:$0xff] %vm1160_vm4, %v1966_v13 }
 0x4a4   : > { %v1959_v14 = vpop.f32.mrf.mxu1 }
 0x4a5   : > { %v1967_v18 = vadd.f32 %v1959_v14, %v1937_v62 }
 0x4a7   : > { %1973 = vst.msk [vmem:[%s2579_s1 + $0x28] sm:$0xff] %vm1160_vm4, %v1967_v18 }
 0x4a8 PF: > { %s3181_s26 = sld [smem:[#allocation4_spill]] }
 0x4a9   : > { %s3182_s18 = sld [smem:[#allocation2_spill]] }
 0x4aa   : > { %s3183_s19 = sld [smem:[#allocation3_spill]] }
 0x4ab   : > { %s3184_s20 = sld [smem:[#allocation5_spill]] }
 0x4ac   : > { %s3185_s21 = sld [smem:[#allocation6_spill]] }
 0x4ae   : > { %s26_s22 = sadd.s32 1, %s3181_s26  }
 0x4af   : > { %p23_p9 = scmp.ge.s32.totalorder %s26_s22, 6  }
 0x4b1   :  { %25 = sbr.rel (!%p23_p9) target bundleno = 5 (0x5), region = 134 }

// kernel: forward_dynamics_pallas.17
= control target key start
LH: loop header
LB: loop body
LE: loop exit
PB: predicated region body
PF: predicated region fallthrough
CT: control target
= control target key end

     0   :  { %s1181_s21 = smov 0   ;;  %s1183_s22 = smov 0   ;;  %s1315_s0 = inlined_call_operand.vmem [shape: bf16[32,48], index: 0, kind: input, shape index: {}]   ;;  %s1316_s1 = inlined_call_operand.vmem [shape: f32[32,512], index: 1, kind: input, shape index: {}]   ;;  %s1317_s2 = inlined_call_operand.vmem [shape: s32[1,512], index: 2, kind: input, shape index: {}]   ;;  %s1318_s3 = inlined_call_operand.vmem [shape: s32[1,512], index: 3, kind: input, shape index: {}]   ;;  %s1319_s4 = inlined_call_operand.vmem [shape: bf16[32,32], index: 4, kind: input, shape index: {}]   ;;  %s1320_s5 = inlined_call_operand.vmem [shape: bf16[32,32], index: 5, kind: input, shape index: {}]   ;;  %s1321_s6 = inlined_call_operand.vmem [shape: bf16[32,32], index: 6, kind: input, shape index: {}]   ;;  %s1322_s7 = inlined_call_operand.vmem [shape: f32[32,1], index: 7, kind: input, shape index: {}]   ;;  %s1323_s8 = inlined_call_operand.vmem [shape: bf16[32,32], index: 8, kind: input, shape index: {}]   ;;  %s1324_s9 = inlined_call_operand.vmem [shape: f32[32,1], index: 9, kind: input, shape index: {}]   ;;  %s1325_s10 = inlined_call_operand.vmem [shape: f32[8,32], index: 10, kind: input, shape index: {}]   ;;  %s1326_s11 = inlined_call_operand.vmem [shape: f32[8,1], index: 11, kind: input, shape index: {}]   ;;  %s1327_s12 = inlined_call_operand.vmem [shape: f32[8,512], index: 12, kind: output, shape index: {}]  }
   0x1   :  { %s1185_s23 = smov 0  }
   0x2 LB: > { %s957_s24 = sadd.s32 4294967295, %s1112_s23   ;;  %s1198_s25 = sadd.s32 1, %s1112_s23   ;;  %s1112_s23 = sphi %s1185_s23, %s1330_s23   ;;  %s1108_s22 = sphi %s1183_s22, %s1329_s22   ;;  %s1104_s21 = sphi %s1181_s21, %s1328_s21  }
   0x3   : > { %s47_s26 = ssub.s32 %s1112_s23, %s1198_s25  ;;  %s50_s27 = sadd.s32 1, %s1108_s22 }
   0x4   : > { %p48_p0 = scmp.eq.s32.totalorder %s47_s26, 0  ;;  %p57_p1 = scmp.ne.s32.totalorder %s1108_s22, %s1104_s21 }
   0x5   : > { %p58_p2 = scmp.eq.s32.totalorder %s1112_s23, 0  ;;  %p960_p4 = scmp.ge.s32.totalorder %s1112_s23, 4 }
   0x6   : > { %s1207_s28 = scalar_select %p48_p0, %s1108_s22, %s50_s27  }
   0x7   : > { %p59_p3 = por %p58_p2, %p57_p1  ;;  %356 = sbr.rel (%p960_p4) target bundleno = 20 (0x14), region = 52 }
   0xc   : > { %359 = sbr.rel (!%p59_p3) target bundleno = 20 (0x14), region = 56  ;;  %s361_s29 = sand.u32 (%p59_p3), 1, %s1108_s22  }
   0xd   : > { %s962_s30 = sshll.u32 (%p59_p3), %s1112_s23, 3  ;;  %s961_s13 = sshll.u32 (%p59_p3), %s361_s29, 5 }
   0xe   : > { %s365_s16 = scalar_lea.vmem (%p59_p3), %s1316_s1, %s962_s30  ;;  %s363_s17 = scalar_lea.vmem (%p59_p3), [#allocation2], %s961_s13 }
   0xf   : > { %v400_v0 = vld [vmem:[%s365_s16] sm:$0xff] (%p59_p3) }
  0x10   : > { %v402_v1 = vld [vmem:[%s365_s16 + $0x20] sm:$0xff] (%p59_p3)  ;;  %401 = vst [vmem:[%s363_s17] sm:$0xff] (%p59_p3), %v400_v0 }
  0x11   : > { %v404_v2 = vld [vmem:[%s365_s16 + $0x40] sm:$0xff]  ;;  %403 = vst [vmem:[%s363_s17 + $0x8] sm:$0xff] %v402_v1 }
  0x12   : > { %v406_v3 = vld [vmem:[%s365_s16 + $0x60] sm:$0xff]  ;;  %405 = vst [vmem:[%s363_s17 + $0x10] sm:$0xff] %v404_v2 }
  0x13   : > { %407 = vst [vmem:[%s363_s17 + $0x18] sm:$0xff] %v406_v3 }
  0x14 PF: > { %p963_p5 = scmp.ge.s32.totalorder %s1112_s23, 1  ;;  %p424_p6 = scmp.lt.s32.totalorder %s1112_s23, 5 }
  0x16   : > { %p425_p7 = pnand %p963_p5, %p424_p6 }
  0x17   : > { %p477_p8 = scmp.lt.s32.totalorder (!%p425_p7), %s957_s24, 3  ;;  %s431_s15 = sand.u32 (!%p425_p7), 1, %s1104_s21  }
  0x18   : > { %428 = sbr.rel (%p425_p7) target bundleno = 683 (0x2ab), region = 102  ;;  %s964_s16 = sshll.u32 (!%p425_p7), %s431_s15, 5 }
  0x19   : > { %s433_s17 = scalar_lea.vmem (!%p425_p7), [#allocation2], %s964_s16 }
  0x1d   : > { %v492_v4 = vlaneseq  ;;  %s1332_s24 = smov (!%p477_p8, %s957_s24), 3  ;;  %v1114_v13 = vmov 1.0|1.0   ;;  %v1045_v14 = vld [vmem:[%s1315_s0] sm:$0xff]  ;;  %v1046_v15 = vld [vmem:[%s1315_s0 + $0x8] sm:$0xff]  ;;  %v612_v16 = vld [vmem:[%s433_s17 + $0x10] sm:$0xff] }
  0x1e   : > { %s479_s20 = scalar_lea.vmem %s1317_s2, %s1332_s24  ;;  %s482_s29 = scalar_lea.vmem %s1318_s3, %s1332_s24  ;;  %v613_v17 = vld [vmem:[%s433_s17 + $0x18] sm:$0xff]  ;;  %v610_v18 = vld [vmem:[%s433_s17] sm:$0xff]  ;;  %v611_v20 = vld [vmem:[%s433_s17 + $0x8] sm:$0xff]  ;;  %v1115_v32 = vmov 0  }
  0x1f   : > { %v493_v5 = vshrl.u32 %v492_v4, 7  ;;  %v1088_v10 = vld [vmem:[%s479_s20] ss:$0 sm:$0xff]  ;;  %v615_v19 = vpack.c.bf16 %v613_v17, %v612_v16  ;;  %v614_v21 = vpack.c.bf16 %v611_v20, %v610_v18  ;;  %v1050_v22 = vld [vmem:[%s1320_s5 + $0x8] sm:$0xff]  ;;  %v734_v30 = vld [vmem:[%s1322_s7 + $0x10] sm:$0xff]  ;;  %1086 = vset.pattern.permute.xlu1 %v1115_v32  ;;  %1085 = vset.pattern.permute.xlu0 %v1115_v32  ;;  %s965_s30 = sshll.u32 %s1332_s24, 3 }
  0x20   : > { %v1089_v11 = vld [vmem:[%s482_s29] ss:$0 sm:$0xff]  ;;  %748 = vperm.xlu0 %1085, %v734_v30   ;;  %1087 = vset.pattern.permute.xlu2 %v1115_v32  ;;  %v735_v37 = vld [vmem:[%s1322_s7 + $0x18] sm:$0xff]  ;;  %v733_v38 = vld [vmem:[%s1322_s7 + $0x8] sm:$0xff]  ;;  %s486_s15 = scalar_lea.vmem %s1327_s12, %s965_s30 }
  0x21   : > { %v497_v6 = vadd.s32 32, %v493_v5  ;;  %v498_v7 = vadd.s32 40, %v493_v5  ;;  %v495_v8 = vadd.s32 16, %v493_v5  ;;  %v496_v9 = vadd.s32 24, %v493_v5  ;;  %1055 = vmatpush.bf16.msra.mxu2 %v615_v19  ;;  %v1049_v25 = vld [vmem:[%s1320_s5] sm:$0xff]  ;;  %v1048_v41 = vld [vmem:[%s1319_s4 + $0x8] sm:$0xff] }
  0x22   : > { %v494_v12 = vadd.s32 8, %v493_v5  ;;  %vm501_vm12 = vcmp.eq.s32.totalorder %v493_v5, %v1088_v10  ;;  %vm524_vm14 = vcmp.eq.s32.totalorder %v493_v5, %v1089_v11  ;;  %v732_v31 = vld [vmem:[%s1322_s7] sm:$0xff]  ;;  %v779_v44 = vld [vmem:[%s1324_s9 + $0x8] sm:$0xff]  ;;  %v780_v18 = vld [vmem:[%s1324_s9 + $0x10] sm:$0xff] }
  0x23   : > { %vm505_vm0 = vcmp.eq.s32.totalorder %v497_v6, %v1088_v10  ;;  %vm506_vm1 = vcmp.eq.s32.totalorder %v498_v7, %v1088_v10  ;;  %vm503_vm2 = vcmp.eq.s32.totalorder %v495_v8, %v1088_v10  ;;  %vm504_vm3 = vcmp.eq.s32.totalorder %v496_v9, %v1088_v10  ;;  %738 = vperm.xlu1 %1086, %v732_v31   ;;  %v1047_v42 = vld [vmem:[%s1319_s4] sm:$0xff]  ;;  %v1052_v46 = vld [vmem:[%s1321_s6 + $0x8] sm:$0xff] }
  0x24   : > { %vm986_vm4 = vmpackc.low %vm506_vm1, %vm505_vm0  ;;  %vm528_vm5 = vcmp.eq.s32.totalorder %v497_v6, %v1089_v11  ;;  %vm529_vm6 = vcmp.eq.s32.totalorder %v498_v7, %v1089_v11  ;;  %vm526_vm7 = vcmp.eq.s32.totalorder %v495_v8, %v1089_v11  ;;  %vm527_vm8 = vcmp.eq.s32.totalorder %v496_v9, %v1089_v11  ;;  %v1051_v43 = vld [vmem:[%s1321_s6] sm:$0xff]  ;;  %v781_v8 = vld [vmem:[%s1324_s9 + $0x18] sm:$0xff] }
  0x25   : > { %987 = vmatpush.bf16.msk.msra.mxu0 %vm986_vm4, %v1114_v13  ;;  %vm994_vm9 = vmpackc.low %vm529_vm6, %vm528_vm5  ;;  %vm502_vm13 = vcmp.eq.s32.totalorder %v494_v12, %v1088_v10  ;;  %vm525_vm15 = vcmp.eq.s32.totalorder %v494_v12, %v1089_v11  ;;  %vm555_vm4 = vcmask 392192   ;;  %1056 = vmatpush.bf16.msra.mxu2 %v614_v21  ;;  %v778_v45 = vld [vmem:[%s1324_s9] sm:$0xff] }
  0x26   : > { %995 = vmatpush.bf16.msk.msra.mxu1 %vm994_vm9, %v1114_v13  ;;  %vm988_vm10 = vmpackc.low %vm504_vm3, %vm503_vm2  ;;  %vm626_vm2 = vcmask 261120   ;;  %799 = vperm.xlu2 %1087, %v781_v8  }
  0x27   : > { %vm996_vm11 = vmpackc.low %vm527_vm8, %vm526_vm7 }
  0x28   : > { %vm990_vm0 = vmpackc.low %vm502_vm13, %vm501_vm12  ;;  %1011 = vmatmul.msk.bf16.vlgmr.msra.gmra.mxu2 %vm626_vm2, %v1050_v22  ;;  %753 = vperm.xlu0 %1085, %v735_v37  }
  0x29   : > { %989 = vmatpush.bf16.msk.msra.mxu0 %vm988_vm10, %v1114_v13  ;;  %vm998_vm1 = vmpackc.low %vm525_vm15, %vm524_vm14 }
  0x2a   : > { %997 = vmatpush.bf16.msk.msra.mxu1 %vm996_vm11, %v1114_v13 }
  0x2b   : > { %743 = vperm.xlu1 %1086, %v733_v38  }
  0x2d   : > { %991 = vmatpush.bf16.msk.msra.mxu0 %vm990_vm0, %v1114_v13 }
  0x2e   : > { %999 = vmatpush.bf16.msk.msra.mxu1 %vm998_vm1, %v1114_v13  ;;  %794 = vperm.xlu2 %1087, %v780_v18  }
  0x30   : > { %992 = vmatmul.msk.bf16.vlgmr.msra.gmra.mxu0 %vm555_vm4, %v1045_v14  ;;  %789 = vperm.xlu0 %1085, %v779_v44  }
  0x31   : > { %1000 = vmatmul.msk.bf16.vlgmr.msra.gmra.mxu1 %vm555_vm4, %v1045_v14 }
  0x32   : > { %639 = vmatpush.bf16.msrb.mxu1 %v615_v19 }
  0x33   : > { %784 = vperm.xlu1 %1086, %v778_v45   ;;  %v849_v45 = vld [vmem:[%s1325_s10] sm:$0xff] }
  0x36   : > { %640 = vmatpush.bf16.msrb.mxu1 %v614_v21 }
  0x40   : > { %993 = vmatmul.msk.bf16.gmra.mxu0 %vm555_vm4, %v1046_v15 }
  0x41   : > { %1001 = vmatmul.msk.bf16.gmra.mxu1 %vm555_vm4, %v1046_v15 }
  0x51   : > { %1010 = vmatmul.msk.bf16.vlgmr.msrb.gmra.mxu1 %vm626_vm2, %v1049_v25  ;;  %v1054_v25 = vld [vmem:[%s1323_s8 + $0x8] sm:$0xff] }
  0x92   : > { %v749_v57 = vpop.permute.xlu0 %748 }
  0x95   : > { %v739_v54 = vpop.permute.xlu1 %738 }
  0x9a   : > { %v754_v9 = vpop.permute.xlu0 %753 }
  0x9d   : > { %v744_v1 = vpop.permute.xlu1 %743 }
  0xa2   : > { %v790_v32 = vpop.permute.xlu0 %789 }
  0xab   : > { %v647_v47 = vpop.f32.mrf.mxu2 }
  0xad   : > { %v571_v23 = vpop.f32.mrf.mxu0 }
  0xae   : > { %v590_v24 = vpop.f32.mrf.mxu1 }
  0xb3   : > { %v649_v48 = vpop.f32.mrf.mxu2 }
  0xb5   : > { %v573_v26 = vpop.f32.mrf.mxu0 }
  0xb6   : > { %v592_v27 = vpop.f32.mrf.mxu1  ;;  %v604_v39 = vpack.c.bf16 %v573_v26, %v571_v23  ;;  %v1053_v23 = vld [vmem:[%s1323_s8] sm:$0xff] }
  0xb7   : > { %v691_v40 = vpack.c.bf16 %v592_v27, %v590_v24  ;;  %v850_v24 = vld [vmem:[%s1326_s11] sm:$0xff] }
  0xb8   : > { %853 = vperm.xlu2 %1087, %v850_v24  }
  0xbd   : > { %v576_v28 = vpop.f32.mrf.mxu0 }
  0xbe   : > { %v595_v29 = vpop.f32.mrf.mxu1 }
  0xc5   : > { %v578_v33 = vpop.f32.mrf.mxu0 }
  0xc6   : > { %v605_v34 = vpack.c.bf16 %v578_v33, %v576_v28  ;;  %v597_v35 = vpop.f32.mrf.mxu1  ;;  %v800_v28 = vpop.permute.xlu2 %799 }
  0xc7   : > { %v692_v36 = vpack.c.bf16 %v597_v35, %v595_v29 }
  0xc8   : > { %674 = vmatpush.bf16.msrb.mxu0 %v605_v34  ;;  %1057 = vmatpush.bf16.msra.mxu3 %v605_v34 }
  0xc9   : > { %715 = vmatpush.bf16.msrb.mxu2 %v692_v36  ;;  %v785_v36 = vpop.permute.xlu1 %784 }
  0xcc   : > { %675 = vmatpush.bf16.msrb.mxu0 %v604_v39  ;;  %1058 = vmatpush.bf16.msra.mxu3 %v604_v39 }
  0xcd   : > { %716 = vmatpush.bf16.msrb.mxu2 %v691_v40 }
  0xce   : > { %v642_v50 = vpop.f32.mrf.mxu1  ;;  %v795_v30 = vpop.permute.xlu2 %794 }
  0xcf   : > { %1021 = vmatmul.msk.bf16.vlgmr.msra.gmra.mxu3 %vm626_vm2, %v1048_v41  ;;  %1020 = vmatmul.msk.bf16.vlgmr.msrb.gmra.mxu0 %vm626_vm2, %v1047_v42 }
  0xd0   : > { %1030 = vmatmul.msk.bf16.vlgmr.msrb.gmra.mxu2 %vm626_vm2, %v1051_v43 }
  0xd6   : > { %v644_v55 = vpop.f32.mrf.mxu1 }
  0xe0   : > { %1031 = vmatmul.msk.bf16.gmra.mxu2 %vm626_vm2, %v1052_v46 }
 0x14c   : > { %v677_v51 = vpop.f32.mrf.mxu0 }
 0x14d   : > { %v678_v61 = vadd.f32 %v677_v51, %v642_v50 }
 0x152   : > { %v682_v53 = vpop.f32.mrf.mxu3 }
 0x153   : > { %v718_v49 = vpop.f32.mrf.mxu2  ;;  %v683_v59 = vadd.f32 %v682_v53, %v647_v47  ;;  %v854_v47 = vpop.permute.xlu2 %853 }
 0x154   : > { %v679_v56 = vpop.f32.mrf.mxu0  ;;  %v728_v2 = vadd.f32 %v718_v49, %v678_v61 }
 0x155   : > { %v680_v60 = vadd.f32 %v679_v56, %v644_v55 }
 0x156   : > { %v756_v10 = vadd.f32 %v739_v54, %v728_v2 }
 0x158   : > { %v764_v15 = vmul.f32 0.01, %v756_v10  ;;  %vm760_vm7 = vcmp.gt.f32.partialorder %v756_v10, 0.0 }
 0x15a   : > { %v684_v63 = vpop.f32.mrf.mxu3  ;;  %v768_v21 = vsel %vm760_vm7, %v756_v10, %v764_v15 }
 0x15b   : > { %v720_v52 = vpop.f32.mrf.mxu2  ;;  %v685_v3 = vadd.f32 %v684_v63, %v649_v48 }
 0x15c   : > { %v729_v0 = vadd.f32 %v720_v52, %v680_v60 }
 0x15e   : > { %v757_v6 = vadd.f32 %v744_v1, %v729_v0 }
 0x160   : > { %v765_v13 = vmul.f32 0.01, %v757_v6  ;;  %vm761_vm6 = vcmp.gt.f32.partialorder %v757_v6, 0.0 }
 0x162   : > { %v769_v20 = vsel %vm761_vm6, %v757_v6, %v765_v13 }
 0x163   : > { %v723_v58 = vpop.f32.mrf.mxu2  ;;  %v776_v22 = vpack.c.bf16 %v769_v20, %v768_v21 }
 0x164   : > { %v730_v62 = vadd.f32 %v723_v58, %v683_v59 }
 0x166   : > { %v758_v4 = vadd.f32 %v749_v57, %v730_v62 }
 0x168   : > { %v766_v12 = vmul.f32 0.01, %v758_v4  ;;  %vm762_vm3 = vcmp.gt.f32.partialorder %v758_v4, 0.0 }
 0x16a   : > { %v770_v16 = vsel %vm762_vm3, %v758_v4, %v766_v12 }
 0x16b   : > { %v725_v5 = vpop.f32.mrf.mxu2 }
 0x16c   : > { %v731_v7 = vadd.f32 %v725_v5, %v685_v3 }
 0x16e   : > { %v759_v11 = vadd.f32 %v754_v9, %v731_v7 }
 0x170   : > { %vm763_vm5 = vcmp.gt.f32.partialorder %v759_v11, 0.0  ;;  %v767_v14 = vmul.f32 0.01, %v759_v11 }
 0x172   : > { %v771_v17 = vsel %vm763_vm5, %v759_v11, %v767_v14 }
 0x173   : > { %v777_v19 = vpack.c.bf16 %v771_v17, %v770_v16 }
 0x175   : > { %824 = vmatpush.bf16.msrb.mxu3 %v777_v19 }
 0x179   : > { %825 = vmatpush.bf16.msrb.mxu3 %v776_v22 }
 0x17c   : > { %1040 = vmatmul.msk.bf16.vlgmr.msrb.gmra.mxu3 %vm626_vm2, %v1053_v23 }
 0x18c   : > { %1041 = vmatmul.msk.bf16.gmra.mxu3 %vm626_vm2, %v1054_v25 }
 0x1ff   : > { %v827_v26 = vpop.f32.mrf.mxu3 }
 0x200   : > { %v828_v37 = vadd.f32 %v827_v26, %v785_v36 }
 0x202   : > { %v841_v42 = vmul.f32 0.01, %v828_v37  ;;  %vm837_vm11 = vcmp.gt.f32.partialorder %v828_v37, 0.0 }
 0x204   : > { %v845_v46 = vsel %vm837_vm11, %v828_v37, %v841_v42 }
 0x207   : > { %v829_v27 = vpop.f32.mrf.mxu3 }
 0x208   : > { %v830_v34 = vadd.f32 %v829_v27, %v790_v32 }
 0x20a   : > { %v842_v40 = vmul.f32 0.01, %v830_v34  ;;  %vm838_vm10 = vcmp.gt.f32.partialorder %v830_v34, 0.0 }
 0x20c   : > { %v846_v44 = vsel %vm838_vm10, %v830_v34, %v842_v40 }
 0x20f   : > { %v832_v29 = vpop.f32.mrf.mxu3 }
 0x210   : > { %v833_v31 = vadd.f32 %v832_v29, %v795_v30 }
 0x212   : > { %v843_v38 = vmul.f32 0.01, %v833_v31  ;;  %vm839_vm9 = vcmp.gt.f32.partialorder %v833_v31, 0.0 }
 0x214   : > { %v847_v43 = vsel %vm839_vm9, %v833_v31, %v843_v38 }
 0x217   : > { %v834_v33 = vpop.f32.mrf.mxu3 }
 0x218   : > { %v835_v35 = vadd.f32 %v834_v33, %v800_v28 }
 0x21a   : > { %vm840_vm8 = vcmp.gt.f32.partialorder %v835_v35, 0.0  ;;  %v844_v39 = vmul.f32 0.01, %v835_v35 }
 0x21c   : > { %v848_v41 = vsel %vm840_vm8, %v835_v35, %v844_v39 }
 0x21d   : > { %871 = vmatpush.msra.mxu2 %v848_v41 }
 0x21f   : > { %872 = vmatpush.msra.mxu2 %v847_v43 }
 0x221   : > { %873 = vmatpush.msra.mxu2 %v846_v44 }
 0x223   : > { %874 = vmatpush.msra.mxu2 %v845_v46 }
 0x224   : > { %1042 = vmatmul.msk.f32.vlgmr.msra.gmra.mxu2 %vm626_vm2, %v849_v45 }
 0x2a7   : > { %v876_v48 = vpop.f32.mrf.mxu2 }
 0x2a8   : > { %v877_v49 = vadd.f32 %v876_v48, %v854_v47 }
 0x2aa   : > { %879 = vst [vmem:[%s486_s15] sm:$0xff] %v877_v49 }
 0x2ab PF: > { %p19_p9 = scmp.ge.s32.totalorder %s1198_s25, 6   ;;  %s1328_s21 = smov %s1108_s22 }
 0x2ac   : > { %s1329_s22 = smov %s1207_s28  ;;  %s1330_s23 = smov %s1198_s25 }
 0x2ad   :  { %21 = sbr.rel (!%p19_p9) target bundleno = 2 (0x2), region = 147 }

</bundles_post_ra>
